<compile_context>
chip_gen: v5e
topology: v5e:2x2
jax: 0.10.0
libtpu: 0.0.40
codegen_flags: <defaults>
</compile_context>

<pallas_src>
import jax
import jax.numpy as jnp
import numpy as np
from jax.experimental import pallas as pl
from jax.experimental.pallas import tpu as pltpu


def _bn_relu(y, gamma, beta):
    # y: (M, C) f32. Training-mode BatchNorm (biased variance, eps=1e-5) + ReLU.
    mean = jnp.mean(y, axis=0, keepdims=True)
    var = jnp.mean((y - mean) ** 2, axis=0, keepdims=True)
    yn = (y - mean) * jax.lax.rsqrt(var + 1e-5) * gamma + beta
    return jnp.maximum(yn, 0.0)


def _make_down_kernel(B, H, W, Cin, Cmid, Cout):
    """H, W are the POST-pooling spatial dims."""
    M = B * H * W

    def kernel(x_ref, w1_ref, g1_ref, b1_ref, w2_ref, g2_ref, b2_ref,
               o_ref, pad1_ref, col1_ref, pad2_ref, col2_ref):
        # x_ref:    (B*H, 2, W, 2*Cin)  pooling-pair folded view of the input
        # w1_ref:   (9*Cin,  Cmid)      w2_ref: (9*Cmid, Cout)
        # g*/b*:    (1, C)
        # o_ref:    (M, Cout)
        # pad1_ref: (B, H+2, W+2, Cin)  col1_ref: (M, 9*Cin)
        # pad2_ref: (B, H+2, W+2, Cmid) col2_ref: (M, 9*Cmid)

        # ---- MaxPool2d(kernel=2, stride=2) ----
        r = jnp.maximum(x_ref[:, 0:1, :, :], x_ref[:, 1:2, :, :])  # (B*H,1,W,2Cin)
        pooled = jnp.maximum(r[..., :Cin], r[..., Cin:])           # (B*H,1,W,Cin)

        # ---- Conv3x3(pad=1) #1 : in-VMEM halo pad + im2col + single K=9*Cin dot ----
        pad1_ref[...] = jnp.zeros_like(pad1_ref)
        pad1_ref[:, 1:H + 1, 1:W + 1, :] = pooled.reshape(B, H, W, Cin)
        for k in range(9):
            dy, dx = k // 3, k % 3
            col1_ref[:, k * Cin:(k + 1) * Cin] = (
                pad1_ref[:, dy:dy + H, dx:dx + W, :].reshape(M, Cin))
        y1 = jnp.dot(col1_ref[...], w1_ref[...],
                     preferred_element_type=jnp.float32)           # (M, Cmid)
        y1 = _bn_relu(y1, g1_ref[...], b1_ref[...])

        # ---- Conv3x3(pad=1) #2 : same scheme, K = 9*Cmid ----
        pad2_ref[...] = jnp.zeros_like(pad2_ref)
        pad2_ref[:, 1:H + 1, 1:W + 1, :] = y1.reshape(B, H, W, Cmid)
        for k in range(9):
            dy, dx = k // 3, k % 3
            col2_ref[:, k * Cmid:(k + 1) * Cmid] = (
                pad2_ref[:, dy:dy + H, dx:dx + W, :].reshape(M, Cmid))
        y2 = jnp.dot(col2_ref[...], w2_ref[...],
                     preferred_element_type=jnp.float32)           # (M, Cout)
        y2 = _bn_relu(y2, g2_ref[...], b2_ref[...])

        o_ref[...] = y2.astype(o_ref.dtype)

    return kernel


def down_forward(x_nchw, params):
    B, Cin, Hin, Win = x_nchw.shape
    assert Hin % 2 == 0 and Win % 2 == 0, "MaxPool2d(2) requires even H, W"
    H, W = Hin // 2, Win // 2
    Cmid = params["w1"].shape[-1]
    Cout = params["w2"].shape[-1]
    M = B * H * W

    # NCHW -> NHWC -> (B*H, 2, W, 2*Cin): H-pairs in dim 1, W-pairs folded into
    # the lane dim (pure reshape of the contiguous NHWC array).
    x = jnp.transpose(x_nchw, (0, 2, 3, 1)).reshape(B * H, 2, W, 2 * Cin)

    # HWIO weights flattened row-major -> row index = (ky*3 + kx)*Cin + cin,
    # matching the im2col column order built inside the kernel.
    w1 = params["w1"].reshape(9 * Cin, Cmid).astype(jnp.float32)
    w2 = params["w2"].reshape(9 * Cmid, Cout).astype(jnp.float32)
    g1 = params["g1"].reshape(1, Cmid).astype(jnp.float32)
    b1 = params["b1"].reshape(1, Cmid).astype(jnp.float32)
    g2 = params["g2"].reshape(1, Cout).astype(jnp.float32)
    b2 = params["b2"].reshape(1, Cout).astype(jnp.float32)

    # TODO(synk): single-block version assumes the whole Down working set fits
    # in VMEM (fine for these U-Net tile sizes); larger H/W/C need row-tiling
    # with a 2-row halo plus a two-pass (partial-sum) BatchNorm.
    kernel = _make_down_kernel(B, H, W, Cin, Cmid, Cout)
    out = pl.pallas_call(
        kernel,
        out_shape=jax.ShapeDtypeStruct((M, Cout), jnp.float32),
        grid=(1,),
        in_specs=[
            pl.BlockSpec((B * H, 2, W, 2 * Cin), lambda i: (0, 0, 0, 0)),
            pl.BlockSpec((9 * Cin, Cmid), lambda i: (0, 0)),
            pl.BlockSpec((1, Cmid), lambda i: (0, 0)),
            pl.BlockSpec((1, Cmid), lambda i: (0, 0)),
            pl.BlockSpec((9 * Cmid, Cout), lambda i: (0, 0)),
            pl.BlockSpec((1, Cout), lambda i: (0, 0)),
            pl.BlockSpec((1, Cout), lambda i: (0, 0)),
        ],
        out_specs=pl.BlockSpec((M, Cout), lambda i: (0, 0)),
        scratch_shapes=[
            pltpu.VMEM((B, H + 2, W + 2, Cin), jnp.float32),   # padded pooled act
            pltpu.VMEM((M, 9 * Cin), jnp.float32),             # im2col slab #1
            pltpu.VMEM((B, H + 2, W + 2, Cmid), jnp.float32),  # padded layer-1 act
            pltpu.VMEM((M, 9 * Cmid), jnp.float32),            # im2col slab #2
        ],
        compiler_params=pltpu.CompilerParams(
            dimension_semantics=("arbitrary",)),
    )(x, w1, g1, b1, w2, g2, b2)

    # (B*H*W, Cout) -> NCHW
    return jnp.transpose(out.reshape(B, H, W, Cout), (0, 3, 1, 2))


# ---------------- pure-JAX reference (verification only) ----------------
def _reference(x_nchw, params):
    x = jnp.transpose(x_nchw, (0, 2, 3, 1))
    x = jax.lax.reduce_window(x, -jnp.inf, jax.lax.max,
                              (1, 2, 2, 1), (1, 2, 2, 1), "VALID")

    def conv_bn_relu(x, w, g, b):
        y = jax.lax.conv_general_dilated(
            x, w, (1, 1), "SAME",
            dimension_numbers=("NHWC", "HWIO", "NHWC"),
            precision=jax.lax.Precision.HIGHEST)
        mean = jnp.mean(y, axis=(0, 1, 2), keepdims=True)
        var = jnp.mean((y - mean) ** 2, axis=(0, 1, 2), keepdims=True)
        y = (y - mean) * jax.lax.rsqrt(var + 1e-5) * g + b
        return jnp.maximum(y, 0.0)

    x = conv_bn_relu(x, params["w1"], params["g1"], params["b1"])
    x = conv_bn_relu(x, params["w2"], params["g2"], params["b2"])
    return jnp.transpose(x, (0, 3, 1, 2))


if __name__ == "__main__":
    # Down(in_channels=4, out_channels=8) -> DoubleConv(4, 8) with mid=8
    in_ch, mid_ch, out_ch = 4, 8, 8
    B, H, W = 2, 16, 16

    key = jax.random.PRNGKey(0)
    kx, k1, k2 = jax.random.split(key, 3)
    params = {
        "w1": jax.random.normal(k1, (3, 3, in_ch, mid_ch), jnp.float32)
              * np.sqrt(2.0 / (9 * in_ch)),            # HWIO
        "g1": jnp.ones((mid_ch,), jnp.float32),
        "b1": jnp.zeros((mid_ch,), jnp.float32),
        "w2": jax.random.normal(k2, (3, 3, mid_ch, out_ch), jnp.float32)
              * np.sqrt(2.0 / (9 * mid_ch)),
        "g2": jnp.ones((out_ch,), jnp.float32),
        "b2": jnp.zeros((out_ch,), jnp.float32),
    }
    x = jax.random.normal(kx, (B, in_ch, H, W), jnp.float32)   # NCHW like PyTorch

    out = jax.jit(down_forward)(x, params)
    out = jax.block_until_ready(out)
    assert out.shape == (B, out_ch, H // 2, W // 2), out.shape

    ref = _reference(x, params)
    np.testing.assert_allclose(np.asarray(out), np.asarray(ref),
                               rtol=5e-3, atol=5e-3)
    print("KERNEL_OK")
</pallas_src>

<mosaic_0001>
module attributes {stable_mosaic.version = 11 : i64} {
  func.func @kernel(%arg0: i32, %arg1: memref<16x2x8x8xf32, #tpu.memory_space<vmem>>, %arg2: memref<36x8xf32, #tpu.memory_space<vmem>>, %arg3: memref<1x8xf32, #tpu.memory_space<vmem>>, %arg4: memref<1x8xf32, #tpu.memory_space<vmem>>, %arg5: memref<72x8xf32, #tpu.memory_space<vmem>>, %arg6: memref<1x8xf32, #tpu.memory_space<vmem>>, %arg7: memref<1x8xf32, #tpu.memory_space<vmem>>, %arg8: memref<128x8xf32, #tpu.memory_space<vmem>>, %arg9: memref<2x10x10x4xf32, #tpu.memory_space<vmem>>, %arg10: memref<128x36xf32, #tpu.memory_space<vmem>>, %arg11: memref<2x10x10x8xf32, #tpu.memory_space<vmem>>, %arg12: memref<128x72xf32, #tpu.memory_space<vmem>>) attributes {dimension_semantics = [#tpu.dimension_semantics<arbitrary>], iteration_bounds = array<i64: 1>, scalar_prefetch = 0 : i64, scratch_operands = 4 : i64, tpu.core_type = #tpu.core_type<tc>, window_params = [{pipeline_mode = #tpu.pipeline_mode<synchronous>, transform_indices = @transform_0, window_bounds = array<i64: 16, 2, 8, 8>}, {pipeline_mode = #tpu.pipeline_mode<synchronous>, transform_indices = @transform_1, window_bounds = array<i64: 36, 8>}, {pipeline_mode = #tpu.pipeline_mode<synchronous>, transform_indices = @transform_2, window_bounds = array<i64: 1, 8>}, {pipeline_mode = #tpu.pipeline_mode<synchronous>, transform_indices = @transform_3, window_bounds = array<i64: 1, 8>}, {pipeline_mode = #tpu.pipeline_mode<synchronous>, transform_indices = @transform_4, window_bounds = array<i64: 72, 8>}, {pipeline_mode = #tpu.pipeline_mode<synchronous>, transform_indices = @transform_5, window_bounds = array<i64: 1, 8>}, {pipeline_mode = #tpu.pipeline_mode<synchronous>, transform_indices = @transform_6, window_bounds = array<i64: 1, 8>}, {pipeline_mode = #tpu.pipeline_mode<synchronous>, transform_indices = @transform_7, window_bounds = array<i64: 128, 8>}]} {
    %c0 = arith.constant 0 : index
    %c0_0 = arith.constant 0 : index
    %c0_1 = arith.constant 0 : index
    %c0_2 = arith.constant 0 : index
    %0 = vector.load %arg1[%c0, %c0_0, %c0_1, %c0_2] : memref<16x2x8x8xf32, #tpu.memory_space<vmem>>, vector<16x1x8x8xf32>
    %c0_3 = arith.constant 0 : index
    %c1 = arith.constant 1 : index
    %c0_4 = arith.constant 0 : index
    %c0_5 = arith.constant 0 : index
    %1 = vector.load %arg1[%c0_3, %c1, %c0_4, %c0_5] : memref<16x2x8x8xf32, #tpu.memory_space<vmem>>, vector<16x1x8x8xf32>
    %2 = arith.maximumf %0, %1 : vector<16x1x8x8xf32>
    %3 = vector.extract_strided_slice %2 {offsets = [0, 0, 0, 0], sizes = [16, 1, 8, 4], strides = [1, 1, 1, 1]} : vector<16x1x8x8xf32> to vector<16x1x8x4xf32>
    %4 = vector.extract_strided_slice %2 {offsets = [0, 0, 0, 4], sizes = [16, 1, 8, 4], strides = [1, 1, 1, 1]} : vector<16x1x8x8xf32> to vector<16x1x8x4xf32>
    %5 = arith.maximumf %3, %4 : vector<16x1x8x4xf32>
    %cst = arith.constant 0.000000e+00 : f32
    %6 = vector.broadcast %cst : f32 to vector<2x10x10x4xf32>
    %c0_6 = arith.constant 0 : index
    %c0_7 = arith.constant 0 : index
    %c0_8 = arith.constant 0 : index
    %c0_9 = arith.constant 0 : index
    %7 = vector.load %arg9[%c0_6, %c0_7, %c0_8, %c0_9] : memref<2x10x10x4xf32, #tpu.memory_space<vmem>>, vector<2x10x10x4xf32>
    tpu.vector_store %arg9[%c0_6, %c0_7, %c0_8, %c0_9], %6 {strides = array<i32>} : memref<2x10x10x4xf32, #tpu.memory_space<vmem>>, vector<2x10x10x4xf32>,
    %8 = vector.shape_cast %5 : vector<16x1x8x4xf32> to vector<2x8x8x4xf32>
    %c0_10 = arith.constant 0 : index
    %c1_11 = arith.constant 1 : index
    %c1_12 = arith.constant 1 : index
    %c0_13 = arith.constant 0 : index
    %9 = vector.load %arg9[%c0_10, %c1_11, %c1_12, %c0_13] : memref<2x10x10x4xf32, #tpu.memory_space<vmem>>, vector<2x8x8x4xf32>
    tpu.vector_store %arg9[%c0_10, %c1_11, %c1_12, %c0_13], %8 {strides = array<i32>} : memref<2x10x10x4xf32, #tpu.memory_space<vmem>>, vector<2x8x8x4xf32>,
    %c0_14 = arith.constant 0 : index
    %c0_15 = arith.constant 0 : index
    %c0_16 = arith.constant 0 : index
    %c0_17 = arith.constant 0 : index
    %10 = vector.load %arg9[%c0_14, %c0_15, %c0_16, %c0_17] : memref<2x10x10x4xf32, #tpu.memory_space<vmem>>, vector<2x8x8x4xf32>
    %11 = vector.shape_cast %10 : vector<2x8x8x4xf32> to vector<128x4xf32>
    %c0_18 = arith.constant 0 : index
    %c0_19 = arith.constant 0 : index
    %12 = vector.load %arg10[%c0_18, %c0_19] : memref<128x36xf32, #tpu.memory_space<vmem>>, vector<128x4xf32>
    tpu.vector_store %arg10[%c0_18, %c0_19], %11 {strides = array<i32>} : memref<128x36xf32, #tpu.memory_space<vmem>>, vector<128x4xf32>,
    %c0_20 = arith.constant 0 : index
    %c0_21 = arith.constant 0 : index
    %c1_22 = arith.constant 1 : index
    %c0_23 = arith.constant 0 : index
    %13 = vector.load %arg9[%c0_20, %c0_21, %c1_22, %c0_23] : memref<2x10x10x4xf32, #tpu.memory_space<vmem>>, vector<2x8x8x4xf32>
    %14 = vector.shape_cast %13 : vector<2x8x8x4xf32> to vector<128x4xf32>
    %c0_24 = arith.constant 0 : index
    %c4 = arith.constant 4 : index
    %15 = vector.load %arg10[%c0_24, %c4] : memref<128x36xf32, #tpu.memory_space<vmem>>, vector<128x4xf32>
    tpu.vector_store %arg10[%c0_24, %c4], %14 {strides = array<i32>} : memref<128x36xf32, #tpu.memory_space<vmem>>, vector<128x4xf32>,
    %c0_25 = arith.constant 0 : index
    %c0_26 = arith.constant 0 : index
    %c2 = arith.constant 2 : index
    %c0_27 = arith.constant 0 : index
    %16 = vector.load %arg9[%c0_25, %c0_26, %c2, %c0_27] : memref<2x10x10x4xf32, #tpu.memory_space<vmem>>, vector<2x8x8x4xf32>
    %17 = vector.shape_cast %16 : vector<2x8x8x4xf32> to vector<128x4xf32>
    %c0_28 = arith.constant 0 : index
    %c8 = arith.constant 8 : index
    %18 = vector.load %arg10[%c0_28, %c8] : memref<128x36xf32, #tpu.memory_space<vmem>>, vector<128x4xf32>
    tpu.vector_store %arg10[%c0_28, %c8], %17 {strides = array<i32>} : memref<128x36xf32, #tpu.memory_space<vmem>>, vector<128x4xf32>,
    %c0_29 = arith.constant 0 : index
    %c1_30 = arith.constant 1 : index
    %c0_31 = arith.constant 0 : index
    %c0_32 = arith.constant 0 : index
    %19 = vector.load %arg9[%c0_29, %c1_30, %c0_31, %c0_32] : memref<2x10x10x4xf32, #tpu.memory_space<vmem>>, vector<2x8x8x4xf32>
    %20 = vector.shape_cast %19 : vector<2x8x8x4xf32> to vector<128x4xf32>
    %c0_33 = arith.constant 0 : index
    %c12 = arith.constant 12 : index
    %21 = vector.load %arg10[%c0_33, %c12] : memref<128x36xf32, #tpu.memory_space<vmem>>, vector<128x4xf32>
    tpu.vector_store %arg10[%c0_33, %c12], %20 {strides = array<i32>} : memref<128x36xf32, #tpu.memory_space<vmem>>, vector<128x4xf32>,
    %c0_34 = arith.constant 0 : index
    %c1_35 = arith.constant 1 : index
    %c1_36 = arith.constant 1 : index
    %c0_37 = arith.constant 0 : index
    %22 = vector.load %arg9[%c0_34, %c1_35, %c1_36, %c0_37] : memref<2x10x10x4xf32, #tpu.memory_space<vmem>>, vector<2x8x8x4xf32>
    %23 = vector.shape_cast %22 : vector<2x8x8x4xf32> to vector<128x4xf32>
    %c0_38 = arith.constant 0 : index
    %c16 = arith.constant 16 : index
    %24 = vector.load %arg10[%c0_38, %c16] : memref<128x36xf32, #tpu.memory_space<vmem>>, vector<128x4xf32>
    tpu.vector_store %arg10[%c0_38, %c16], %23 {strides = array<i32>} : memref<128x36xf32, #tpu.memory_space<vmem>>, vector<128x4xf32>,
    %c0_39 = arith.constant 0 : index
    %c1_40 = arith.constant 1 : index
    %c2_41 = arith.constant 2 : index
    %c0_42 = arith.constant 0 : index
    %25 = vector.load %arg9[%c0_39, %c1_40, %c2_41, %c0_42] : memref<2x10x10x4xf32, #tpu.memory_space<vmem>>, vector<2x8x8x4xf32>
    %26 = vector.shape_cast %25 : vector<2x8x8x4xf32> to vector<128x4xf32>
    %c0_43 = arith.constant 0 : index
    %c20 = arith.constant 20 : index
    %27 = vector.load %arg10[%c0_43, %c20] : memref<128x36xf32, #tpu.memory_space<vmem>>, vector<128x4xf32>
    tpu.vector_store %arg10[%c0_43, %c20], %26 {strides = array<i32>} : memref<128x36xf32, #tpu.memory_space<vmem>>, vector<128x4xf32>,
    %c0_44 = arith.constant 0 : index
    %c2_45 = arith.constant 2 : index
    %c0_46 = arith.constant 0 : index
    %c0_47 = arith.constant 0 : index
    %28 = vector.load %arg9[%c0_44, %c2_45, %c0_46, %c0_47] : memref<2x10x10x4xf32, #tpu.memory_space<vmem>>, vector<2x8x8x4xf32>
    %29 = vector.shape_cast %28 : vector<2x8x8x4xf32> to vector<128x4xf32>
    %c0_48 = arith.constant 0 : index
    %c24 = arith.constant 24 : index
    %30 = vector.load %arg10[%c0_48, %c24] : memref<128x36xf32, #tpu.memory_space<vmem>>, vector<128x4xf32>
    tpu.vector_store %arg10[%c0_48, %c24], %29 {strides = array<i32>} : memref<128x36xf32, #tpu.memory_space<vmem>>, vector<128x4xf32>,
    %c0_49 = arith.constant 0 : index
    %c2_50 = arith.constant 2 : index
    %c1_51 = arith.constant 1 : index
    %c0_52 = arith.constant 0 : index
    %31 = vector.load %arg9[%c0_49, %c2_50, %c1_51, %c0_52] : memref<2x10x10x4xf32, #tpu.memory_space<vmem>>, vector<2x8x8x4xf32>
    %32 = vector.shape_cast %31 : vector<2x8x8x4xf32> to vector<128x4xf32>
    %c0_53 = arith.constant 0 : index
    %c28 = arith.constant 28 : index
    %33 = vector.load %arg10[%c0_53, %c28] : memref<128x36xf32, #tpu.memory_space<vmem>>, vector<128x4xf32>
    tpu.vector_store %arg10[%c0_53, %c28], %32 {strides = array<i32>} : memref<128x36xf32, #tpu.memory_space<vmem>>, vector<128x4xf32>,
    %c0_54 = arith.constant 0 : index
    %c2_55 = arith.constant 2 : index
    %c2_56 = arith.constant 2 : index
    %c0_57 = arith.constant 0 : index
    %34 = vector.load %arg9[%c0_54, %c2_55, %c2_56, %c0_57] : memref<2x10x10x4xf32, #tpu.memory_space<vmem>>, vector<2x8x8x4xf32>
    %35 = vector.shape_cast %34 : vector<2x8x8x4xf32> to vector<128x4xf32>
    %c0_58 = arith.constant 0 : index
    %c32 = arith.constant 32 : index
    %36 = vector.load %arg10[%c0_58, %c32] : memref<128x36xf32, #tpu.memory_space<vmem>>, vector<128x4xf32>
    tpu.vector_store %arg10[%c0_58, %c32], %35 {strides = array<i32>} : memref<128x36xf32, #tpu.memory_space<vmem>>, vector<128x4xf32>,
    %c0_59 = arith.constant 0 : index
    %c0_60 = arith.constant 0 : index
    %37 = vector.load %arg10[%c0_59, %c0_60] : memref<128x36xf32, #tpu.memory_space<vmem>>, vector<128x36xf32>
    %c0_61 = arith.constant 0 : index
    %c0_62 = arith.constant 0 : index
    %38 = vector.load %arg2[%c0_61, %c0_62] : memref<36x8xf32, #tpu.memory_space<vmem>>, vector<36x8xf32>
    %cst_63 = arith.constant dense<0.000000e+00> : vector<128x8xf32>
    %39 = tpu.matmul %37, %38, %cst_63 {dimension_numbers = #tpu.dot_dimension_numbers<[1], [0], [0], [1], [0, 0, 1, 1], [], []>} : vector<128x36xf32>, vector<36x8xf32>, vector<128x8xf32> -> vector<128x8xf32>
    %c0_64 = arith.constant 0 : index
    %c0_65 = arith.constant 0 : index
    %40 = vector.load %arg3[%c0_64, %c0_65] : memref<1x8xf32, #tpu.memory_space<vmem>>, vector<1x8xf32>
    %c0_66 = arith.constant 0 : index
    %c0_67 = arith.constant 0 : index
    %41 = vector.load %arg4[%c0_66, %c0_67] : memref<1x8xf32, #tpu.memory_space<vmem>>, vector<1x8xf32>
    %cst_68 = arith.constant dense<0.000000e+00> : vector<8xf32>
    %42 = vector.multi_reduction <add>, %39, %cst_68 [0] : vector<128x8xf32> to vector<8xf32>
    %43 = vector.shape_cast %42 : vector<8xf32> to vector<1x8xf32>
    %cst_69 = arith.constant 1.280000e+02 : f32
    %44 = vector.broadcast %cst_69 : f32 to vector<1x8xf32>
    %45 = arith.divf %43, %44 : vector<1x8xf32>
    %46 = vector.broadcast %45 : vector<1x8xf32> to vector<128x8xf32>
    %47 = arith.subf %39, %46 : vector<128x8xf32>
    %48 = arith.mulf %47, %47 : vector<128x8xf32>
    %cst_70 = arith.constant dense<0.000000e+00> : vector<8xf32>
    %49 = vector.multi_reduction <add>, %48, %cst_70 [0] : vector<128x8xf32> to vector<8xf32>
    %50 = vector.shape_cast %49 : vector<8xf32> to vector<1x8xf32>
    %cst_71 = arith.constant 1.280000e+02 : f32
    %51 = vector.broadcast %cst_71 : f32 to vector<1x8xf32>
    %52 = arith.divf %50, %51 : vector<1x8xf32>
    %53 = vector.broadcast %45 : vector<1x8xf32> to vector<128x8xf32>
    %54 = arith.subf %39, %53 : vector<128x8xf32>
    %cst_72 = arith.constant 9.99999974E-6 : f32
    %55 = vector.broadcast %cst_72 : f32 to vector<1x8xf32>
    %56 = arith.addf %52, %55 : vector<1x8xf32>
    %57 = math.rsqrt %56 : vector<1x8xf32>
    %58 = vector.broadcast %57 : vector<1x8xf32> to vector<128x8xf32>
    %59 = arith.mulf %54, %58 : vector<128x8xf32>
    %60 = vector.broadcast %40 : vector<1x8xf32> to vector<128x8xf32>
    %61 = arith.mulf %59, %60 : vector<128x8xf32>
    %62 = vector.broadcast %41 : vector<1x8xf32> to vector<128x8xf32>
    %63 = arith.addf %61, %62 : vector<128x8xf32>
    %cst_73 = arith.constant 0.000000e+00 : f32
    %64 = vector.broadcast %cst_73 : f32 to vector<128x8xf32>
    %65 = arith.maximumf %63, %64 : vector<128x8xf32>
    %cst_74 = arith.constant 0.000000e+00 : f32
    %66 = vector.broadcast %cst_74 : f32 to vector<2x10x10x8xf32>
    %c0_75 = arith.constant 0 : index
    %c0_76 = arith.constant 0 : index
    %c0_77 = arith.constant 0 : index
    %c0_78 = arith.constant 0 : index
    %67 = vector.load %arg11[%c0_75, %c0_76, %c0_77, %c0_78] : memref<2x10x10x8xf32, #tpu.memory_space<vmem>>, vector<2x10x10x8xf32>
    tpu.vector_store %arg11[%c0_75, %c0_76, %c0_77, %c0_78], %66 {strides = array<i32>} : memref<2x10x10x8xf32, #tpu.memory_space<vmem>>, vector<2x10x10x8xf32>,
    %68 = vector.shape_cast %65 : vector<128x8xf32> to vector<2x8x8x8xf32>
    %c0_79 = arith.constant 0 : index
    %c1_80 = arith.constant 1 : index
    %c1_81 = arith.constant 1 : index
    %c0_82 = arith.constant 0 : index
    %69 = vector.load %arg11[%c0_79, %c1_80, %c1_81, %c0_82] : memref<2x10x10x8xf32, #tpu.memory_space<vmem>>, vector<2x8x8x8xf32>
    tpu.vector_store %arg11[%c0_79, %c1_80, %c1_81, %c0_82], %68 {strides = array<i32>} : memref<2x10x10x8xf32, #tpu.memory_space<vmem>>, vector<2x8x8x8xf32>,
    %c0_83 = arith.constant 0 : index
    %c0_84 = arith.constant 0 : index
    %c0_85 = arith.constant 0 : index
    %c0_86 = arith.constant 0 : index
    %70 = vector.load %arg11[%c0_83, %c0_84, %c0_85, %c0_86] : memref<2x10x10x8xf32, #tpu.memory_space<vmem>>, vector<2x8x8x8xf32>
    %71 = vector.shape_cast %70 : vector<2x8x8x8xf32> to vector<128x8xf32>
    %c0_87 = arith.constant 0 : index
    %c0_88 = arith.constant 0 : index
    %72 = vector.load %arg12[%c0_87, %c0_88] : memref<128x72xf32, #tpu.memory_space<vmem>>, vector<128x8xf32>
    tpu.vector_store %arg12[%c0_87, %c0_88], %71 {strides = array<i32>} : memref<128x72xf32, #tpu.memory_space<vmem>>, vector<128x8xf32>,
    %c0_89 = arith.constant 0 : index
    %c0_90 = arith.constant 0 : index
    %c1_91 = arith.constant 1 : index
    %c0_92 = arith.constant 0 : index
    %73 = vector.load %arg11[%c0_89, %c0_90, %c1_91, %c0_92] : memref<2x10x10x8xf32, #tpu.memory_space<vmem>>, vector<2x8x8x8xf32>
    %74 = vector.shape_cast %73 : vector<2x8x8x8xf32> to vector<128x8xf32>
    %c0_93 = arith.constant 0 : index
    %c8_94 = arith.constant 8 : index
    %75 = vector.load %arg12[%c0_93, %c8_94] : memref<128x72xf32, #tpu.memory_space<vmem>>, vector<128x8xf32>
    tpu.vector_store %arg12[%c0_93, %c8_94], %74 {strides = array<i32>} : memref<128x72xf32, #tpu.memory_space<vmem>>, vector<128x8xf32>,
    %c0_95 = arith.constant 0 : index
    %c0_96 = arith.constant 0 : index
    %c2_97 = arith.constant 2 : index
    %c0_98 = arith.constant 0 : index
    %76 = vector.load %arg11[%c0_95, %c0_96, %c2_97, %c0_98] : memref<2x10x10x8xf32, #tpu.memory_space<vmem>>, vector<2x8x8x8xf32>
    %77 = vector.shape_cast %76 : vector<2x8x8x8xf32> to vector<128x8xf32>
    %c0_99 = arith.constant 0 : index
    %c16_100 = arith.constant 16 : index
    %78 = vector.load %arg12[%c0_99, %c16_100] : memref<128x72xf32, #tpu.memory_space<vmem>>, vector<128x8xf32>
    tpu.vector_store %arg12[%c0_99, %c16_100], %77 {strides = array<i32>} : memref<128x72xf32, #tpu.memory_space<vmem>>, vector<128x8xf32>,
    %c0_101 = arith.constant 0 : index
    %c1_102 = arith.constant 1 : index
    %c0_103 = arith.constant 0 : index
    %c0_104 = arith.constant 0 : index
    %79 = vector.load %arg11[%c0_101, %c1_102, %c0_103, %c0_104] : memref<2x10x10x8xf32, #tpu.memory_space<vmem>>, vector<2x8x8x8xf32>
    %80 = vector.shape_cast %79 : vector<2x8x8x8xf32> to vector<128x8xf32>
    %c0_105 = arith.constant 0 : index
    %c24_106 = arith.constant 24 : index
    %81 = vector.load %arg12[%c0_105, %c24_106] : memref<128x72xf32, #tpu.memory_space<vmem>>, vector<128x8xf32>
    tpu.vector_store %arg12[%c0_105, %c24_106], %80 {strides = array<i32>} : memref<128x72xf32, #tpu.memory_space<vmem>>, vector<128x8xf32>,
    %c0_107 = arith.constant 0 : index
    %c1_108 = arith.constant 1 : index
    %c1_109 = arith.constant 1 : index
    %c0_110 = arith.constant 0 : index
    %82 = vector.load %arg11[%c0_107, %c1_108, %c1_109, %c0_110] : memref<2x10x10x8xf32, #tpu.memory_space<vmem>>, vector<2x8x8x8xf32>
    %83 = vector.shape_cast %82 : vector<2x8x8x8xf32> to vector<128x8xf32>
    %c0_111 = arith.constant 0 : index
    %c32_112 = arith.constant 32 : index
    %84 = vector.load %arg12[%c0_111, %c32_112] : memref<128x72xf32, #tpu.memory_space<vmem>>, vector<128x8xf32>
    tpu.vector_store %arg12[%c0_111, %c32_112], %83 {strides = array<i32>} : memref<128x72xf32, #tpu.memory_space<vmem>>, vector<128x8xf32>,
    %c0_113 = arith.constant 0 : index
    %c1_114 = arith.constant 1 : index
    %c2_115 = arith.constant 2 : index
    %c0_116 = arith.constant 0 : index
    %85 = vector.load %arg11[%c0_113, %c1_114, %c2_115, %c0_116] : memref<2x10x10x8xf32, #tpu.memory_space<vmem>>, vector<2x8x8x8xf32>
    %86 = vector.shape_cast %85 : vector<2x8x8x8xf32> to vector<128x8xf32>
    %c0_117 = arith.constant 0 : index
    %c40 = arith.constant 40 : index
    %87 = vector.load %arg12[%c0_117, %c40] : memref<128x72xf32, #tpu.memory_space<vmem>>, vector<128x8xf32>
    tpu.vector_store %arg12[%c0_117, %c40], %86 {strides = array<i32>} : memref<128x72xf32, #tpu.memory_space<vmem>>, vector<128x8xf32>,
    %c0_118 = arith.constant 0 : index
    %c2_119 = arith.constant 2 : index
    %c0_120 = arith.constant 0 : index
    %c0_121 = arith.constant 0 : index
    %88 = vector.load %arg11[%c0_118, %c2_119, %c0_120, %c0_121] : memref<2x10x10x8xf32, #tpu.memory_space<vmem>>, vector<2x8x8x8xf32>
    %89 = vector.shape_cast %88 : vector<2x8x8x8xf32> to vector<128x8xf32>
    %c0_122 = arith.constant 0 : index
    %c48 = arith.constant 48 : index
    %90 = vector.load %arg12[%c0_122, %c48] : memref<128x72xf32, #tpu.memory_space<vmem>>, vector<128x8xf32>
    tpu.vector_store %arg12[%c0_122, %c48], %89 {strides = array<i32>} : memref<128x72xf32, #tpu.memory_space<vmem>>, vector<128x8xf32>,
    %c0_123 = arith.constant 0 : index
    %c2_124 = arith.constant 2 : index
    %c1_125 = arith.constant 1 : index
    %c0_126 = arith.constant 0 : index
    %91 = vector.load %arg11[%c0_123, %c2_124, %c1_125, %c0_126] : memref<2x10x10x8xf32, #tpu.memory_space<vmem>>, vector<2x8x8x8xf32>
    %92 = vector.shape_cast %91 : vector<2x8x8x8xf32> to vector<128x8xf32>
    %c0_127 = arith.constant 0 : index
    %c56 = arith.constant 56 : index
    %93 = vector.load %arg12[%c0_127, %c56] : memref<128x72xf32, #tpu.memory_space<vmem>>, vector<128x8xf32>
    tpu.vector_store %arg12[%c0_127, %c56], %92 {strides = array<i32>} : memref<128x72xf32, #tpu.memory_space<vmem>>, vector<128x8xf32>,
    %c0_128 = arith.constant 0 : index
    %c2_129 = arith.constant 2 : index
    %c2_130 = arith.constant 2 : index
    %c0_131 = arith.constant 0 : index
    %94 = vector.load %arg11[%c0_128, %c2_129, %c2_130, %c0_131] : memref<2x10x10x8xf32, #tpu.memory_space<vmem>>, vector<2x8x8x8xf32>
    %95 = vector.shape_cast %94 : vector<2x8x8x8xf32> to vector<128x8xf32>
    %c0_132 = arith.constant 0 : index
    %c64 = arith.constant 64 : index
    %96 = vector.load %arg12[%c0_132, %c64] : memref<128x72xf32, #tpu.memory_space<vmem>>, vector<128x8xf32>
    tpu.vector_store %arg12[%c0_132, %c64], %95 {strides = array<i32>} : memref<128x72xf32, #tpu.memory_space<vmem>>, vector<128x8xf32>,
    %c0_133 = arith.constant 0 : index
    %c0_134 = arith.constant 0 : index
    %97 = vector.load %arg12[%c0_133, %c0_134] : memref<128x72xf32, #tpu.memory_space<vmem>>, vector<128x72xf32>
    %c0_135 = arith.constant 0 : index
    %c0_136 = arith.constant 0 : index
    %98 = vector.load %arg5[%c0_135, %c0_136] : memref<72x8xf32, #tpu.memory_space<vmem>>, vector<72x8xf32>
    %cst_137 = arith.constant dense<0.000000e+00> : vector<128x8xf32>
    %99 = tpu.matmul %97, %98, %cst_137 {dimension_numbers = #tpu.dot_dimension_numbers<[1], [0], [0], [1], [0, 0, 1, 1], [], []>} : vector<128x72xf32>, vector<72x8xf32>, vector<128x8xf32> -> vector<128x8xf32>
    %c0_138 = arith.constant 0 : index
    %c0_139 = arith.constant 0 : index
    %100 = vector.load %arg6[%c0_138, %c0_139] : memref<1x8xf32, #tpu.memory_space<vmem>>, vector<1x8xf32>
    %c0_140 = arith.constant 0 : index
    %c0_141 = arith.constant 0 : index
    %101 = vector.load %arg7[%c0_140, %c0_141] : memref<1x8xf32, #tpu.memory_space<vmem>>, vector<1x8xf32>
    %cst_142 = arith.constant dense<0.000000e+00> : vector<8xf32>
    %102 = vector.multi_reduction <add>, %99, %cst_142 [0] : vector<128x8xf32> to vector<8xf32>
    %103 = vector.shape_cast %102 : vector<8xf32> to vector<1x8xf32>
    %cst_143 = arith.constant 1.280000e+02 : f32
    %104 = vector.broadcast %cst_143 : f32 to vector<1x8xf32>
    %105 = arith.divf %103, %104 : vector<1x8xf32>
    %106 = vector.broadcast %105 : vector<1x8xf32> to vector<128x8xf32>
    %107 = arith.subf %99, %106 : vector<128x8xf32>
    %108 = arith.mulf %107, %107 : vector<128x8xf32>
    %cst_144 = arith.constant dense<0.000000e+00> : vector<8xf32>
    %109 = vector.multi_reduction <add>, %108, %cst_144 [0] : vector<128x8xf32> to vector<8xf32>
    %110 = vector.shape_cast %109 : vector<8xf32> to vector<1x8xf32>
    %cst_145 = arith.constant 1.280000e+02 : f32
    %111 = vector.broadcast %cst_145 : f32 to vector<1x8xf32>
    %112 = arith.divf %110, %111 : vector<1x8xf32>
    %113 = vector.broadcast %105 : vector<1x8xf32> to vector<128x8xf32>
    %114 = arith.subf %99, %113 : vector<128x8xf32>
    %cst_146 = arith.constant 9.99999974E-6 : f32
    %115 = vector.broadcast %cst_146 : f32 to vector<1x8xf32>
    %116 = arith.addf %112, %115 : vector<1x8xf32>
    %117 = math.rsqrt %116 : vector<1x8xf32>
    %118 = vector.broadcast %117 : vector<1x8xf32> to vector<128x8xf32>
    %119 = arith.mulf %114, %118 : vector<128x8xf32>
    %120 = vector.broadcast %100 : vector<1x8xf32> to vector<128x8xf32>
    %121 = arith.mulf %119, %120 : vector<128x8xf32>
    %122 = vector.broadcast %101 : vector<1x8xf32> to vector<128x8xf32>
    %123 = arith.addf %121, %122 : vector<128x8xf32>
    %cst_147 = arith.constant 0.000000e+00 : f32
    %124 = vector.broadcast %cst_147 : f32 to vector<128x8xf32>
    %125 = arith.maximumf %123, %124 : vector<128x8xf32>
    %c0_148 = arith.constant 0 : index
    %c0_149 = arith.constant 0 : index
    %126 = vector.load %arg8[%c0_148, %c0_149] : memref<128x8xf32, #tpu.memory_space<vmem>>, vector<128x8xf32>
    tpu.vector_store %arg8[%c0_148, %c0_149], %125 {strides = array<i32>} : memref<128x8xf32, #tpu.memory_space<vmem>>, vector<128x8xf32>,
    return
  }
  func.func @transform_0(%arg0: i32) -> (i32, i32, i32, i32) {
    %c0_i32 = arith.constant 0 : i32
    %c0_i32_0 = arith.constant 0 : i32
    %c0_i32_1 = arith.constant 0 : i32
    %c0_i32_2 = arith.constant 0 : i32
    %c0_i32_3 = arith.constant 0 : i32
    return %c0_i32, %c0_i32_0, %c0_i32_1, %c0_i32_2 : i32, i32, i32, i32
  }
  func.func @transform_1(%arg0: i32) -> (i32, i32) {
    %c0_i32 = arith.constant 0 : i32
    %c0_i32_0 = arith.constant 0 : i32
    %c0_i32_1 = arith.constant 0 : i32
    return %c0_i32, %c0_i32_0 : i32, i32
  }
  func.func @transform_2(%arg0: i32) -> (i32, i32) {
    %c0_i32 = arith.constant 0 : i32
    %c0_i32_0 = arith.constant 0 : i32
    %c0_i32_1 = arith.constant 0 : i32
    return %c0_i32, %c0_i32_0 : i32, i32
  }
  func.func @transform_3(%arg0: i32) -> (i32, i32) {
    %c0_i32 = arith.constant 0 : i32
    %c0_i32_0 = arith.constant 0 : i32
    %c0_i32_1 = arith.constant 0 : i32
    return %c0_i32, %c0_i32_0 : i32, i32
  }
  func.func @transform_4(%arg0: i32) -> (i32, i32) {
    %c0_i32 = arith.constant 0 : i32
    %c0_i32_0 = arith.constant 0 : i32
    %c0_i32_1 = arith.constant 0 : i32
    return %c0_i32, %c0_i32_0 : i32, i32
  }
  func.func @transform_5(%arg0: i32) -> (i32, i32) {
    %c0_i32 = arith.constant 0 : i32
    %c0_i32_0 = arith.constant 0 : i32
    %c0_i32_1 = arith.constant 0 : i32
    return %c0_i32, %c0_i32_0 : i32, i32
  }
  func.func @transform_6(%arg0: i32) -> (i32, i32) {
    %c0_i32 = arith.constant 0 : i32
    %c0_i32_0 = arith.constant 0 : i32
    %c0_i32_1 = arith.constant 0 : i32
    return %c0_i32, %c0_i32_0 : i32, i32
  }
  func.func @transform_7(%arg0: i32) -> (i32, i32) {
    %c0_i32 = arith.constant 0 : i32
    %c0_i32_0 = arith.constant 0 : i32
    %c0_i32_1 = arith.constant 0 : i32
    return %c0_i32, %c0_i32_0 : i32, i32
  }
}

</mosaic_0001>

<bundles_post_ra>
// kernel: down_forward.1
= control target key start
LH: loop header
LB: loop body
LE: loop exit
PB: predicated region body
PF: predicated region fallthrough
CT: control target
= control target key end

     0   :  { %s2666_s9 = smov 124   ;;  %vm155_vm0 = vcmask 31744   ;;  %vm157_vm1 = vcmask 25600   ;;  %v2667_v17 = vmov 0.0   ;;  %s2668_s22 = smov 8   ;;  %vm326_vm2 = vcmask 64544   ;;  %s4364_s0 = inlined_call_operand.vmem [shape: f32[16,2,8,8], index: 0, kind: input, shape index: {}]   ;;  %s4365_s1 = inlined_call_operand.vmem [shape: f32[36,8], index: 1, kind: input, shape index: {}]   ;;  %s4366_s2 = inlined_call_operand.vmem [shape: f32[1,8], index: 2, kind: input, shape index: {}]   ;;  %s4367_s3 = inlined_call_operand.vmem [shape: f32[1,8], index: 3, kind: input, shape index: {}]   ;;  %s4368_s4 = inlined_call_operand.vmem [shape: f32[72,8], index: 4, kind: input, shape index: {}]   ;;  %s4369_s5 = inlined_call_operand.vmem [shape: f32[1,8], index: 5, kind: input, shape index: {}]   ;;  %s4370_s6 = inlined_call_operand.vmem [shape: f32[1,8], index: 6, kind: input, shape index: {}]   ;;  %s4371_s7 = inlined_call_operand.vmem [shape: f32[128,8], index: 7, kind: output, shape index: {}]  }
   0x1   :  { %v28_v0 = vld [vmem:[%s4364_s0 + $0x20] sm:$0xff]  ;;  %v2580_v1 = vld [vmem:[%s4364_s0 + $0x28] sm:$0xff]  ;;  %v29_v6 = vld [vmem:[%s4364_s0 + $0x30] sm:$0xff]  ;;  %167 = vst.msk [vmem:[#allocation2 + $0x50] sm:$0xff] %vm155_vm0, %v2667_v17  ;;  %s2669_s23 = smov 4   ;;  %s2672_s24 = smov 16  }
   0x2   :  { %v26_v2 = vld [vmem:[%s4364_s0] sm:$0xff]  ;;  %v2730_v3 = vmax.f32 %v28_v0, %v2580_v1  ;;  %v2578_v4 = vld [vmem:[%s4364_s0 + $0x8] sm:$0xff]  ;;  %v2581_v7 = vld [vmem:[%s4364_s0 + $0x38] sm:$0xff]  ;;  %168 = vst.msk [vmem:[#allocation2 + $0x58] sm:$0x3] %vm157_vm1, %v2667_v17  ;;  %s2673_s25 = smov 24  }
   0x3   :  { %v2735_v5 = vmax.f32 %v26_v2, %v2578_v4  ;;  %v30_v8 = vld [vmem:[%s4364_s0 + $0x40] sm:$0xff]  ;;  %v2582_v9 = vld [vmem:[%s4364_s0 + $0x48] sm:$0xff]  ;;  %v27_v10 = vld [vmem:[%s4364_s0 + $0x10] sm:$0xff]  ;;  %v2761_v13 = vmax.f32 %v29_v6, %v2581_v7  ;;  %156 = vst.msk [vmem:[#allocation2] sm:$0xff] %vm155_vm0, %v2667_v17  ;;  %s2674_s26 = smov 32   ;;  %s2675_s27 = smov 28  }
   0x4   :  { %95 = vrot.lane.b32.xlu1 %v2730_v3, %s2666_s9  ;;  %v2579_v11 = vld [vmem:[%s4364_s0 + $0x18] sm:$0xff]  ;;  %v2759_v12 = vmax.f32 %v30_v8, %v2582_v9  ;;  %v31_v15 = vld [vmem:[%s4364_s0 + $0x50] sm:$0xff]  ;;  %158 = vst.msk [vmem:[#allocation2 + $0x8] sm:$0x3] %vm157_vm1, %v2667_v17  ;;  %v32_v21 = vld [vmem:[%s4364_s0 + $0x60] sm:$0xff]  ;;  %vm423_vm3 = vcmask 97344  }
   0x5   :  { %91 = vrot.lane.b32.xlu0 %v2735_v5, %s2666_s9  ;;  %v2765_v14 = vmax.f32 %v27_v10, %v2579_v11  ;;  %v2583_v16 = vld [vmem:[%s4364_s0 + $0x58] sm:$0xff]  ;;  %v33_v19 = vld [vmem:[%s4364_s0 + $0x70] sm:$0xff]  ;;  %159 = vst.msk [vmem:[#allocation2 + $0x10] sm:$0xff] %vm155_vm0, %v2667_v17  ;;  %v2584_v22 = vld [vmem:[%s4364_s0 + $0x68] sm:$0xff]  ;;  %vm520_vm4 = vcmask 130144   ;;  %vm1093_vm5 = vcmask 1043456  }
   0x6   :  { %99 = vrot.lane.b32.xlu2 %v2759_v12, %s2666_s9  ;;  %v2781_v18 = vmax.f32 %v31_v15, %v2583_v16  ;;  %v2585_v20 = vld [vmem:[%s4364_s0 + $0x78] sm:$0xff]  ;;  %160 = vst.msk [vmem:[#allocation2 + $0x18] sm:$0x3] %vm157_vm1, %v2667_v17  ;;  %v2811_v24 = vmax.f32 %v32_v21, %v2584_v22  ;;  %v34_v25 = vld [vmem:[%s4364_s0 + $0x80] sm:$0xff]  ;;  %v2586_v26 = vld [vmem:[%s4364_s0 + $0x88] sm:$0xff]  ;;  %vm617_vm6 = vcmask 162944  }
   0x7   :  { %161 = vst.msk [vmem:[#allocation2 + $0x20] sm:$0xff] %vm155_vm0, %v2667_v17  ;;  %v2805_v23 = vmax.f32 %v33_v19, %v2585_v20  ;;  %v2827_v27 = vmax.f32 %v34_v25, %v2586_v26  ;;  %v36_v28 = vld [vmem:[%s4364_s0 + $0xa0] sm:$0xff]  ;;  %v2588_v29 = vld [vmem:[%s4364_s0 + $0xa8] sm:$0xff]  ;;  %v35_v30 = vld [vmem:[%s4364_s0 + $0x90] sm:$0xff]  ;;  %vm714_vm7 = vcmask 195744   ;;  %vm812_vm8 = vcmask 228544  }
   0x8   :  { %162 = vst.msk [vmem:[#allocation2 + $0x28] sm:$0x3] %vm157_vm1, %v2667_v17  ;;  %v2587_v31 = vld [vmem:[%s4364_s0 + $0x98] sm:$0xff]  ;;  %v2851_v32 = vmax.f32 %v36_v28, %v2588_v29  ;;  %v37_v34 = vld [vmem:[%s4364_s0 + $0xb0] sm:$0xff]  ;;  %v38_v39 = vld [vmem:[%s4364_s0 + $0xc0] sm:$0xff]  ;;  %vm909_vm9 = vcmask 261344  }
   0x9   :  { %163 = vst.msk [vmem:[#allocation2 + $0x30] sm:$0xff] %vm155_vm0, %v2667_v17  ;;  %v2857_v33 = vmax.f32 %v35_v30, %v2587_v31  ;;  %v2589_v35 = vld [vmem:[%s4364_s0 + $0xb8] sm:$0xff]  ;;  %v39_v37 = vld [vmem:[%s4364_s0 + $0xd0] sm:$0xff]  ;;  %v2590_v40 = vld [vmem:[%s4364_s0 + $0xc8] sm:$0xff]  ;;  %vm1006_vm10 = vcmask 294144   ;;  %vm1044_vm11 = vcmask 293888  }
   0xa   :  { %164 = vst.msk [vmem:[#allocation2 + $0x38] sm:$0x3] %vm157_vm1, %v2667_v17  ;;  %v2873_v36 = vmax.f32 %v37_v34, %v2589_v35  ;;  %v2591_v38 = vld [vmem:[%s4364_s0 + $0xd8] sm:$0xff]  ;;  %v2903_v42 = vmax.f32 %v38_v39, %v2590_v40  ;;  %v40_v43 = vld [vmem:[%s4364_s0 + $0xe0] sm:$0xff]  ;;  %v2592_v44 = vld [vmem:[%s4364_s0 + $0xe8] sm:$0xff]  ;;  %vm1164_vm12 = vcmask 64512  }
   0xb   :  { %165 = vst.msk [vmem:[#allocation2 + $0x40] sm:$0xff] %vm155_vm0, %v2667_v17  ;;  %v2897_v41 = vmax.f32 %v39_v37, %v2591_v38  ;;  %v2919_v45 = vmax.f32 %v40_v43, %v2592_v44  ;;  %v41_v46 = vld [vmem:[%s4364_s0 + $0xf0] sm:$0xff]  ;;  %v2593_v47 = vld [vmem:[%s4364_s0 + $0xf8] sm:$0xff]  ;;  %v343_v49 = vld [vmem:[#allocation2 + $0x2] sm:$0xff]  ;;  %s2670_s0 = smov 12   ;;  %vm1362_vm14 = vcmask 58368  }
   0xc   :  { %97 = vrot.lane.b32.xlu1 %v2761_v13, %s2666_s9  ;;  %166 = vst.msk [vmem:[#allocation2 + $0x48] sm:$0x3] %vm157_vm1, %v2667_v17  ;;  %v2957_v48 = vmax.f32 %v41_v46, %v2593_v47  ;;  %v246_v50 = vld [vmem:[#allocation2 + $0x1] sm:$0xff]  ;;  %s2679_s19 = smov 40   ;;  %s2680_s20 = smov 64  }
   0xd   :  { %93 = vrot.lane.b32.xlu0 %v2765_v14, %s2666_s9  ;;  %169 = vst.msk [vmem:[#allocation2 + $0x60] sm:$0xff] %vm155_vm0, %v2667_v17 }
   0xe   :  { %101 = vrot.lane.b32.xlu2 %v2781_v18, %s2666_s9  ;;  %170 = vst.msk [vmem:[#allocation2 + $0x68] sm:$0x3] %vm157_vm1, %v2667_v17 }
   0xf   :  { %171 = vst.msk [vmem:[#allocation2 + $0x70] sm:$0xff] %vm155_vm0, %v2667_v17 }
  0x10   :  { %172 = vst.msk [vmem:[#allocation2 + $0x78] sm:$0x3] %vm157_vm1, %v2667_v17 }
  0x11   :  { %173 = vst.msk [vmem:[#allocation2 + $0x80] sm:$0xff] %vm155_vm0, %v2667_v17 }
  0x12   :  { %174 = vst.msk [vmem:[#allocation2 + $0x88] sm:$0x3] %vm157_vm1, %v2667_v17 }
  0x13   :  { %175 = vst.msk [vmem:[#allocation2 + $0x90] sm:$0xff] %vm155_vm0, %v2667_v17 }
  0x14   :  { %105 = vrot.lane.b32.xlu1 %v2805_v23, %s2666_s9  ;;  %176 = vst.msk [vmem:[#allocation2 + $0x98] sm:$0x3] %vm157_vm1, %v2667_v17 }
  0x15   :  { %103 = vrot.lane.b32.xlu0 %v2811_v24, %s2666_s9  ;;  %177 = vst.msk [vmem:[#allocation2 + $0xa0] sm:$0xff] %vm155_vm0, %v2667_v17 }
  0x16   :  { %107 = vrot.lane.b32.xlu2 %v2827_v27, %s2666_s9  ;;  %178 = vst.msk [vmem:[#allocation2 + $0xa8] sm:$0x3] %vm157_vm1, %v2667_v17 }
  0x17   :  { %179 = vst.msk [vmem:[#allocation2 + $0xb0] sm:$0xff] %vm155_vm0, %v2667_v17 }
  0x18   :  { %180 = vst.msk [vmem:[#allocation2 + $0xb8] sm:$0x3] %vm157_vm1, %v2667_v17 }
  0x19   :  { %181 = vst.msk [vmem:[#allocation2 + $0xc0] sm:$0xff] %vm155_vm0, %v2667_v17 }
  0x1a   :  { %182 = vst.msk [vmem:[#allocation2 + $0xc8] sm:$0x3] %vm157_vm1, %v2667_v17 }
  0x1b   :  { %183 = vst.msk [vmem:[#allocation2 + $0xd0] sm:$0xff] %vm155_vm0, %v2667_v17 }
  0x1c   :  { %111 = vrot.lane.b32.xlu1 %v2851_v32, %s2666_s9  ;;  %184 = vst.msk [vmem:[#allocation2 + $0xd8] sm:$0x3] %vm157_vm1, %v2667_v17 }
  0x1d   :  { %109 = vrot.lane.b32.xlu0 %v2857_v33, %s2666_s9  ;;  %185 = vst.msk [vmem:[#allocation2 + $0xe0] sm:$0xff] %vm155_vm0, %v2667_v17  ;;  %v254_v51 = vld [vmem:[#allocation2 + $0xa1] sm:$0xff] }
  0x1e   :  { %113 = vrot.lane.b32.xlu2 %v2873_v36, %s2666_s9  ;;  %186 = vst.msk [vmem:[#allocation2 + $0xe8] sm:$0x3] %vm157_vm1, %v2667_v17 }
  0x1f   :  { %187 = vst.msk [vmem:[#allocation2 + $0xf0] sm:$0xff] %vm155_vm0, %v2667_v17 }
  0x20   :  { %188 = vst.msk [vmem:[#allocation2 + $0xf8] sm:$0x3] %vm157_vm1, %v2667_v17 }
  0x21   :  { %189 = vst.msk [vmem:[#allocation2 + $0x100] sm:$0xff] %vm155_vm0, %v2667_v17 }
  0x22   :  { %190 = vst.msk [vmem:[#allocation2 + $0x108] sm:$0x3] %vm157_vm1, %v2667_v17 }
  0x23   :  { %191 = vst.msk [vmem:[#allocation2 + $0x110] sm:$0xff] %vm155_vm0, %v2667_v17 }
  0x24   :  { %117 = vrot.lane.b32.xlu1 %v2897_v41, %s2666_s9  ;;  %192 = vst.msk [vmem:[#allocation2 + $0x118] sm:$0x3] %vm157_vm1, %v2667_v17 }
  0x25   :  { %115 = vrot.lane.b32.xlu0 %v2903_v42, %s2666_s9  ;;  %193 = vst.msk [vmem:[#allocation2 + $0x120] sm:$0xff] %vm155_vm0, %v2667_v17 }
  0x26   :  { %119 = vrot.lane.b32.xlu2 %v2919_v45, %s2666_s9  ;;  %194 = vst.msk [vmem:[#allocation2 + $0x128] sm:$0x3] %vm157_vm1, %v2667_v17 }
  0x27   :  { %195 = vst.msk [vmem:[#allocation2 + $0x130] sm:$0xff] %vm155_vm0, %v2667_v17 }
  0x28   :  { %196 = vst.msk [vmem:[#allocation2 + $0x138] sm:$0x3] %vm157_vm1, %v2667_v17 }
  0x29   :  { %1361 = vst.msk [vmem:[#allocation4] sm:$0xff] %vm1164_vm12, %v2667_v17 }
  0x2a   :  { %1364 = vst.msk [vmem:[#allocation4 + $0x10] sm:$0xff] %vm1164_vm12, %v2667_v17 }
  0x2b   :  { %1366 = vst.msk [vmem:[#allocation4 + $0x20] sm:$0xff] %vm1164_vm12, %v2667_v17 }
  0x2c   :  { %278 = vrot.lane.b32.xlu1 %v246_v50, %s2669_s23  ;;  %1368 = vst.msk [vmem:[#allocation4 + $0x30] sm:$0xff] %vm1164_vm12, %v2667_v17 }
  0x2d   :  { %121 = vrot.lane.b32.xlu0 %v2957_v48, %s2666_s9  ;;  %s2671_s9 = smov 20   ;;  %1370 = vst.msk [vmem:[#allocation4 + $0x40] sm:$0xff] %vm1164_vm12, %v2667_v17 }
  0x2e   :  { %375 = vrot.lane.b32.xlu2 %v343_v49, %s2668_s22  ;;  %1372 = vst.msk [vmem:[#allocation4 + $0x50] sm:$0xff] %vm1164_vm12, %v2667_v17 }
  0x2f   :  { %1374 = vst.msk [vmem:[#allocation4 + $0x60] sm:$0xff] %vm1164_vm12, %v2667_v17 }
  0x30   :  { %1376 = vst.msk [vmem:[#allocation4 + $0x70] sm:$0xff] %vm1164_vm12, %v2667_v17 }
  0x31   :  { %1378 = vst.msk [vmem:[#allocation4 + $0x80] sm:$0xff] %vm1164_vm12, %v2667_v17 }
  0x32   :  { %1380 = vst.msk [vmem:[#allocation4 + $0x90] sm:$0xff] %vm1164_vm12, %v2667_v17 }
  0x33   :  { %1382 = vst.msk [vmem:[#allocation4 + $0xa0] sm:$0xff] %vm1164_vm12, %v2667_v17 }
  0x34   :  { %1384 = vst.msk [vmem:[#allocation4 + $0xb0] sm:$0xff] %vm1164_vm12, %v2667_v17 }
  0x35   :  { %294 = vrot.lane.b32.xlu0 %v254_v51, %s2669_s23  ;;  %1386 = vst.msk [vmem:[#allocation4 + $0xc0] sm:$0xff] %vm1164_vm12, %v2667_v17 }
  0x36   :  { %1388 = vst.msk [vmem:[#allocation4 + $0xd0] sm:$0xff] %vm1164_vm12, %v2667_v17 }
  0x37   :  { %1390 = vst.msk [vmem:[#allocation4 + $0xe0] sm:$0xff] %vm1164_vm12, %v2667_v17 }
  0x38   :  { %1392 = vst.msk [vmem:[#allocation4 + $0xf0] sm:$0xff] %vm1164_vm12, %v2667_v17 }
  0x39   :  { %1394 = vst.msk [vmem:[#allocation4 + $0x100] sm:$0xff] %vm1164_vm12, %v2667_v17 }
  0x3a   :  { %1396 = vst.msk [vmem:[#allocation4 + $0x110] sm:$0xff] %vm1164_vm12, %v2667_v17 }
  0x3b   :  { %1398 = vst.msk [vmem:[#allocation4 + $0x120] sm:$0xff] %vm1164_vm12, %v2667_v17 }
  0x3c   :  { %1400 = vst.msk [vmem:[#allocation4 + $0x130] sm:$0xff] %vm1164_vm12, %v2667_v17 }
  0x3d   :  { %1389 = vst.msk [vmem:[#allocation4 + $0xd8] sm:$0x3] %vm1362_vm14, %v2667_v17 }
  0x3e   :  { %1391 = vst.msk [vmem:[#allocation4 + $0xe8] sm:$0x3] %vm1362_vm14, %v2667_v17 }
  0x3f   :  { %1393 = vst.msk [vmem:[#allocation4 + $0xf8] sm:$0x3] %vm1362_vm14, %v2667_v17 }
  0x40   :  { %1395 = vst.msk [vmem:[#allocation4 + $0x108] sm:$0x3] %vm1362_vm14, %v2667_v17 }
  0x41   :  { %1397 = vst.msk [vmem:[#allocation4 + $0x118] sm:$0x3] %vm1362_vm14, %v2667_v17 }
  0x42   :  { %1399 = vst.msk [vmem:[#allocation4 + $0x128] sm:$0x3] %vm1362_vm14, %v2667_v17 }
  0x43   :  { %1363 = vst.msk [vmem:[#allocation4 + $0x8] sm:$0x3] %vm1362_vm14, %v2667_v17 }
  0x44   :  { %1365 = vst.msk [vmem:[#allocation4 + $0x18] sm:$0x3] %vm1362_vm14, %v2667_v17 }
  0x45   :  { %1367 = vst.msk [vmem:[#allocation4 + $0x28] sm:$0x3] %vm1362_vm14, %v2667_v17 }
  0x46   :  { %1369 = vst.msk [vmem:[#allocation4 + $0x38] sm:$0x3] %vm1362_vm14, %v2667_v17 }
  0x47   :  { %1371 = vst.msk [vmem:[#allocation4 + $0x48] sm:$0x3] %vm1362_vm14, %v2667_v17 }
  0x48   :  { %1373 = vst.msk [vmem:[#allocation4 + $0x58] sm:$0x3] %vm1362_vm14, %v2667_v17 }
  0x49   :  { %1375 = vst.msk [vmem:[#allocation4 + $0x68] sm:$0x3] %vm1362_vm14, %v2667_v17 }
  0x4a   :  { %1377 = vst.msk [vmem:[#allocation4 + $0x78] sm:$0x3] %vm1362_vm14, %v2667_v17 }
  0x4b   :  { %1379 = vst.msk [vmem:[#allocation4 + $0x88] sm:$0x3] %vm1362_vm14, %v2667_v17 }
  0x4c   :  { %1381 = vst.msk [vmem:[#allocation4 + $0x98] sm:$0x3] %vm1362_vm14, %v2667_v17 }
  0x4d   :  { %1383 = vst.msk [vmem:[#allocation4 + $0xa8] sm:$0x3] %vm1362_vm14, %v2667_v17 }
  0x4e   :  { %1385 = vst.msk [vmem:[#allocation4 + $0xb8] sm:$0x3] %vm1362_vm14, %v2667_v17 }
  0x4f   :  { %1387 = vst.msk [vmem:[#allocation4 + $0xc8] sm:$0x3] %vm1362_vm14, %v2667_v17 }
  0x50   :  { %1401 = vst.msk [vmem:[#allocation4 + $0x138] sm:$0x3] %vm1362_vm14, %v2667_v17 }
  0x60   :  { %v100_v52 = vpop.permute.xlu2 %99 }
  0x61   :  { %v143_v53 = vmax.f32 %v2759_v12, %v100_v52 }
  0x63   :  { %202 = vst.msk [vmem:[#allocation2 + $0x51] sm:$0xff] %vm155_vm0, %v143_v53  ;;  %v214_v53 = vld [vmem:[#allocation2] sm:$0xff] }
  0x64   :  { %230 = vst.msk [vmem:[#allocation3] sm:$0xff] %vm155_vm0, %v214_v53 }
  0x68   :  { %v102_v54 = vpop.permute.xlu2 %101 }
  0x69   :  { %v144_v55 = vmax.f32 %v2781_v18, %v102_v54 }
  0x6a   :  { %v2967_v56 = vld [vmem:[#allocation2 + $0x50] sm:$0xff] }
  0x6b   :  { %203 = vst.msk [vmem:[#allocation2 + $0x61] sm:$0xff] %vm155_vm0, %v144_v55  ;;  %v3049_v30 = vld [vmem:[#allocation2 + $0x51] sm:$0xff] }
  0x6c   :  { %235 = vst.msk [vmem:[#allocation3 + $0x28] sm:$0xff] %vm155_vm0, %v2967_v56  ;;  %v3109_v51 = vld [vmem:[#allocation2 + $0x52] sm:$0xff] }
  0x70   :  { %v108_v57 = vpop.permute.xlu2 %107 }
  0x71   :  { %v147_v58 = vmax.f32 %v2827_v27, %v108_v57 }
  0x72   :  { %v2973_v59 = vld [vmem:[#allocation2 + $0x60] sm:$0xff] }
  0x73   :  { %206 = vst.msk [vmem:[#allocation2 + $0xb1] sm:$0xff] %vm155_vm0, %v147_v58  ;;  %v3012_v15 = vld [vmem:[#allocation2 + $0x61] sm:$0xff] }
  0x74   :  { %236 = vst.msk [vmem:[#allocation3 + $0x30] sm:$0xff] %vm155_vm0, %v2973_v59 }
  0x76   :  { %v96_v60 = vpop.permute.xlu1 %95 }
  0x77   :  { %v141_v61 = vmax.f32 %v2730_v3, %v96_v60  ;;  %v92_v62 = vpop.permute.xlu0 %91  ;;  %v222_v60 = vld [vmem:[#allocation2 + $0xa0] sm:$0xff] }
  0x78   :  { %v139_v63 = vmax.f32 %v2735_v5, %v92_v62  ;;  %v114_v0 = vpop.permute.xlu2 %113  ;;  %238 = vst.msk [vmem:[#allocation3 + $0x40] sm:$0xff] %vm155_vm0, %v222_v60 }
  0x79   :  { %200 = vst.msk [vmem:[#allocation2 + $0x31] sm:$0xff] %vm155_vm0, %v141_v61  ;;  %v150_v1 = vmax.f32 %v2873_v36, %v114_v0 }
  0x7a   :  { %198 = vst.msk [vmem:[#allocation2 + $0x11] sm:$0xff] %vm155_vm0, %v139_v63  ;;  %v2983_v2 = vld [vmem:[#allocation2 + $0xb0] sm:$0xff] }
  0x7b   :  { %209 = vst.msk [vmem:[#allocation2 + $0xe1] sm:$0xff] %vm155_vm0, %v150_v1  ;;  %v3042_v26 = vld [vmem:[#allocation2 + $0xb1] sm:$0xff] }
  0x7c   :  { %239 = vst.msk [vmem:[#allocation3 + $0x48] sm:$0xff] %vm155_vm0, %v2983_v2  ;;  %v3150_v62 = vld [vmem:[#allocation2 + $0xb2] sm:$0xff] }
  0x7e   :  { %v98_v4 = vpop.permute.xlu1 %97 }
  0x7f   :  { %v142_v3 = vmax.f32 %v2761_v13, %v98_v4  ;;  %v94_v6 = vpop.permute.xlu0 %93 }
  0x80   :  { %v140_v5 = vmax.f32 %v2765_v14, %v94_v6  ;;  %v2990_v7 = vld [vmem:[#allocation2 + $0x31] sm:$0xff]  ;;  %v120_v11 = vpop.permute.xlu2 %119 }
  0x81   :  { %201 = vst.msk [vmem:[#allocation2 + $0x41] sm:$0xff] %vm155_vm0, %v142_v3  ;;  %284 = vrot.lane.b32.xlu1 %v2990_v7, %s2669_s23  ;;  %v2995_v8 = vld [vmem:[#allocation2 + $0x11] sm:$0xff]  ;;  %v153_v12 = vmax.f32 %v2919_v45, %v120_v11 }
  0x82   :  { %v2997_v9 = vld [vmem:[#allocation2 + $0x10] sm:$0xff]  ;;  %199 = vst.msk [vmem:[#allocation2 + $0x21] sm:$0xff] %vm155_vm0, %v140_v5  ;;  %280 = vrot.lane.b32.xlu2 %v2995_v8, %s2669_s23  ;;  %v3009_v13 = vld [vmem:[#allocation2 + $0xe0] sm:$0xff] }
  0x83   :  { %v2999_v10 = vld [vmem:[#allocation2 + $0x30] sm:$0xff]  ;;  %231 = vst.msk [vmem:[#allocation3 + $0x8] sm:$0xff] %vm155_vm0, %v2997_v9 }
  0x84   :  { %233 = vst.msk [vmem:[#allocation3 + $0x18] sm:$0xff] %vm155_vm0, %v2999_v10  ;;  %v344_v49 = vld [vmem:[#allocation2 + $0x12] sm:$0xff] }
  0x85   :  { %212 = vst.msk [vmem:[#allocation2 + $0x111] sm:$0xff] %vm155_vm0, %v153_v12  ;;  %v346_v50 = vld [vmem:[#allocation2 + $0x32] sm:$0xff] }
  0x86   :  { %v106_v14 = vpop.permute.xlu1 %105  ;;  %242 = vst.msk [vmem:[#allocation3 + $0x60] sm:$0xff] %vm155_vm0, %v3009_v13 }
  0x87   :  { %v146_v16 = vmax.f32 %v2805_v23, %v106_v14  ;;  %v104_v18 = vpop.permute.xlu0 %103 }
  0x88   :  { %v145_v19 = vmax.f32 %v2811_v24, %v104_v18  ;;  %v3018_v20 = vld [vmem:[#allocation2 + $0x41] sm:$0xff]  ;;  %v376_v58 = vpop.permute.xlu2 %375 }
  0x89   :  { %v3020_v21 = vld [vmem:[#allocation2 + $0x40] sm:$0xff]  ;;  %205 = vst.msk [vmem:[#allocation2 + $0x81] sm:$0xff] %vm155_vm0, %v146_v16  ;;  %290 = vrot.lane.b32.xlu1 %v3012_v15, %s2669_s23 }
  0x8a   :  { %v3025_v22 = vld [vmem:[#allocation2 + $0x21] sm:$0xff]  ;;  %204 = vst.msk [vmem:[#allocation2 + $0x71] sm:$0xff] %vm155_vm0, %v145_v19  ;;  %286 = vrot.lane.b32.xlu2 %v3018_v20, %s2669_s23 }
  0x8b   :  { %v3027_v25 = vld [vmem:[#allocation2 + $0x20] sm:$0xff]  ;;  %282 = vrot.lane.b32.xlu0 %v3025_v22, %s2669_s23  ;;  %234 = vst.msk [vmem:[#allocation3 + $0x20] sm:$0xff] %vm155_vm0, %v3020_v21 }
  0x8c   :  { %232 = vst.msk [vmem:[#allocation3 + $0x10] sm:$0xff] %vm155_vm0, %v3027_v25  ;;  %v3038_v23 = vld [vmem:[#allocation2 + $0x110] sm:$0xff]  ;;  %v345_v47 = vld [vmem:[#allocation2 + $0x22] sm:$0xff] }
  0x8d   :  { %245 = vst.msk [vmem:[#allocation3 + $0x78] sm:$0xff] %vm155_vm0, %v3038_v23  ;;  %v347_v52 = vld [vmem:[#allocation2 + $0x42] sm:$0xff] }
  0x8e   :  { %v112_v24 = vpop.permute.xlu1 %111 }
  0x8f   :  { %v149_v27 = vmax.f32 %v2851_v32, %v112_v24  ;;  %v110_v28 = vpop.permute.xlu0 %109 }
  0x90   :  { %v148_v29 = vmax.f32 %v2857_v33, %v110_v28  ;;  %v3062_v33 = vld [vmem:[#allocation2 + $0xe1] sm:$0xff] }
  0x91   :  { %208 = vst.msk [vmem:[#allocation2 + $0xd1] sm:$0xff] %vm155_vm0, %v149_v27  ;;  %296 = vrot.lane.b32.xlu1 %v3042_v26, %s2669_s23  ;;  %v3051_v31 = vld [vmem:[#allocation2 + $0x71] sm:$0xff] }
  0x92   :  { %v3053_v34 = vld [vmem:[#allocation2 + $0x70] sm:$0xff]  ;;  %207 = vst.msk [vmem:[#allocation2 + $0xc1] sm:$0xff] %vm155_vm0, %v148_v29  ;;  %292 = vrot.lane.b32.xlu2 %v3051_v31, %s2669_s23  ;;  %v1039_v29 = vld [vmem:[%s4365_s1] sm:$0xff] }
  0x93   :  { %288 = vrot.lane.b32.xlu0 %v3049_v30, %s2669_s23  ;;  %237 = vst.msk [vmem:[#allocation3 + $0x38] sm:$0xff] %vm155_vm0, %v3053_v34 }
  0x96   :  { %v118_v32 = vpop.permute.xlu1 %117 }
  0x97   :  { %v152_v35 = vmax.f32 %v2897_v41, %v118_v32  ;;  %v116_v36 = vpop.permute.xlu0 %115  ;;  %v3086_v41 = vld [vmem:[#allocation2 + $0x111] sm:$0xff] }
  0x98   :  { %v151_v37 = vmax.f32 %v2903_v42, %v116_v36  ;;  %v3066_v38 = vld [vmem:[#allocation2 + $0xd1] sm:$0xff] }
  0x99   :  { %211 = vst.msk [vmem:[#allocation2 + $0x101] sm:$0xff] %vm155_vm0, %v152_v35  ;;  %302 = vrot.lane.b32.xlu1 %v3062_v33, %s2669_s23  ;;  %v3071_v39 = vld [vmem:[#allocation2 + $0xc1] sm:$0xff]  ;;  %v3075_v43 = vld [vmem:[#allocation2 + $0xd0] sm:$0xff] }
  0x9a   :  { %v3073_v40 = vld [vmem:[#allocation2 + $0xc0] sm:$0xff]  ;;  %210 = vst.msk [vmem:[#allocation2 + $0xf1] sm:$0xff] %vm155_vm0, %v151_v37  ;;  %298 = vrot.lane.b32.xlu2 %v3071_v39, %s2669_s23 }
  0x9b   :  { %300 = vrot.lane.b32.xlu0 %v3066_v38, %s2669_s23  ;;  %240 = vst.msk [vmem:[#allocation3 + $0x50] sm:$0xff] %vm155_vm0, %v3073_v40  ;;  %v3165_v1 = vld [vmem:[#allocation2 + $0xc2] sm:$0xff] }
  0x9c   :  { %241 = vst.msk [vmem:[#allocation3 + $0x58] sm:$0xff] %vm155_vm0, %v3075_v43  ;;  %v936_v37 = vld [vmem:[#allocation2 + $0xe2] sm:$0xff] }
  0x9e   :  { %v279_v54 = vpop.permute.xlu1 %278 }
  0x9f   :  { %327 = vst.msk [vmem:[#allocation3] sm:$0xff] %vm326_vm2, %v279_v54  ;;  %v122_v55 = vpop.permute.xlu0 %121 }
  0xa0   :  { %v3088_v42 = vld [vmem:[#allocation2 + $0x101] sm:$0xff]  ;;  %v154_v57 = vmax.f32 %v2957_v48, %v122_v55  ;;  %424 = vst.msk [vmem:[#allocation3] sm:$0xff] %vm423_vm3, %v376_v58 }
  0xa1   :  { %v3090_v44 = vld [vmem:[#allocation2 + $0x100] sm:$0xff]  ;;  %308 = vrot.lane.b32.xlu1 %v3086_v41, %s2669_s23  ;;  %v3094_v45 = vld [vmem:[#allocation2 + $0xf1] sm:$0xff] }
  0xa2   :  { %v3096_v46 = vld [vmem:[#allocation2 + $0xf0] sm:$0xff]  ;;  %244 = vst.msk [vmem:[#allocation3 + $0x70] sm:$0xff] %vm155_vm0, %v3090_v44  ;;  %304 = vrot.lane.b32.xlu2 %v3094_v45, %s2669_s23 }
  0xa3   :  { %306 = vrot.lane.b32.xlu0 %v3088_v42, %s2669_s23  ;;  %243 = vst.msk [vmem:[#allocation3 + $0x68] sm:$0xff] %vm155_vm0, %v3096_v46  ;;  %v937_v55 = vld [vmem:[#allocation2 + $0xf2] sm:$0xff] }
  0xa4   :  { %213 = vst.msk [vmem:[#allocation2 + $0x121] sm:$0xff] %vm155_vm0, %v154_v57  ;;  %v931_v57 = vld [vmem:[#allocation2 + $0x72] sm:$0xff] }
  0xa7   :  { %v295_v61 = vpop.permute.xlu0 %294 }
  0xa8   :  { %335 = vst.msk [vmem:[#allocation3 + $0x40] sm:$0xff] %vm326_vm2, %v295_v61 }
  0xa9   :  { %379 = vrot.lane.b32.xlu1 %v345_v47, %s2668_s22 }
  0xaa   :  { %381 = vrot.lane.b32.xlu2 %v346_v50, %s2668_s22 }
  0xab   :  { %377 = vrot.lane.b32.xlu0 %v344_v49, %s2668_s22 }
  0xb1   :  { %385 = vrot.lane.b32.xlu1 %v3109_v51, %s2668_s22 }
  0xb2   :  { %472 = vrot.lane.b32.xlu2 %v2997_v9, %s2670_s0 }
  0xb3   :  { %383 = vrot.lane.b32.xlu0 %v347_v52, %s2668_s22 }
  0xb9   :  { %666 = vrot.lane.b32.xlu1 %v344_v49, %s2671_s9 }
  0xba   :  { %764 = vrot.lane.b32.xlu2 %v3027_v25, %s2673_s25 }
  0xbb   :  { %569 = vrot.lane.b32.xlu0 %v2995_v8, %s2672_s24  ;;  %v935_v8 = vld [vmem:[#allocation2 + $0xd2] sm:$0xff] }
  0xc1   :  { %958 = vrot.lane.b32.xlu1 %v345_v47, %s2674_s26 }
  0xc2   :  { %474 = vrot.lane.b32.xlu2 %v3027_v25, %s2670_s0  ;;  %v1040_v25 = vld [vmem:[%s4365_s1 + $0x8] sm:$0xff] }
  0xc3   :  { %861 = vrot.lane.b32.xlu0 %v3025_v22, %s2675_s27 }
  0xc9   :  { %668 = vrot.lane.b32.xlu1 %v345_v47, %s2671_s9 }
  0xca   :  { %766 = vrot.lane.b32.xlu2 %v2999_v10, %s2673_s25 }
  0xcb   :  { %571 = vrot.lane.b32.xlu0 %v3025_v22, %s2672_s24  ;;  %v1041_v22 = vld [vmem:[%s4365_s1 + $0x10] sm:$0xff] }
  0xd1   :  { %960 = vrot.lane.b32.xlu1 %v346_v50, %s2674_s26 }
  0xd2   :  { %476 = vrot.lane.b32.xlu2 %v2999_v10, %s2670_s0 }
  0xd3   :  { %863 = vrot.lane.b32.xlu0 %v2990_v7, %s2675_s27 }
  0xd9   :  { %670 = vrot.lane.b32.xlu1 %v346_v50, %s2671_s9 }
  0xda   :  { %768 = vrot.lane.b32.xlu2 %v3020_v21, %s2673_s25 }
  0xdb   :  { %573 = vrot.lane.b32.xlu0 %v2990_v7, %s2672_s24 }
  0xdc   :  { %v281_v48 = vpop.permute.xlu2 %280 }
  0xdd   :  { %328 = vst.msk [vmem:[#allocation3 + $0x8] sm:$0xff] %vm326_vm2, %v281_v48 }
  0xe1   :  { %962 = vrot.lane.b32.xlu1 %v347_v52, %s2674_s26 }
  0xe2   :  { %393 = vrot.lane.b32.xlu2 %v3150_v62, %s2668_s22 }
  0xe3   :  { %865 = vrot.lane.b32.xlu0 %v3018_v20, %s2675_s27 }
  0xe4   :  { %v287_v63 = vpop.permute.xlu2 %286 }
  0xe5   :  { %331 = vst.msk [vmem:[#allocation3 + $0x20] sm:$0xff] %vm326_vm2, %v287_v63 }
  0xe9   :  { %490 = vrot.lane.b32.xlu1 %v3073_v40, %s2670_s0 }
  0xea   :  { %575 = vrot.lane.b32.xlu2 %v3018_v20, %s2672_s24  ;;  %v1043_v20 = vld [vmem:[%s4365_s1 + $0x20] sm:$0xf] }
  0xeb   :  { %478 = vrot.lane.b32.xlu0 %v3020_v21, %s2670_s0  ;;  %v1042_v21 = vld [vmem:[%s4365_s1 + $0x18] sm:$0xff]  ;;  %2594 = vmatpush.msk.msra.mxu0 %vm1093_vm5, %v1043_v20 }
  0xec   :  { %v293_v0 = vpop.permute.xlu2 %292  ;;  %2627 = vmatpush.msk.msra.mxu3 %vm1093_vm5, %v1043_v20  ;;  %vm1822_vm5 = vcmask 326912  }
  0xed   :  { %334 = vst.msk [vmem:[#allocation3 + $0x38] sm:$0xff] %vm326_vm2, %v293_v0  ;;  %1109 = vmatpush.msra.mxu0 %v1042_v21 }
  0xee   :  { %2628 = vmatpush.msra.mxu3 %v1042_v21 }
  0xef   :  { %1110 = vmatpush.msra.mxu0 %v1041_v22 }
  0xf0   :  { %2629 = vmatpush.msra.mxu3 %v1041_v22 }
  0xf1   :  { %672 = vrot.lane.b32.xlu1 %v347_v52, %s2671_s9  ;;  %1111 = vmatpush.msra.mxu0 %v1040_v25 }
  0xf2   :  { %684 = vrot.lane.b32.xlu2 %v3165_v1, %s2671_s9  ;;  %2630 = vmatpush.msra.mxu3 %v1040_v25 }
  0xf3   :  { %587 = vrot.lane.b32.xlu0 %v3071_v39, %s2672_s24  ;;  %v285_v4 = vpop.permute.xlu1 %284  ;;  %1112 = vmatpush.msra.mxu0 %v1039_v29 }
  0xf4   :  { %330 = vst.msk [vmem:[#allocation3 + $0x18] sm:$0xff] %vm326_vm2, %v285_v4  ;;  %v299_v3 = vpop.permute.xlu2 %298  ;;  %2631 = vmatpush.msra.mxu3 %v1039_v29  ;;  %v836_v29 = vld [vmem:[#allocation2 + $0x91] sm:$0xff] }
  0xf5   :  { %337 = vst.msk [vmem:[#allocation3 + $0x50] sm:$0xff] %vm326_vm2, %v299_v3 }
  0xf9   :  { %782 = vrot.lane.b32.xlu1 %v3075_v43, %s2673_s25 }
  0xfa   :  { %867 = vrot.lane.b32.xlu2 %v3049_v30, %s2675_s27 }
  0xfb   :  { %770 = vrot.lane.b32.xlu0 %v2967_v56, %s2673_s25  ;;  %v291_v6 = vpop.permute.xlu1 %290 }
  0xfc   :  { %333 = vst.msk [vmem:[#allocation3 + $0x30] sm:$0xff] %vm326_vm2, %v291_v6  ;;  %v305_v5 = vpop.permute.xlu2 %304 }
  0xfd   :  { %v283_v7 = vpop.permute.xlu0 %282  ;;  %340 = vst.msk [vmem:[#allocation3 + $0x68] sm:$0xff] %vm326_vm2, %v305_v5  ;;  %v738_v5 = vld [vmem:[#allocation2 + $0x80] sm:$0xff] }
  0xfe   :  { %329 = vst.msk [vmem:[#allocation3 + $0x10] sm:$0xff] %vm326_vm2, %v283_v7 }
 0x101   :  { %964 = vrot.lane.b32.xlu1 %v3109_v51, %s2674_s26 }
 0x102   :  { %976 = vrot.lane.b32.xlu2 %v935_v8, %s2674_s26 }
 0x103   :  { %879 = vrot.lane.b32.xlu0 %v3066_v38, %s2675_s27  ;;  %v297_v9 = vpop.permute.xlu1 %296 }
 0x104   :  { %336 = vst.msk [vmem:[#allocation3 + $0x48] sm:$0xff] %vm326_vm2, %v297_v9  ;;  %v382_v10 = vpop.permute.xlu2 %381  ;;  %v932_v9 = vld [vmem:[#allocation2 + $0x82] sm:$0xff] }
 0x105   :  { %v289_v11 = vpop.permute.xlu0 %288  ;;  %427 = vst.msk [vmem:[#allocation3 + $0x18] sm:$0xff] %vm423_vm3, %v382_v10 }
 0x106   :  { %332 = vst.msk [vmem:[#allocation3 + $0x28] sm:$0xff] %vm326_vm2, %v289_v11 }
 0x109   :  { %480 = vrot.lane.b32.xlu1 %v2967_v56, %s2670_s0 }
 0x10a   :  { %492 = vrot.lane.b32.xlu2 %v3075_v43, %s2670_s0 }
 0x10b   :  { %395 = vrot.lane.b32.xlu0 %v3165_v1, %s2668_s22  ;;  %v303_v12 = vpop.permute.xlu1 %302 }
 0x10c   :  { %339 = vst.msk [vmem:[#allocation3 + $0x60] sm:$0xff] %vm326_vm2, %v303_v12  ;;  %v473_v14 = vpop.permute.xlu2 %472 }
 0x10d   :  { %v301_v16 = vpop.permute.xlu0 %300  ;;  %521 = vst.msk [vmem:[#allocation3] sm:$0xff] %vm520_vm4, %v473_v14  ;;  %v938_v14 = vld [vmem:[#allocation2 + $0x102] sm:$0xff] }
 0x10e   :  { %338 = vst.msk [vmem:[#allocation3 + $0x58] sm:$0xff] %vm326_vm2, %v301_v16 }
 0x111   :  { %589 = vrot.lane.b32.xlu1 %v3066_v38, %s2672_s24 }
 0x112   :  { %674 = vrot.lane.b32.xlu2 %v3109_v51, %s2671_s9 }
 0x113   :  { %577 = vrot.lane.b32.xlu0 %v3049_v30, %s2672_s24  ;;  %v309_v56 = vpop.permute.xlu1 %308  ;;  %v930_v30 = vld [vmem:[#allocation2 + $0x62] sm:$0xff] }
 0x114   :  { %342 = vst.msk [vmem:[#allocation3 + $0x78] sm:$0xff] %vm326_vm2, %v309_v56  ;;  %v765_v18 = vpop.permute.xlu2 %764 }
 0x115   :  { %v307_v19 = vpop.permute.xlu0 %306 }
 0x116   :  { %341 = vst.msk [vmem:[#allocation3 + $0x70] sm:$0xff] %vm326_vm2, %v307_v19  ;;  %vm1531_vm2 = vcmask 130112  }
 0x119   :  { %772 = vrot.lane.b32.xlu1 %v2973_v59, %s2673_s25 }
 0x11a   :  { %784 = vrot.lane.b32.xlu2 %v3009_v13, %s2673_s25 }
 0x11b   :  { %686 = vrot.lane.b32.xlu0 %v935_v8, %s2671_s9  ;;  %v380_v24 = vpop.permute.xlu1 %379 }
 0x11c   :  { %426 = vst.msk [vmem:[#allocation3 + $0x10] sm:$0xff] %vm423_vm3, %v380_v24  ;;  %v475_v27 = vpop.permute.xlu2 %474 }
 0x11d   :  { %v378_v28 = vpop.permute.xlu0 %377 }
 0x11e   :  { %425 = vst.msk [vmem:[#allocation3 + $0x8] sm:$0xff] %vm423_vm3, %v378_v28  ;;  %v739_v28 = vld [vmem:[#allocation2 + $0x90] sm:$0xff] }
 0x11f   :  { %522 = vst.msk [vmem:[#allocation3 + $0x8] sm:$0xff] %vm520_vm4, %v475_v27 }
 0x121   :  { %881 = vrot.lane.b32.xlu1 %v3062_v33, %s2675_s27 }
 0x122   :  { %966 = vrot.lane.b32.xlu2 %v930_v30, %s2674_s26 }
 0x123   :  { %869 = vrot.lane.b32.xlu0 %v3012_v15, %s2675_s27  ;;  %v386_v32 = vpop.permute.xlu1 %385 }
 0x124   :  { %429 = vst.msk [vmem:[#allocation3 + $0x28] sm:$0xff] %vm423_vm3, %v386_v32  ;;  %v767_v35 = vpop.permute.xlu2 %766 }
 0x125   :  { %v384_v36 = vpop.permute.xlu0 %383 }
 0x126   :  { %428 = vst.msk [vmem:[#allocation3 + $0x20] sm:$0xff] %vm423_vm3, %v384_v36  ;;  %v3338_v36 = vld [vmem:[#allocation2 + $0x112] sm:$0xff] }
 0x129   :  { %397 = vrot.lane.b32.xlu1 %v935_v8, %s2668_s22  ;;  %v835_v8 = vld [vmem:[#allocation2 + $0x81] sm:$0xff] }
 0x12a   :  { %482 = vrot.lane.b32.xlu2 %v2973_v59, %s2670_s0 }
 0x12b   :  { %978 = vrot.lane.b32.xlu0 %v936_v37, %s2674_s26  ;;  %v667_v38 = vpop.permute.xlu1 %666 }
 0x12c   :  { %v477_v43 = vpop.permute.xlu2 %476 }
 0x12d   :  { %v570_v47 = vpop.permute.xlu0 %569  ;;  %523 = vst.msk [vmem:[#allocation3 + $0x10] sm:$0xff] %vm520_vm4, %v477_v43 }
 0x12e   :  { %618 = vst.msk [vmem:[#allocation3] sm:$0xff] %vm617_vm6, %v570_v47  ;;  %v351_v47 = vld [vmem:[#allocation2 + $0xa2] sm:$0xff] }
 0x12f   :  { %715 = vst.msk [vmem:[#allocation3] sm:$0xff] %vm714_vm7, %v667_v38 }
 0x130   :  { %813 = vst.msk [vmem:[#allocation3] sm:$0xff] %vm812_vm8, %v765_v18 }
 0x131   :  { %579 = vrot.lane.b32.xlu1 %v3012_v15, %s2672_s24 }
 0x132   :  { %591 = vrot.lane.b32.xlu2 %v3062_v33, %s2672_s24 }
 0x133   :  { %494 = vrot.lane.b32.xlu0 %v3009_v13, %s2670_s0  ;;  %v959_v59 = vpop.permute.xlu1 %958 }
 0x134   :  { %v769_v49 = vpop.permute.xlu2 %768 }
 0x135   :  { %v862_v50 = vpop.permute.xlu0 %861 }
 0x136   :  { %910 = vst.msk [vmem:[#allocation3] sm:$0xff] %vm909_vm9, %v862_v50 }
 0x137   :  { %1007 = vst.msk [vmem:[#allocation3] sm:$0xff] %vm1006_vm10, %v959_v59 }
 0x139   :  { %688 = vrot.lane.b32.xlu1 %v936_v37, %s2671_s9 }
 0x13a   :  { %774 = vrot.lane.b32.xlu2 %v3053_v34, %s2673_s25 }
 0x13b   :  { %676 = vrot.lane.b32.xlu0 %v930_v30, %s2671_s9  ;;  %v669_v13 = vpop.permute.xlu1 %668 }
 0x13c   :  { %v394_v15 = vpop.permute.xlu2 %393 }
 0x13d   :  { %v572_v33 = vpop.permute.xlu0 %571  ;;  %433 = vst.msk [vmem:[#allocation3 + $0x48] sm:$0xff] %vm423_vm3, %v394_v15 }
 0x13e   :  { %v1023_v51 = vld [vmem:[#allocation3] sm:$0xff]  ;;  %619 = vst.msk [vmem:[#allocation3 + $0x8] sm:$0xff] %vm617_vm6, %v572_v33 }
 0x13f   :  { %2595 = vmatmul.msk.f32.vlgmr.msra.gmra.mxu0 %vm1044_vm11, %v1023_v51  ;;  %716 = vst.msk [vmem:[#allocation3 + $0x8] sm:$0xff] %vm714_vm7, %v669_v13 }
 0x140   :  { %814 = vst.msk [vmem:[#allocation3 + $0x8] sm:$0xff] %vm812_vm8, %v767_v35  ;;  %v933_v35 = vld [vmem:[#allocation2 + $0x92] sm:$0xff] }
 0x141   :  { %871 = vrot.lane.b32.xlu1 %v3051_v31, %s2675_s27 }
 0x142   :  { %883 = vrot.lane.b32.xlu2 %v3094_v45, %s2675_s27 }
 0x143   :  { %786 = vrot.lane.b32.xlu0 %v3096_v46, %s2673_s25  ;;  %v961_v52 = vpop.permute.xlu1 %960 }
 0x144   :  { %v576_v53 = vpop.permute.xlu2 %575 }
 0x145   :  { %v864_v54 = vpop.permute.xlu0 %863 }
 0x146   :  { %911 = vst.msk [vmem:[#allocation3 + $0x8] sm:$0xff] %vm909_vm9, %v864_v54  ;;  %v940_v54 = vld [vmem:[#allocation2 + $0x122] sm:$0xff] }
 0x147   :  { %1008 = vst.msk [vmem:[#allocation3 + $0x8] sm:$0xff] %vm1006_vm10, %v961_v52 }
 0x149   :  { %980 = vrot.lane.b32.xlu1 %v937_v55, %s2674_s26 }
 0x14a   :  { %387 = vrot.lane.b32.xlu2 %v930_v30, %s2668_s22 }
 0x14b   :  { %968 = vrot.lane.b32.xlu0 %v931_v57, %s2674_s26  ;;  %v671_v58 = vpop.permute.xlu1 %670 }
 0x14c   :  { %v685_v60 = vpop.permute.xlu2 %684 }
 0x14d   :  { %v574_v61 = vpop.permute.xlu0 %573 }
 0x14e   :  { %620 = vst.msk [vmem:[#allocation3 + $0x10] sm:$0xff] %vm617_vm6, %v574_v61  ;;  %v1024_v48 = vld [vmem:[#allocation3 + $0x8] sm:$0xff] }
 0x14f   :  { %717 = vst.msk [vmem:[#allocation3 + $0x10] sm:$0xff] %vm714_vm7, %v671_v58  ;;  %2596 = vmatmul.msk.f32.gmra.mxu0 %vm1044_vm11, %v1024_v48 }
 0x150   :  { %815 = vst.msk [vmem:[#allocation3 + $0x10] sm:$0xff] %vm812_vm8, %v769_v49 }
 0x151   :  { %484 = vrot.lane.b32.xlu1 %v3053_v34, %s2670_s0 }
 0x152   :  { %496 = vrot.lane.b32.xlu2 %v3096_v46, %s2670_s0 }
 0x153   :  { %399 = vrot.lane.b32.xlu0 %v936_v37, %s2668_s22  ;;  %v963_v63 = vpop.permute.xlu1 %962 }
 0x154   :  { %v868_v0 = vpop.permute.xlu2 %867 }
 0x155   :  { %v866_v4 = vpop.permute.xlu0 %865 }
 0x156   :  { %912 = vst.msk [vmem:[#allocation3 + $0x10] sm:$0xff] %vm909_vm9, %v866_v4  ;;  %v747_v4 = vld [vmem:[#allocation2 + $0x130] sm:$0xff] }
 0x157   :  { %1009 = vst.msk [vmem:[#allocation3 + $0x10] sm:$0xff] %vm1006_vm10, %v963_v63 }
 0x159   :  { %593 = vrot.lane.b32.xlu1 %v3094_v45, %s2672_s24 }
 0x15a   :  { %678 = vrot.lane.b32.xlu2 %v931_v57, %s2671_s9 }
 0x15b   :  { %581 = vrot.lane.b32.xlu0 %v3051_v31, %s2672_s24  ;;  %v491_v34 = vpop.permute.xlu1 %490 }
 0x15c   :  { %530 = vst.msk [vmem:[#allocation3 + $0x48] sm:$0xff] %vm520_vm4, %v491_v34  ;;  %v977_v3 = vpop.permute.xlu2 %976  ;;  %v941_v34 = vld [vmem:[#allocation2 + $0x132] sm:$0xff] }
 0x15d   :  { %v479_v46 = vpop.permute.xlu0 %478 }
 0x15e   :  { %524 = vst.msk [vmem:[#allocation3 + $0x18] sm:$0xff] %vm520_vm4, %v479_v46  ;;  %v1025_v6 = vld [vmem:[#allocation3 + $0x10] sm:$0xff] }
 0x15f   :  { %621 = vst.msk [vmem:[#allocation3 + $0x18] sm:$0xff] %vm617_vm6, %v576_v53  ;;  %2597 = vmatmul.msk.f32.gmra.mxu0 %vm1044_vm11, %v1025_v6 }
 0x161   :  { %776 = vrot.lane.b32.xlu1 %v738_v5, %s2673_s25 }
 0x162   :  { %788 = vrot.lane.b32.xlu2 %v3090_v44, %s2673_s25 }
 0x163   :  { %690 = vrot.lane.b32.xlu0 %v937_v55, %s2671_s9  ;;  %v673_v31 = vpop.permute.xlu1 %672 }
 0x164   :  { %718 = vst.msk [vmem:[#allocation3 + $0x18] sm:$0xff] %vm714_vm7, %v673_v31  ;;  %v493_v45 = vpop.permute.xlu2 %492 }
 0x165   :  { %v588_v7 = vpop.permute.xlu0 %587 }
 0x166   :  { %627 = vst.msk [vmem:[#allocation3 + $0x48] sm:$0xff] %vm617_vm6, %v588_v7 }
 0x167   :  { %724 = vst.msk [vmem:[#allocation3 + $0x48] sm:$0xff] %vm714_vm7, %v685_v60 }
 0x169   :  { %885 = vrot.lane.b32.xlu1 %v3088_v42, %s2675_s27 }
 0x16a   :  { %970 = vrot.lane.b32.xlu2 %v932_v9, %s2674_s26 }
 0x16b   :  { %873 = vrot.lane.b32.xlu0 %v835_v8, %s2675_s27  ;;  %v783_v10 = vpop.permute.xlu1 %782 }
 0x16c   :  { %822 = vst.msk [vmem:[#allocation3 + $0x48] sm:$0xff] %vm812_vm8, %v783_v10  ;;  %v675_v11 = vpop.permute.xlu2 %674 }
 0x16d   :  { %v771_v12 = vpop.permute.xlu0 %770 }
 0x16e   :  { %816 = vst.msk [vmem:[#allocation3 + $0x18] sm:$0xff] %vm812_vm8, %v771_v12 }
 0x16f   :  { %913 = vst.msk [vmem:[#allocation3 + $0x18] sm:$0xff] %vm909_vm9, %v868_v0  ;;  %v844_v0 = vld [vmem:[#allocation2 + $0x131] sm:$0xff] }
 0x171   :  { %389 = vrot.lane.b32.xlu1 %v931_v57, %s2668_s22 }
 0x172   :  { %401 = vrot.lane.b32.xlu2 %v937_v55, %s2668_s22 }
 0x173   :  { %982 = vrot.lane.b32.xlu0 %v938_v14, %s2674_s26  ;;  %v965_v16 = vpop.permute.xlu1 %964 }
 0x174   :  { %1010 = vst.msk [vmem:[#allocation3 + $0x18] sm:$0xff] %vm1006_vm10, %v965_v16  ;;  %v785_v56 = vpop.permute.xlu2 %784 }
 0x175   :  { %v880_v18 = vpop.permute.xlu0 %879 }
 0x176   :  { %919 = vst.msk [vmem:[#allocation3 + $0x48] sm:$0xff] %vm909_vm9, %v880_v18 }
 0x177   :  { %1016 = vst.msk [vmem:[#allocation3 + $0x48] sm:$0xff] %vm1006_vm10, %v977_v3 }
 0x179   :  { %498 = vrot.lane.b32.xlu1 %v3090_v44, %s2670_s0 }
 0x17a   :  { %583 = vrot.lane.b32.xlu2 %v835_v8, %s2672_s24 }
 0x17b   :  { %486 = vrot.lane.b32.xlu0 %v738_v5, %s2670_s0  ;;  %v481_v19 = vpop.permute.xlu1 %480  ;;  %v1026_v20 = vld [vmem:[#allocation3 + $0x18] sm:$0xff] }
 0x17c   :  { %525 = vst.msk [vmem:[#allocation3 + $0x20] sm:$0xff] %vm520_vm4, %v481_v19  ;;  %v967_v21 = vpop.permute.xlu2 %966  ;;  %2598 = vmatmul.msk.f32.gmra.mxu0 %vm1044_vm11, %v1026_v20 }
 0x17d   :  { %v396_v22 = vpop.permute.xlu0 %395 }
 0x17e   :  { %434 = vst.msk [vmem:[#allocation3 + $0x50] sm:$0xff] %vm423_vm3, %v396_v22  ;;  %v1032_v25 = vld [vmem:[#allocation3 + $0x48] sm:$0xff] }
 0x17f   :  { %531 = vst.msk [vmem:[#allocation3 + $0x50] sm:$0xff] %vm520_vm4, %v493_v45  ;;  %2604 = vmatmul.msk.f32.vlgmr.msra.gmra.mxu3 %vm1044_vm11, %v1032_v25 }
 0x181   :  { %680 = vrot.lane.b32.xlu1 %v932_v9, %s2671_s9 }
 0x182   :  { %692 = vrot.lane.b32.xlu2 %v938_v14, %s2671_s9 }
 0x183   :  { %595 = vrot.lane.b32.xlu0 %v3088_v42, %s2672_s24  ;;  %v590_v44 = vpop.permute.xlu1 %589 }
 0x184   :  { %628 = vst.msk [vmem:[#allocation3 + $0x50] sm:$0xff] %vm617_vm6, %v590_v44  ;;  %v483_v24 = vpop.permute.xlu2 %482 }
 0x185   :  { %v578_v27 = vpop.permute.xlu0 %577  ;;  %526 = vst.msk [vmem:[#allocation3 + $0x28] sm:$0xff] %vm520_vm4, %v483_v24 }
 0x186   :  { %622 = vst.msk [vmem:[#allocation3 + $0x20] sm:$0xff] %vm617_vm6, %v578_v27 }
 0x187   :  { %719 = vst.msk [vmem:[#allocation3 + $0x20] sm:$0xff] %vm714_vm7, %v675_v11 }
 0x189   :  { %790 = vrot.lane.b32.xlu1 %v3038_v23, %s2673_s25 }
 0x18a   :  { %875 = vrot.lane.b32.xlu2 %v836_v29, %s2675_s27 }
 0x18b   :  { %778 = vrot.lane.b32.xlu0 %v739_v28, %s2673_s25  ;;  %v773_v42 = vpop.permute.xlu1 %772 }
 0x18c   :  { %817 = vst.msk [vmem:[#allocation3 + $0x20] sm:$0xff] %vm812_vm8, %v773_v42  ;;  %v592_v30 = vpop.permute.xlu2 %591 }
 0x18d   :  { %v687_v32 = vpop.permute.xlu0 %686 }
 0x18e   :  { %725 = vst.msk [vmem:[#allocation3 + $0x50] sm:$0xff] %vm714_vm7, %v687_v32 }
 0x18f   :  { %823 = vst.msk [vmem:[#allocation3 + $0x50] sm:$0xff] %vm812_vm8, %v785_v56 }
 0x191   :  { %972 = vrot.lane.b32.xlu1 %v933_v35, %s2674_s26 }
 0x192   :  { %984 = vrot.lane.b32.xlu2 %v3338_v36, %s2674_s26 }
 0x193   :  { %887 = vrot.lane.b32.xlu0 %v3086_v41, %s2675_s27  ;;  %v882_v37 = vpop.permute.xlu1 %881 }
 0x194   :  { %920 = vst.msk [vmem:[#allocation3 + $0x50] sm:$0xff] %vm909_vm9, %v882_v37  ;;  %v775_v38 = vpop.permute.xlu2 %774 }
 0x195   :  { %v870_v43 = vpop.permute.xlu0 %869 }
 0x196   :  { %914 = vst.msk [vmem:[#allocation3 + $0x20] sm:$0xff] %vm909_vm9, %v870_v43 }
 0x197   :  { %1011 = vst.msk [vmem:[#allocation3 + $0x20] sm:$0xff] %vm1006_vm10, %v967_v21 }
 0x199   :  { %403 = vrot.lane.b32.xlu1 %v938_v14, %s2668_s22 }
 0x19a   :  { %488 = vrot.lane.b32.xlu2 %v2983_v2, %s2670_s0 }
 0x19b   :  { %391 = vrot.lane.b32.xlu0 %v351_v47, %s2668_s22  ;;  %v398_v59 = vpop.permute.xlu1 %397 }
 0x19c   :  { %435 = vst.msk [vmem:[#allocation3 + $0x58] sm:$0xff] %vm423_vm3, %v398_v59  ;;  %v884_v49 = vpop.permute.xlu2 %883 }
 0x19d   :  { %v979_v50 = vpop.permute.xlu0 %978 }
 0x19e   :  { %1017 = vst.msk [vmem:[#allocation3 + $0x50] sm:$0xff] %vm1006_vm10, %v979_v50  ;;  %v1027_v13 = vld [vmem:[#allocation3 + $0x20] sm:$0xff] }
 0x19f   :  { %2599 = vmatmul.msk.f32.gmra.mxu0 %vm1044_vm11, %v1027_v13 }
 0x1a1   :  { %585 = vrot.lane.b32.xlu1 %v3042_v26, %s2672_s24 }
 0x1a2   :  { %597 = vrot.lane.b32.xlu2 %v3086_v41, %s2672_s24 }
 0x1a3   :  { %500 = vrot.lane.b32.xlu0 %v3038_v23, %s2670_s0  ;;  %v580_v2 = vpop.permute.xlu1 %579 }
 0x1a4   :  { %623 = vst.msk [vmem:[#allocation3 + $0x28] sm:$0xff] %vm617_vm6, %v580_v2  ;;  %v388_v15 = vpop.permute.xlu2 %387 }
 0x1a5   :  { %v495_v26 = vpop.permute.xlu0 %494  ;;  %v1033_v33 = vld [vmem:[#allocation3 + $0x50] sm:$0xff]  ;;  %430 = vst.msk [vmem:[#allocation3 + $0x30] sm:$0xff] %vm423_vm3, %v388_v15 }
 0x1a6   :  { %2605 = vmatmul.msk.f32.gmra.mxu3 %vm1044_vm11, %v1033_v33  ;;  %532 = vst.msk [vmem:[#allocation3 + $0x58] sm:$0xff] %vm520_vm4, %v495_v26 }
 0x1a7   :  { %629 = vst.msk [vmem:[#allocation3 + $0x58] sm:$0xff] %vm617_vm6, %v592_v30 }
 0x1a9   :  { %694 = vrot.lane.b32.xlu1 %v3338_v36, %s2671_s9 }
 0x1aa   :  { %780 = vrot.lane.b32.xlu2 %v3073_v40, %s2673_s25  ;;  %v843_v40 = vld [vmem:[#allocation2 + $0x121] sm:$0xff] }
 0x1ab   :  { %682 = vrot.lane.b32.xlu0 %v3150_v62, %s2671_s9  ;;  %v689_v23 = vpop.permute.xlu1 %688  ;;  %v746_v62 = vld [vmem:[#allocation2 + $0x120] sm:$0xff] }
 0x1ac   :  { %726 = vst.msk [vmem:[#allocation3 + $0x58] sm:$0xff] %vm714_vm7, %v689_v23  ;;  %v497_v41 = vpop.permute.xlu2 %496 }
 0x1ad   :  { %v677_v51 = vpop.permute.xlu0 %676 }
 0x1ae   :  { %720 = vst.msk [vmem:[#allocation3 + $0x28] sm:$0xff] %vm714_vm7, %v677_v51 }
 0x1af   :  { %818 = vst.msk [vmem:[#allocation3 + $0x28] sm:$0xff] %vm812_vm8, %v775_v38 }
 0x1b1   :  { %877 = vrot.lane.b32.xlu1 %v3071_v39, %s2675_s27 }
 0x1b2   :  { %889 = vrot.lane.b32.xlu2 %v843_v40, %s2675_s27 }
 0x1b3   :  { %792 = vrot.lane.b32.xlu0 %v746_v62, %s2673_s25  ;;  %v872_v52 = vpop.permute.xlu1 %871 }
 0x1b4   :  { %915 = vst.msk [vmem:[#allocation3 + $0x28] sm:$0xff] %vm909_vm9, %v872_v52  ;;  %v679_v53 = vpop.permute.xlu2 %678 }
 0x1b5   :  { %v787_v39 = vpop.permute.xlu0 %786 }
 0x1b6   :  { %824 = vst.msk [vmem:[#allocation3 + $0x58] sm:$0xff] %vm812_vm8, %v787_v39 }
 0x1b7   :  { %921 = vst.msk [vmem:[#allocation3 + $0x58] sm:$0xff] %vm909_vm9, %v884_v49 }
 0x1b9   :  { %986 = vrot.lane.b32.xlu1 %v940_v54, %s2674_s26 }
 0x1ba   :  { %405 = vrot.lane.b32.xlu2 %v3338_v36, %s2668_s22 }
 0x1bb   :  { %974 = vrot.lane.b32.xlu0 %v3165_v1, %s2674_s26  ;;  %v981_v55 = vpop.permute.xlu1 %980 }
 0x1bc   :  { %1018 = vst.msk [vmem:[#allocation3 + $0x58] sm:$0xff] %vm1006_vm10, %v981_v55  ;;  %v789_v57 = vpop.permute.xlu2 %788 }
 0x1bd   :  { %v969_v58 = vpop.permute.xlu0 %968 }
 0x1be   :  { %1012 = vst.msk [vmem:[#allocation3 + $0x28] sm:$0xff] %vm1006_vm10, %v969_v58 }
 0x1c1   :  { %599 = vrot.lane.b32.xlu1 %v843_v40, %s2672_s24 }
 0x1c2   :  { %696 = vrot.lane.b32.xlu2 %v940_v54, %s2671_s9 }
 0x1c3   :  { %502 = vrot.lane.b32.xlu0 %v746_v62, %s2670_s0  ;;  %v485_v1 = vpop.permute.xlu1 %484  ;;  %v1034_v60 = vld [vmem:[#allocation3 + $0x58] sm:$0xff] }
 0x1c4   :  { %527 = vst.msk [vmem:[#allocation3 + $0x30] sm:$0xff] %vm520_vm4, %v485_v1  ;;  %v971_v61 = vpop.permute.xlu2 %970  ;;  %2606 = vmatmul.msk.f32.gmra.mxu3 %vm1044_vm11, %v1034_v60 }
 0x1c5   :  { %v400_v48 = vpop.permute.xlu0 %399  ;;  %v1028_v63 = vld [vmem:[#allocation3 + $0x28] sm:$0xff] }
 0x1c6   :  { %436 = vst.msk [vmem:[#allocation3 + $0x60] sm:$0xff] %vm423_vm3, %v400_v48  ;;  %2600 = vmatmul.msk.f32.gmra.mxu0 %vm1044_vm11, %v1028_v63 }
 0x1c7   :  { %533 = vst.msk [vmem:[#allocation3 + $0x60] sm:$0xff] %vm520_vm4, %v497_v41 }
 0x1c9   :  { %891 = vrot.lane.b32.xlu1 %v844_v0, %s2675_s27 }
 0x1ca   :  { %988 = vrot.lane.b32.xlu2 %v941_v34, %s2674_s26 }
 0x1cb   :  { %794 = vrot.lane.b32.xlu0 %v747_v4, %s2673_s25  ;;  %v594_v3 = vpop.permute.xlu1 %593 }
 0x1cc   :  { %630 = vst.msk [vmem:[#allocation3 + $0x60] sm:$0xff] %vm617_vm6, %v594_v3  ;;  %v402_v46 = vpop.permute.xlu2 %401 }
 0x1cd   :  { %v582_v6 = vpop.permute.xlu0 %581  ;;  %437 = vst.msk [vmem:[#allocation3 + $0x68] sm:$0xff] %vm423_vm3, %v402_v46 }
 0x1ce   :  { %624 = vst.msk [vmem:[#allocation3 + $0x30] sm:$0xff] %vm617_vm6, %v582_v6 }
 0x1cf   :  { %721 = vst.msk [vmem:[#allocation3 + $0x30] sm:$0xff] %vm714_vm7, %v679_v53  ;;  %v3491_v53 = vpop.f32.mrf.mxu0 }
 0x1d0   :  { %v1165_v63 = vsel %vm1164_vm12, %v3491_v53, 0.0 }
 0x1d3   :  { %v777_v5 = vpop.permute.xlu1 %776 }
 0x1d4   :  { %819 = vst.msk [vmem:[#allocation3 + $0x30] sm:$0xff] %vm812_vm8, %v777_v5  ;;  %v584_v31 = vpop.permute.xlu2 %583 }
 0x1d5   :  { %v691_v45 = vpop.permute.xlu0 %690 }
 0x1d6   :  { %727 = vst.msk [vmem:[#allocation3 + $0x60] sm:$0xff] %vm714_vm7, %v691_v45 }
 0x1d7   :  { %825 = vst.msk [vmem:[#allocation3 + $0x60] sm:$0xff] %vm812_vm8, %v789_v57  ;;  %v3493_v39 = vpop.f32.mrf.mxu0 }
 0x1d8   :  { %v1166_v48 = vsel %vm1164_vm12, %v3493_v39, 0.0 }
 0x1d9   :  { %v1167_v4 = vadd.f32 %v1166_v48, %v1165_v63 }
 0x1db   :  { %v886_v7 = vpop.permute.xlu1 %885 }
 0x1dc   :  { %922 = vst.msk [vmem:[#allocation3 + $0x60] sm:$0xff] %vm909_vm9, %v886_v7  ;;  %v693_v8 = vpop.permute.xlu2 %692 }
 0x1dd   :  { %v874_v9 = vpop.permute.xlu0 %873 }
 0x1de   :  { %916 = vst.msk [vmem:[#allocation3 + $0x30] sm:$0xff] %vm909_vm9, %v874_v9 }
 0x1df   :  { %1013 = vst.msk [vmem:[#allocation3 + $0x30] sm:$0xff] %vm1006_vm10, %v971_v61  ;;  %v3495_v54 = vpop.f32.mrf.mxu0 }
 0x1e0   :  { %v1168_v0 = vsel %vm1164_vm12, %v3495_v54, 0.0 }
 0x1e1   :  { %v1169_v3 = vadd.f32 %v1168_v0, %v1167_v4 }
 0x1e3   :  { %v390_v10 = vpop.permute.xlu1 %389 }
 0x1e4   :  { %431 = vst.msk [vmem:[#allocation3 + $0x38] sm:$0xff] %vm423_vm3, %v390_v10  ;;  %v876_v11 = vpop.permute.xlu2 %875 }
 0x1e5   :  { %v983_v12 = vpop.permute.xlu0 %982 }
 0x1e6   :  { %1019 = vst.msk [vmem:[#allocation3 + $0x60] sm:$0xff] %vm1006_vm10, %v983_v12  ;;  %v1029_v14 = vld [vmem:[#allocation3 + $0x30] sm:$0xff] }
 0x1e7   :  { %2601 = vmatmul.msk.f32.gmra.mxu0 %vm1044_vm11, %v1029_v14 }
 0x1eb   :  { %v499_v16 = vpop.permute.xlu1 %498 }
 0x1ec   :  { %534 = vst.msk [vmem:[#allocation3 + $0x68] sm:$0xff] %vm520_vm4, %v499_v16  ;;  %v985_v56 = vpop.permute.xlu2 %984 }
 0x1ed   :  { %v487_v18 = vpop.permute.xlu0 %486  ;;  %v1035_v19 = vld [vmem:[#allocation3 + $0x60] sm:$0xff] }
 0x1ee   :  { %528 = vst.msk [vmem:[#allocation3 + $0x38] sm:$0xff] %vm520_vm4, %v487_v18  ;;  %2607 = vmatmul.msk.f32.gmra.mxu3 %vm1044_vm11, %v1035_v19 }
 0x1ef   :  { %625 = vst.msk [vmem:[#allocation3 + $0x38] sm:$0xff] %vm617_vm6, %v584_v31 }
 0x1f3   :  { %v681_v20 = vpop.permute.xlu1 %680 }
 0x1f4   :  { %722 = vst.msk [vmem:[#allocation3 + $0x38] sm:$0xff] %vm714_vm7, %v681_v20  ;;  %v489_v21 = vpop.permute.xlu2 %488 }
 0x1f5   :  { %v596_v22 = vpop.permute.xlu0 %595 }
 0x1f6   :  { %631 = vst.msk [vmem:[#allocation3 + $0x68] sm:$0xff] %vm617_vm6, %v596_v22 }
 0x1f7   :  { %728 = vst.msk [vmem:[#allocation3 + $0x68] sm:$0xff] %vm714_vm7, %v693_v8 }
 0x1f9   :  { %v3497_v55 = vpop.f32.mrf.mxu0 }
 0x1fa   :  { %v1170_v34 = vsel %vm1164_vm12, %v3497_v55, 0.0 }
 0x1fb   :  { %v791_v25 = vpop.permute.xlu1 %790  ;;  %v1171_v6 = vadd.f32 %v1170_v34, %v1169_v3 }
 0x1fc   :  { %826 = vst.msk [vmem:[#allocation3 + $0x68] sm:$0xff] %vm812_vm8, %v791_v25  ;;  %v598_v44 = vpop.permute.xlu2 %597 }
 0x1fd   :  { %v779_v24 = vpop.permute.xlu0 %778 }
 0x1fe   :  { %820 = vst.msk [vmem:[#allocation3 + $0x38] sm:$0xff] %vm812_vm8, %v779_v24 }
 0x1ff   :  { %917 = vst.msk [vmem:[#allocation3 + $0x38] sm:$0xff] %vm909_vm9, %v876_v11 }
 0x202   :  { %v3501_v58 = vpop.f32.mrf.mxu3 }
 0x203   :  { %v973_v27 = vpop.permute.xlu1 %972  ;;  %v1182_v19 = vsel %vm1164_vm12, %v3501_v58, 0.0 }
 0x204   :  { %1014 = vst.msk [vmem:[#allocation3 + $0x38] sm:$0xff] %vm1006_vm10, %v973_v27  ;;  %v781_v28 = vpop.permute.xlu2 %780  ;;  %v2676_v27 = vmov 128.0  }
 0x205   :  { %v888_v29 = vpop.permute.xlu0 %887  ;;  %2660 = vrcp.f32 %v2676_v27 }
 0x206   :  { %923 = vst.msk [vmem:[#allocation3 + $0x68] sm:$0xff] %vm909_vm9, %v888_v29 }
 0x207   :  { %1020 = vst.msk [vmem:[#allocation3 + $0x68] sm:$0xff] %vm1006_vm10, %v985_v56 }
 0x20b   :  { %v404_v42 = vpop.permute.xlu1 %403  ;;  %v1030_v30 = vld [vmem:[#allocation3 + $0x38] sm:$0xff] }
 0x20c   :  { %438 = vst.msk [vmem:[#allocation3 + $0x70] sm:$0xff] %vm423_vm3, %v404_v42  ;;  %v890_v32 = vpop.permute.xlu2 %889  ;;  %2602 = vmatmul.msk.f32.gmra.mxu0 %vm1044_vm11, %v1030_v30  ;;  %v2661_v30 = vpop.eup %2660 }
 0x20d   :  { %v392_v35 = vpop.permute.xlu0 %391  ;;  %vm1207_vm13 = vweird.f32 %v2661_v30 }
 0x20e   :  { %432 = vst.msk [vmem:[#allocation3 + $0x40] sm:$0xff] %vm423_vm3, %v392_v35  ;;  %v1036_v36 = vld [vmem:[#allocation3 + $0x68] sm:$0xff] }
 0x20f   :  { %529 = vst.msk [vmem:[#allocation3 + $0x40] sm:$0xff] %vm520_vm4, %v489_v21  ;;  %2608 = vmatmul.msk.f32.gmra.mxu3 %vm1044_vm11, %v1036_v36  ;;  %v1203_v36 = vmul.f32 128.0, %v2661_v30 }
 0x213   :  { %v586_v37 = vpop.permute.xlu1 %585 }
 0x214   :  { %626 = vst.msk [vmem:[#allocation3 + $0x40] sm:$0xff] %vm617_vm6, %v586_v37  ;;  %v406_v38 = vpop.permute.xlu2 %405 }
 0x215   :  { %v501_v43 = vpop.permute.xlu0 %500  ;;  %439 = vst.msk [vmem:[#allocation3 + $0x78] sm:$0xff] %vm423_vm3, %v406_v38  ;;  %vm1628_vm3 = vcmask 195712  }
 0x216   :  { %535 = vst.msk [vmem:[#allocation3 + $0x70] sm:$0xff] %vm520_vm4, %v501_v43 }
 0x217   :  { %632 = vst.msk [vmem:[#allocation3 + $0x70] sm:$0xff] %vm617_vm6, %v598_v44 }
 0x21b   :  { %v695_v47 = vpop.permute.xlu1 %694 }
 0x21c   :  { %729 = vst.msk [vmem:[#allocation3 + $0x70] sm:$0xff] %vm714_vm7, %v695_v47  ;;  %v697_v33 = vpop.permute.xlu2 %696  ;;  %v3499_v57 = vpop.f32.mrf.mxu0 }
 0x21d   :  { %v683_v59 = vpop.permute.xlu0 %682  ;;  %v1172_v46 = vsel %vm1164_vm12, %v3499_v57, 0.0 }
 0x21e   :  { %723 = vst.msk [vmem:[#allocation3 + $0x40] sm:$0xff] %vm714_vm7, %v683_v59  ;;  %v1173_v7 = vadd.f32 %v1172_v46, %v1171_v6  ;;  %v1204_v59 = vsub.f32 1.0, %v1203_v36 }
 0x21f   :  { %821 = vst.msk [vmem:[#allocation3 + $0x40] sm:$0xff] %vm812_vm8, %v781_v28 }
 0x223   :  { %v878_v49 = vpop.permute.xlu1 %877 }
 0x224   :  { %918 = vst.msk [vmem:[#allocation3 + $0x40] sm:$0xff] %vm909_vm9, %v878_v49  ;;  %v989_v62 = vpop.permute.xlu2 %988 }
 0x225   :  { %v793_v50 = vpop.permute.xlu0 %792 }
 0x226   :  { %827 = vst.msk [vmem:[#allocation3 + $0x70] sm:$0xff] %vm812_vm8, %v793_v50 }
 0x227   :  { %924 = vst.msk [vmem:[#allocation3 + $0x70] sm:$0xff] %vm909_vm9, %v890_v32 }
 0x229   :  { %v3505_v60 = vpop.f32.mrf.mxu3 }
 0x22a   :  { %v1184_v21 = vsel %vm1164_vm12, %v3505_v60, 0.0 }
 0x22b   :  { %v987_v13 = vpop.permute.xlu1 %986 }
 0x22c   :  { %1021 = vst.msk [vmem:[#allocation3 + $0x70] sm:$0xff] %vm1006_vm10, %v987_v13  ;;  %v1205_v13 = vmul.f32 %v2661_v30, %v1204_v59 }
 0x22d   :  { %v975_v2 = vpop.permute.xlu0 %974 }
 0x22e   :  { %1015 = vst.msk [vmem:[#allocation3 + $0x40] sm:$0xff] %vm1006_vm10, %v975_v2 }
 0x233   :  { %v600_v15 = vpop.permute.xlu1 %599  ;;  %v1037_v26 = vld [vmem:[#allocation3 + $0x70] sm:$0xff] }
 0x234   :  { %2609 = vmatmul.msk.f32.gmra.mxu3 %vm1044_vm11, %v1037_v26  ;;  %v1206_v26 = vadd.f32 %v2661_v30, %v1205_v13 }
 0x235   :  { %v503_v23 = vpop.permute.xlu0 %502  ;;  %v1031_v41 = vld [vmem:[#allocation3 + $0x40] sm:$0xff] }
 0x236   :  { %536 = vst.msk [vmem:[#allocation3 + $0x78] sm:$0xff] %vm520_vm4, %v503_v23  ;;  %2603 = vmatmul.msk.f32.gmra.mxu0 %vm1044_vm11, %v1031_v41  ;;  %v3549_v41 = vsel %vm1207_vm13, %v2661_v30, %v1206_v26  ;;  %vm1725_vm4 = vcmask 261312  }
 0x237   :  { %633 = vst.msk [vmem:[#allocation3 + $0x78] sm:$0xff] %vm617_vm6, %v600_v15  ;;  %vm1919_vm6 = vcmask 392512  }
 0x238   :  { %730 = vst.msk [vmem:[#allocation3 + $0x78] sm:$0xff] %vm714_vm7, %v697_v33  ;;  %vm2017_vm7 = vcmask 458112  }
 0x23b   :  { %v892_v51 = vpop.permute.xlu1 %891 }
 0x23d   :  { %v795_v40 = vpop.permute.xlu0 %794 }
 0x23e   :  { %828 = vst.msk [vmem:[#allocation3 + $0x78] sm:$0xff] %vm812_vm8, %v795_v40  ;;  %vm2114_vm8 = vcmask 523712  }
 0x23f   :  { %925 = vst.msk [vmem:[#allocation3 + $0x78] sm:$0xff] %vm909_vm9, %v892_v51  ;;  %vm2211_vm9 = vcmask 589312  }
 0x240   :  { %1022 = vst.msk [vmem:[#allocation3 + $0x78] sm:$0xff] %vm1006_vm10, %v989_v62  ;;  %vm2253_vm10 = vcmask 588800  }
 0x243   :  { %v3503_v1 = vpop.f32.mrf.mxu0 }
 0x244   :  { %v1174_v45 = vsel %vm1164_vm12, %v3503_v1, 0.0 }
 0x245   :  { %v1175_v9 = vadd.f32 %v1174_v45, %v1173_v7 }
 0x247   :  { %v1038_v52 = vld [vmem:[#allocation3 + $0x78] sm:$0xff]  ;;  %v3519_v5 = vpop.f32.mrf.mxu3 }
 0x248   :  { %2610 = vmatmul.msk.f32.gmra.mxu3 %vm1044_vm11, %v1038_v52  ;;  %v1186_v44 = vsel %vm1164_vm12, %v3519_v5, 0.0 }
 0x264   :  { %v3507_v61 = vpop.f32.mrf.mxu0 }
 0x265   :  { %v1176_v8 = vsel %vm1164_vm12, %v3507_v61, 0.0 }
 0x266   :  { %v1177_v11 = vadd.f32 %v1176_v8, %v1175_v9 }
 0x271   :  { %v3526_v12 = vpop.f32.mrf.mxu3 }
 0x272   :  { %v1188_v28 = vsel %vm1164_vm12, %v3526_v12, 0.0 }
 0x289   :  { %v1135_v31 = vpop.f32.mrf.mxu0 }
 0x28a   :  { %v1178_v10 = vsel %vm1164_vm12, %v1135_v31, 0.0 }
 0x28b   :  { %v1179_v14 = vadd.f32 %v1178_v10, %v1177_v11 }
 0x292   :  { %v3533_v22 = vpop.f32.mrf.mxu3 }
 0x293   :  { %v1190_v32 = vsel %vm1164_vm12, %v3533_v22, 0.0 }
 0x2b3   :  { %v1138_v16 = vpop.f32.mrf.mxu0 }
 0x2b4   :  { %v1180_v56 = vsel %vm1164_vm12, %v1138_v16, 0.0 }
 0x2b5   :  { %v1181_v18 = vadd.f32 %v1180_v56, %v1179_v14 }
 0x2b7   :  { %v1183_v20 = vadd.f32 %v1182_v19, %v1181_v18  ;;  %v3539_v29 = vpop.f32.mrf.mxu3 }
 0x2b8   :  { %v1192_v37 = vsel %vm1164_vm12, %v3539_v29, 0.0 }
 0x2b9   :  { %v1185_v25 = vadd.f32 %v1184_v21, %v1183_v20 }
 0x2bb   :  { %v1187_v24 = vadd.f32 %v1186_v44, %v1185_v25 }
 0x2bd   :  { %v1189_v42 = vadd.f32 %v1188_v28, %v1187_v24 }
 0x2bf   :  { %v1191_v35 = vadd.f32 %v1190_v32, %v1189_v42 }
 0x2c1   :  { %v1193_v38 = vadd.f32 %v1192_v37, %v1191_v35 }
 0x2cb   :  { %v3545_v43 = vpop.f32.mrf.mxu3 }
 0x2cc   :  { %v1194_v47 = vsel %vm1164_vm12, %v3545_v43, 0.0 }
 0x2cd   :  { %v1195_v49 = vadd.f32 %v1194_v47, %v1193_v38 }
 0x2cf   :  { %v1196_v50 = vrot.slane %v1195_v49, 4 }
 0x2d1   :  { %v1197_v2 = vadd.f32 %v1196_v50, %v1195_v49 }
 0x2d3   :  { %v1198_v15 = vrot.slane %v1197_v2, 2 }
 0x2d5   :  { %v1199_v33 = vadd.f32 %v1198_v15, %v1197_v2 }
 0x2d7   :  { %v1200_v23 = vrot.slane %v1199_v33, 1 }
 0x2d9   :  { %v1201_v51 = vadd.f32 %v1200_v23, %v1199_v33 }
 0x2db   :  { %v1209_v40 = vmul.f32 %v3549_v41, %v1201_v51 }
 0x2dd   :  { %v3553_v62 = vsub.f32 %v3491_v53, %v1209_v40  ;;  %v3556_v52 = vsub.f32 %v3493_v39, %v1209_v40  ;;  %v3559_v48 = vsub.f32 %v3495_v54, %v1209_v40  ;;  %v3562_v63 = vsub.f32 %v3497_v55, %v1209_v40 }
 0x2de   :  { %v3569_v34 = vsub.f32 %v3499_v57, %v1209_v40  ;;  %v3574_v39 = vsub.f32 %v3503_v1, %v1209_v40  ;;  %v3581_v6 = vsub.f32 %v3507_v61, %v1209_v40  ;;  %v3586_v8 = vsub.f32 %v1135_v31, %v1209_v40 }
 0x2df   :  { %v1226_v0 = vmul.f32 %v3553_v62, %v3553_v62  ;;  %v1227_v4 = vmul.f32 %v3556_v52, %v3556_v52  ;;  %v1228_v53 = vmul.f32 %v3559_v48, %v3559_v48  ;;  %v1229_v54 = vmul.f32 %v3562_v63, %v3562_v63 }
 0x2e0   :  { %v1230_v57 = vmul.f32 %v3569_v34, %v3569_v34  ;;  %v1231_v1 = vmul.f32 %v3574_v39, %v3574_v39  ;;  %v3591_v11 = vsub.f32 %v1138_v16, %v1209_v40  ;;  %v1232_v61 = vmul.f32 %v3581_v6, %v3581_v6 }
 0x2e1   :  { %v1242_v55 = vsel %vm1164_vm12, %v1226_v0, 0.0  ;;  %v1243_v3 = vsel %vm1164_vm12, %v1227_v4, 0.0  ;;  %v1245_v45 = vsel %vm1164_vm12, %v1228_v53, 0.0  ;;  %v1247_v9 = vsel %vm1164_vm12, %v1229_v54, 0.0 }
 0x2e2   :  { %v1244_v46 = vadd.f32 %v1243_v3, %v1242_v55  ;;  %v1249_v14 = vsel %vm1164_vm12, %v1230_v57, 0.0  ;;  %v3597_v18 = vsub.f32 %v3501_v58, %v1209_v40  ;;  %v1233_v31 = vmul.f32 %v3586_v8, %v3586_v8 }
 0x2e3   :  { %v1251_v19 = vsel %vm1164_vm12, %v1231_v1, 0.0  ;;  %v3603_v21 = vsub.f32 %v3505_v60, %v1209_v40  ;;  %v1234_v16 = vmul.f32 %v3591_v11, %v3591_v11  ;;  %v1253_v25 = vsel %vm1164_vm12, %v1232_v61, 0.0 }
 0x2e4   :  { %v1246_v7 = vadd.f32 %v1245_v45, %v1244_v46  ;;  %v3609_v24 = vsub.f32 %v3519_v5, %v1209_v40  ;;  %v1235_v58 = vmul.f32 %v3597_v18, %v3597_v18  ;;  %v1255_v27 = vsel %vm1164_vm12, %v1233_v31, 0.0  ;;  %v1451_v31 = vld [vmem:[#allocation4 + $0x1] sm:$0xff] }
 0x2e5   :  { %v3615_v42 = vsub.f32 %v3526_v12, %v1209_v40  ;;  %v1236_v60 = vmul.f32 %v3603_v21, %v3603_v21  ;;  %v1257_v30 = vsel %vm1164_vm12, %v1234_v16, 0.0  ;;  %v3621_v35 = vsub.f32 %v3533_v22, %v1209_v40  ;;  %1483 = vrot.lane.b32.xlu0 %v1451_v31, %s2668_s22 }
 0x2e6   :  { %v1248_v10 = vadd.f32 %v1247_v9, %v1246_v7  ;;  %v1237_v5 = vmul.f32 %v3609_v24, %v3609_v24  ;;  %v1259_v36 = vsel %vm1164_vm12, %v1235_v58, 0.0  ;;  %v3627_v38 = vsub.f32 %v3539_v29, %v1209_v40  ;;  %v1548_v7 = vld [vmem:[#allocation4 + $0x2] sm:$0xff] }
 0x2e7   :  { %v1238_v12 = vmul.f32 %v3615_v42, %v3615_v42  ;;  %v1261_v47 = vsel %vm1164_vm12, %v1236_v60, 0.0  ;;  %v3633_v49 = vsub.f32 %v3545_v43, %v1209_v40  ;;  %v1239_v22 = vmul.f32 %v3621_v35, %v3621_v35  ;;  %1580 = vrot.lane.b32.xlu1 %v1548_v7, %s2672_s24 }
 0x2e8   :  { %v1250_v56 = vadd.f32 %v1249_v14, %v1248_v10  ;;  %v1263_v50 = vsel %vm1164_vm12, %v1237_v5, 0.0  ;;  %v1240_v2 = vmul.f32 %v3627_v38, %v3627_v38  ;;  %v1459_v14 = vld [vmem:[#allocation4 + $0xa1] sm:$0xff] }
 0x2e9   :  { %v1265_v29 = vsel %vm1164_vm12, %v1238_v12, 0.0  ;;  %v1241_v26 = vmul.f32 %v3633_v49, %v3633_v49  ;;  %v1267_v33 = vsel %vm1164_vm12, %v1239_v22, 0.0  ;;  %1499 = vrot.lane.b32.xlu2 %v1459_v14, %s2668_s22 }
 0x2ea   :  { %v1252_v20 = vadd.f32 %v1251_v19, %v1250_v56  ;;  %v1269_v43 = vsel %vm1164_vm12, %v1240_v2, 0.0  ;;  %v1556_v56 = vld [vmem:[#allocation4 + $0xa2] sm:$0xff] }
 0x2eb   :  { %v1271_v40 = vsel %vm1164_vm12, %v1241_v26, 0.0 }
 0x2ec   :  { %v1254_v44 = vadd.f32 %v1253_v25, %v1252_v20 }
 0x2ee   :  { %v1256_v28 = vadd.f32 %v1255_v27, %v1254_v44  ;;  %v2656_v44 = vld [vmem:[%s4366_s2] ss:$0 sm:$0xff]  ;;  %s2677_s2 = smov 56  }
 0x2ef   :  { %1596 = vrot.lane.b32.xlu1 %v1556_v56, %s2672_s24 }
 0x2f0   :  { %v1258_v32 = vadd.f32 %v1257_v30, %v1256_v28 }
 0x2f2   :  { %v1260_v37 = vadd.f32 %v1259_v36, %v1258_v32  ;;  %v2657_v36 = vld [vmem:[%s4367_s3] ss:$0 sm:$0xff]  ;;  %s2678_s3 = smov 48  }
 0x2f4   :  { %v1262_v59 = vadd.f32 %v1261_v47, %v1260_v37 }
 0x2f6   :  { %v1264_v13 = vadd.f32 %v1263_v50, %v1262_v59 }
 0x2f8   :  { %v1266_v15 = vadd.f32 %v1265_v29, %v1264_v13 }
 0x2fa   :  { %v1268_v23 = vadd.f32 %v1267_v33, %v1266_v15 }
 0x2fc   :  { %v1270_v51 = vadd.f32 %v1269_v43, %v1268_v23 }
 0x2fe   :  { %v1272_v0 = vadd.f32 %v1271_v40, %v1270_v51 }
 0x300   :  { %v1273_v4 = vrot.slane %v1272_v0, 4 }
 0x302   :  { %v1274_v53 = vadd.f32 %v1273_v4, %v1272_v0 }
 0x304   :  { %v1275_v54 = vrot.slane %v1274_v53, 2 }
 0x306   :  { %v1276_v55 = vadd.f32 %v1275_v54, %v1274_v53 }
 0x308   :  { %v1277_v3 = vrot.slane %v1276_v55, 1 }
 0x30a   :  { %v1278_v46 = vadd.f32 %v1277_v3, %v1276_v55 }
 0x30c   :  { %v1279_v57 = vmul.f32 %v1278_v46, %v3549_v41 }
 0x30e   :  { %v1280_v45 = vadd.f32 1e-05, %v1279_v57 }
 0x310   :  { %2662 = vrsqrt.f32 %v1280_v45  ;;  %vm1287_vm0 = vweird.f32 %v1280_v45 }
 0x316   :  { %v2663_v1 = vpop.eup %2662 }
 0x317   :  { %v1282_v9 = vmul.f32 %v2663_v1, %v1280_v45  ;;  %vm1288_vm15 = vweird.f32 %v2663_v1 }
 0x318   :  { %vm1289_vm1 = vmor %vm1287_vm0, %vm1288_vm15 }
 0x319   :  { %v1283_v10 = vmul.f32 %v2663_v1, %v1282_v9 }
 0x31b   :  { %v1284_v61 = vmul.f32 0.5, %v1283_v10 }
 0x31d   :  { %v1285_v19 = vsub.f32 1.5, %v1284_v61 }
 0x31f   :  { %v1286_v20 = vmul.f32 %v2663_v1, %v1285_v19 }
 0x321   :  { %v1290_v16 = vsel %vm1289_vm1, %v2663_v1, %v1286_v20 }
 0x322   :  { %v1293_v17 = vmul.f32 %v1290_v16, %v3559_v48  ;;  %v1294_v25 = vmul.f32 %v1290_v16, %v3562_v63  ;;  %v1300_v58 = vmul.f32 %v1290_v16, %v3597_v18  ;;  %v1301_v27 = vmul.f32 %v1290_v16, %v3603_v21 }
 0x323   :  { %v1302_v28 = vmul.f32 %v1290_v16, %v3609_v24  ;;  %v1303_v60 = vmul.f32 %v1290_v16, %v3615_v42  ;;  %v1304_v30 = vmul.f32 %v1290_v16, %v3621_v35  ;;  %v1305_v32 = vmul.f32 %v1290_v16, %v3627_v38 }
 0x324   :  { %v1306_v48 = vmul.f32 %v1290_v16, %v3633_v49  ;;  %v1312_v5 = vmul.f32 %v2656_v44, %v1293_v17  ;;  %v1313_v63 = vmul.f32 %v2656_v44, %v1294_v25  ;;  %v1295_v18 = vmul.f32 %v1290_v16, %v3569_v34 }
 0x325   :  { %v1296_v21 = vmul.f32 %v1290_v16, %v3574_v39  ;;  %v1320_v37 = vmul.f32 %v2656_v44, %v1301_v27  ;;  %v1321_v24 = vmul.f32 %v2656_v44, %v1302_v28  ;;  %v1297_v42 = vmul.f32 %v1290_v16, %v3581_v6 }
 0x326   :  { %v1322_v12 = vmul.f32 %v2656_v44, %v1303_v60  ;;  %v1323_v35 = vmul.f32 %v2656_v44, %v1304_v30  ;;  %v1324_v47 = vmul.f32 %v2656_v44, %v1305_v32  ;;  %v1298_v38 = vmul.f32 %v1290_v16, %v3586_v8 }
 0x327   :  { %v1325_v59 = vmul.f32 %v2656_v44, %v1306_v48  ;;  %v1331_v49 = vadd.f32 %v2657_v36, %v1312_v5  ;;  %v1332_v22 = vadd.f32 %v2657_v36, %v1313_v63  ;;  %v1292_v50 = vmul.f32 %v1290_v16, %v3556_v52 }
 0x328   :  { %v1299_v13 = vmul.f32 %v1290_v16, %v3591_v11  ;;  %v1314_v2 = vmul.f32 %v2656_v44, %v1295_v18  ;;  %v1315_v34 = vmul.f32 %v2656_v44, %v1296_v21  ;;  %v1339_v29 = vadd.f32 %v2657_v36, %v1320_v37 }
 0x329   :  { %v1340_v39 = vadd.f32 %v2657_v36, %v1321_v24  ;;  %v1341_v15 = vadd.f32 %v2657_v36, %v1322_v12  ;;  %v1342_v26 = vadd.f32 %v2657_v36, %v1323_v35  ;;  %v1316_v33 = vmul.f32 %v2656_v44, %v1297_v42 }
 0x32a   :  { %v1343_v6 = vadd.f32 %v2657_v36, %v1324_v47  ;;  %v1347_v23 = vmax.f32 %v1331_v49, 0.0  ;;  %v1348_v43 = vmax.f32 %v1332_v22, 0.0  ;;  %v1291_v51 = vmul.f32 %v1290_v16, %v3553_v62 }
 0x32b   :  { %v1317_v8 = vmul.f32 %v2656_v44, %v1298_v38  ;;  %v1344_v40 = vadd.f32 %v2657_v36, %v1325_v59  ;;  %v1318_v0 = vmul.f32 %v2656_v44, %v1299_v13  ;;  %v1333_v4 = vadd.f32 %v2657_v36, %v1314_v2 }
 0x32c   :  { %v1355_v53 = vmax.f32 %v1339_v29, 0.0  ;;  %v1356_v52 = vmax.f32 %v1340_v39, 0.0  ;;  %1405 = vst.msk [vmem:[#allocation4 + $0x31] sm:$0xff] %vm1164_vm12, %v1347_v23  ;;  %v1319_v11 = vmul.f32 %v2656_v44, %v1300_v58  ;;  %v1334_v54 = vadd.f32 %v2657_v36, %v1315_v34  ;;  %v1427_v39 = vld [vmem:[#allocation4 + $0xa0] sm:$0xff] }
 0x32d   :  { %v1357_v55 = vmax.f32 %v1341_v15, 0.0  ;;  %v1358_v3 = vmax.f32 %v1342_v26, 0.0  ;;  %1406 = vst.msk [vmem:[#allocation4 + $0x41] sm:$0xff] %vm1164_vm12, %v1348_v43  ;;  %v1311_v46 = vmul.f32 %v2656_v44, %v1292_v50  ;;  %v1335_v57 = vadd.f32 %v2657_v36, %v1316_v33 }
 0x32e   :  { %v1359_v45 = vmax.f32 %v1343_v6, 0.0  ;;  %1413 = vst.msk [vmem:[#allocation4 + $0xd1] sm:$0xff] %vm1164_vm12, %v1355_v53  ;;  %v1310_v62 = vmul.f32 %v2656_v44, %v1291_v51  ;;  %v1336_v7 = vadd.f32 %v2657_v36, %v1317_v8  ;;  %v1360_v1 = vmax.f32 %v1344_v40, 0.0  ;;  %v1419_v51 = vld [vmem:[#allocation4] sm:$0xff] }
 0x32f   :  { %1414 = vst.msk [vmem:[#allocation4 + $0xe1] sm:$0xff] %vm1164_vm12, %v1356_v52  ;;  %v1337_v9 = vadd.f32 %v2657_v36, %v1318_v0  ;;  %v1349_v10 = vmax.f32 %v1333_v4, 0.0  ;;  %v1338_v61 = vadd.f32 %v2657_v36, %v1319_v11  ;;  %v1350_v14 = vmax.f32 %v1334_v54, 0.0 }
 0x330   :  { %1415 = vst.msk [vmem:[#allocation4 + $0xf1] sm:$0xff] %vm1164_vm12, %v1357_v55  ;;  %v1351_v56 = vmax.f32 %v1335_v57, 0.0  ;;  %v1330_v31 = vadd.f32 %v2657_v36, %v1311_v46  ;;  %v1352_v19 = vmax.f32 %v1336_v7, 0.0  ;;  %v1329_v16 = vadd.f32 %v2657_v36, %v1310_v62  ;;  %v2252_v46 = vld [vmem:[%s4368_s4 + $0x40] sm:$0xff]  ;;  %v2251_v57 = vld [vmem:[%s4368_s4 + $0x38] sm:$0xff]  ;;  %v2250_v62 = vld [vmem:[%s4368_s4 + $0x30] sm:$0xff] }
 0x331   :  { %1416 = vst.msk [vmem:[#allocation4 + $0x101] sm:$0xff] %vm1164_vm12, %v1358_v3  ;;  %v1353_v17 = vmax.f32 %v1337_v9, 0.0  ;;  %v1354_v25 = vmax.f32 %v1338_v61, 0.0  ;;  %2309 = vmatpush.msra.mxu1 %v2252_v46  ;;  %2632 = vmatpush.msra.mxu2 %v2252_v46  ;;  %v2249_v7 = vld [vmem:[%s4368_s4 + $0x28] sm:$0xff]  ;;  %v2247_v61 = vld [vmem:[%s4368_s4 + $0x18] sm:$0xff] }
 0x332   :  { %1417 = vst.msk [vmem:[#allocation4 + $0x111] sm:$0xff] %vm1164_vm12, %v1359_v45  ;;  %v1346_v44 = vmax.f32 %v1330_v31, 0.0  ;;  %v1345_v58 = vmax.f32 %v1329_v16, 0.0  ;;  %v2245_v31 = vld [vmem:[%s4368_s4 + $0x8] sm:$0xff]  ;;  %v2244_v16 = vld [vmem:[%s4368_s4] sm:$0xff] }
 0x333   :  { %1418 = vst.msk [vmem:[#allocation4 + $0x121] sm:$0xff] %vm1164_vm12, %v1360_v1  ;;  %v3721_v20 = vld [vmem:[#allocation4 + $0x31] sm:$0xff]  ;;  %2310 = vmatpush.msra.mxu1 %v2251_v57  ;;  %2633 = vmatpush.msra.mxu2 %v2251_v57 }
 0x334   :  { %1407 = vst.msk [vmem:[#allocation4 + $0x51] sm:$0xff] %vm1164_vm12, %v1349_v10  ;;  %1489 = vrot.lane.b32.xlu0 %v3721_v20, %s2668_s22  ;;  %v3735_v28 = vld [vmem:[#allocation4 + $0x30] sm:$0xff]  ;;  %v3741_v32 = vld [vmem:[#allocation4 + $0x40] sm:$0xff] }
 0x335   :  { %1408 = vst.msk [vmem:[#allocation4 + $0x61] sm:$0xff] %vm1164_vm12, %v1350_v14  ;;  %v3732_v27 = vld [vmem:[#allocation4 + $0xd0] sm:$0xff]  ;;  %v3791_v49 = vld [vmem:[#allocation4 + $0x41] sm:$0xff]  ;;  %2311 = vmatpush.msra.mxu1 %v2250_v62  ;;  %2634 = vmatpush.msra.mxu2 %v2250_v62 }
 0x336   :  { %1409 = vst.msk [vmem:[#allocation4 + $0x71] sm:$0xff] %vm1164_vm12, %v1351_v56  ;;  %v3767_v42 = vld [vmem:[#allocation4 + $0xe0] sm:$0xff]  ;;  %v3799_v50 = vld [vmem:[#allocation4 + $0xd1] sm:$0xff] }
 0x337   :  { %1410 = vst.msk [vmem:[#allocation4 + $0x81] sm:$0xff] %vm1164_vm12, %v1352_v19  ;;  %v3770_v35 = vld [vmem:[#allocation4 + $0xf0] sm:$0xff]  ;;  %v3795_v22 = vld [vmem:[#allocation4 + $0xe1] sm:$0xff]  ;;  %2312 = vmatpush.msra.mxu1 %v2249_v7  ;;  %2635 = vmatpush.msra.mxu2 %v2249_v7 }
 0x338   :  { %1411 = vst.msk [vmem:[#allocation4 + $0xb1] sm:$0xff] %vm1164_vm12, %v1353_v17  ;;  %v3775_v47 = vld [vmem:[#allocation4 + $0x100] sm:$0xff]  ;;  %v2132_v33 = vld [vmem:[#allocation4 + $0x32] sm:$0xff] }
 0x339   :  { %1412 = vst.msk [vmem:[#allocation4 + $0xc1] sm:$0xff] %vm1164_vm12, %v1354_v25  ;;  %v3779_v38 = vld [vmem:[#allocation4 + $0x110] sm:$0xff]  ;;  %v3852_v4 = vld [vmem:[#allocation4 + $0x42] sm:$0xff] }
 0x33a   :  { %1404 = vst.msk [vmem:[#allocation4 + $0x21] sm:$0xff] %vm1164_vm12, %v1346_v44  ;;  %v3862_v11 = vld [vmem:[#allocation4 + $0xd2] sm:$0xff]  ;;  %v2248_v10 = vld [vmem:[%s4368_s4 + $0x20] sm:$0xff] }
 0x33b   :  { %1403 = vst.msk [vmem:[#allocation4 + $0x11] sm:$0xff] %vm1164_vm12, %v1345_v58  ;;  %v3737_v60 = vld [vmem:[#allocation4 + $0x50] sm:$0xff]  ;;  %2313 = vmatpush.msra.mxu1 %v2248_v10  ;;  %2636 = vmatpush.msra.mxu2 %v2248_v10 }
 0x33c   :  { %v3739_v30 = vld [vmem:[#allocation4 + $0x61] sm:$0xff]  ;;  %1440 = vst.msk [vmem:[#allocation5 + $0x28] sm:$0xff] %vm1164_vm12, %v3737_v60  ;;  %v3785_v59 = vld [vmem:[#allocation4 + $0x51] sm:$0xff] }
 0x33d   :  { %1495 = vrot.lane.b32.xlu0 %v3739_v30, %s2668_s22  ;;  %1446 = vst.msk [vmem:[#allocation5 + $0x58] sm:$0xff] %vm1164_vm12, %v3732_v27  ;;  %v3749_v48 = vld [vmem:[#allocation4 + $0x60] sm:$0xff]  ;;  %v3753_v5 = vld [vmem:[#allocation4 + $0x70] sm:$0xff]  ;;  %2314 = vmatpush.msra.mxu1 %v2247_v61 }
 0x33e   :  { %1438 = vst.msk [vmem:[#allocation5 + $0x18] sm:$0xff] %vm1164_vm12, %v3735_v28  ;;  %v3803_v13 = vld [vmem:[#allocation4 + $0x71] sm:$0xff]  ;;  %2637 = vmatpush.msra.mxu2 %v2247_v61 }
 0x33f   :  { %1439 = vst.msk [vmem:[#allocation5 + $0x20] sm:$0xff] %vm1164_vm12, %v3741_v32  ;;  %v1653_v18 = vld [vmem:[#allocation4 + $0xb0] sm:$0xff] }
 0x340   :  { %1441 = vst.msk [vmem:[#allocation5 + $0x30] sm:$0xff] %vm1164_vm12, %v3749_v48  ;;  %v3762_v24 = vld [vmem:[#allocation4 + $0xc0] sm:$0xff]  ;;  %v1460_v12 = vld [vmem:[#allocation4 + $0xb1] sm:$0xff] }
 0x341   :  { %v1453_v63 = vld [vmem:[#allocation4 + $0x21] sm:$0xff]  ;;  %1442 = vst.msk [vmem:[#allocation5 + $0x38] sm:$0xff] %vm1164_vm12, %v3753_v5  ;;  %v1847_v26 = vld [vmem:[#allocation4 + $0xb2] sm:$0xff] }
 0x342   :  { %v1937_v36 = vld [vmem:[#allocation4 + $0x20] sm:$0xff]  ;;  %1487 = vrot.lane.b32.xlu2 %v1453_v63, %s2668_s22  ;;  %v1452_v21 = vld [vmem:[#allocation4 + $0x11] sm:$0xff]  ;;  %1444 = vst.msk [vmem:[#allocation5 + $0x48] sm:$0xff] %vm1164_vm12, %v1653_v18 }
 0x343   :  { %v1645_v37 = vld [vmem:[#allocation4 + $0x10] sm:$0xff]  ;;  %1437 = vst.msk [vmem:[#allocation5 + $0x10] sm:$0xff] %vm1164_vm12, %v1937_v36  ;;  %1485 = vrot.lane.b32.xlu1 %v1452_v21, %s2668_s22  ;;  %v1461_v2 = vld [vmem:[#allocation4 + $0xc1] sm:$0xff]  ;;  %v1500_v15 = vpop.permute.xlu2 %1499 }
 0x344   :  { %1436 = vst.msk [vmem:[#allocation5 + $0x8] sm:$0xff] %vm1164_vm12, %v1645_v37  ;;  %v1839_v34 = vld [vmem:[#allocation4 + $0x12] sm:$0xff]  ;;  %v2131_v29 = vld [vmem:[#allocation4 + $0x22] sm:$0xff] }
 0x345   :  { %1501 = vrot.lane.b32.xlu0 %v1460_v12, %s2668_s22  ;;  %1445 = vst.msk [vmem:[#allocation5 + $0x50] sm:$0xff] %vm1164_vm12, %v3762_v24  ;;  %v2139_v23 = vld [vmem:[#allocation4 + $0xc2] sm:$0xff]  ;;  %v2246_v56 = vld [vmem:[%s4368_s4 + $0x10] sm:$0xff] }
 0x346   :  { %1447 = vst.msk [vmem:[#allocation5 + $0x60] sm:$0xff] %vm1164_vm12, %v3767_v42  ;;  %2315 = vmatpush.msra.mxu1 %v2246_v56  ;;  %2638 = vmatpush.msra.mxu2 %v2246_v56  ;;  %v1943_v56 = vld [vmem:[#allocation4 + $0x80] sm:$0xff] }
 0x347   :  { %1448 = vst.msk [vmem:[#allocation5 + $0x68] sm:$0xff] %vm1164_vm12, %v3770_v35 }
 0x348   :  { %1449 = vst.msk [vmem:[#allocation5 + $0x70] sm:$0xff] %vm1164_vm12, %v3775_v47  ;;  %2316 = vmatpush.msra.mxu1 %v2245_v31  ;;  %2639 = vmatpush.msra.mxu2 %v2245_v31  ;;  %v2040_v31 = vld [vmem:[#allocation4 + $0x81] sm:$0xff] }
 0x349   :  { %1450 = vst.msk [vmem:[#allocation5 + $0x78] sm:$0xff] %vm1164_vm12, %v3779_v38 }
 0x34a   :  { %1493 = vrot.lane.b32.xlu2 %v3785_v59, %s2668_s22  ;;  %1443 = vst.msk [vmem:[#allocation5 + $0x40] sm:$0xff] %vm1164_vm12, %v1427_v39  ;;  %2317 = vmatpush.msra.mxu1 %v2244_v16  ;;  %v2045_v39 = vld [vmem:[#allocation4 + $0xf1] sm:$0xff] }
 0x34b   :  { %1491 = vrot.lane.b32.xlu1 %v3791_v49, %s2668_s22  ;;  %1540 = vst.msk [vmem:[#allocation5 + $0x40] sm:$0xff] %vm1531_vm2, %v1500_v15  ;;  %2640 = vmatpush.msra.mxu2 %v2244_v16  ;;  %v2142_v15 = vld [vmem:[#allocation4 + $0xf2] sm:$0xff] }
 0x34c   :  { %1435 = vst.msk [vmem:[#allocation5] sm:$0xff] %vm1164_vm12, %v1419_v51 }
 0x34d   :  { %1507 = vrot.lane.b32.xlu0 %v3795_v22, %s2668_s22 }
 0x352   :  { %1505 = vrot.lane.b32.xlu2 %v3799_v50, %s2668_s22 }
 0x353   :  { %1497 = vrot.lane.b32.xlu1 %v3803_v13, %s2668_s22 }
 0x355   :  { %1774 = vrot.lane.b32.xlu0 %v1452_v21, %s2674_s26 }
 0x357   :  { %v1484_v8 = vpop.permute.xlu0 %1483 }
 0x358   :  { %1532 = vst.msk [vmem:[#allocation5] sm:$0xff] %vm1531_vm2, %v1484_v8 }
 0x359   :  { %v1581_v6 = vpop.permute.xlu1 %1580 }
 0x35a   :  { %1677 = vrot.lane.b32.xlu2 %v1645_v37, %s2673_s25  ;;  %1629 = vst.msk [vmem:[#allocation5] sm:$0xff] %vm1628_vm3, %v1581_v6 }
 0x35b   :  { %1503 = vrot.lane.b32.xlu1 %v1461_v2, %s2668_s22 }
 0x35d   :  { %2066 = vrot.lane.b32.xlu0 %v1453_v63, %s2677_s2 }
 0x361   :  { %v1597_v43 = vpop.permute.xlu1 %1596 }
 0x362   :  { %1969 = vrot.lane.b32.xlu2 %v1937_v36, %s2678_s3  ;;  %1637 = vst.msk [vmem:[#allocation5 + $0x40] sm:$0xff] %vm1628_vm3, %v1597_v43 }
 0x363   :  { %1871 = vrot.lane.b32.xlu1 %v1839_v34, %s2679_s19 }
 0x365   :  { %1679 = vrot.lane.b32.xlu0 %v1937_v36, %s2673_s25  ;;  %v2141_v36 = vld [vmem:[#allocation4 + $0xe2] sm:$0xff] }
 0x36a   :  { %1582 = vrot.lane.b32.xlu2 %v1839_v34, %s2672_s24 }
 0x36b   :  { %2163 = vrot.lane.b32.xlu1 %v2131_v29, %s2680_s20 }
 0x36d   :  { %1693 = vrot.lane.b32.xlu0 %v1653_v18, %s2673_s25 }
 0x372   :  { %1776 = vrot.lane.b32.xlu2 %v1453_v63, %s2674_s26 }
 0x373   :  { %1873 = vrot.lane.b32.xlu1 %v2131_v29, %s2679_s19 }
 0x375   :  { %1971 = vrot.lane.b32.xlu0 %v3735_v28, %s2678_s3 }
 0x37a   :  { %1790 = vrot.lane.b32.xlu2 %v1460_v12, %s2674_s26 }
 0x37b   :  { %1887 = vrot.lane.b32.xlu1 %v1847_v26, %s2679_s19 }
 0x37d   :  { %1985 = vrot.lane.b32.xlu0 %v3762_v24, %s2678_s3 }
 0x382   :  { %2068 = vrot.lane.b32.xlu2 %v3721_v20, %s2677_s2 }
 0x383   :  { %2165 = vrot.lane.b32.xlu1 %v2132_v33, %s2680_s20 }
 0x385   :  { %1584 = vrot.lane.b32.xlu0 %v2131_v29, %s2672_s24 }
 0x38a   :  { %2082 = vrot.lane.b32.xlu2 %v1461_v2, %s2677_s2 }
 0x38b   :  { %2179 = vrot.lane.b32.xlu1 %v2139_v23, %s2680_s20 }
 0x38d   :  { %1598 = vrot.lane.b32.xlu0 %v1847_v26, %s2672_s24 }
 0x392   :  { %1681 = vrot.lane.b32.xlu2 %v3735_v28, %s2673_s25 }
 0x393   :  { %1778 = vrot.lane.b32.xlu1 %v3721_v20, %s2674_s26 }
 0x395   :  { %1875 = vrot.lane.b32.xlu0 %v2132_v33, %s2679_s19 }
 0x39a   :  { %1695 = vrot.lane.b32.xlu2 %v3762_v24, %s2673_s25 }
 0x39b   :  { %1792 = vrot.lane.b32.xlu1 %v1461_v2, %s2674_s26  ;;  %v3963_v2 = vld [vmem:[#allocation4 + $0x62] sm:$0xff] }
 0x39c   :  { %v1488_v40 = vpop.permute.xlu2 %1487 }
 0x39d   :  { %1534 = vst.msk [vmem:[#allocation5 + $0x10] sm:$0xff] %vm1531_vm2, %v1488_v40  ;;  %1889 = vrot.lane.b32.xlu0 %v2139_v23, %s2679_s19 }
 0x3a2   :  { %1973 = vrot.lane.b32.xlu2 %v3741_v32, %s2678_s3 }
 0x3a3   :  { %2070 = vrot.lane.b32.xlu1 %v3791_v49, %s2677_s2 }
 0x3a4   :  { %v1494_v0 = vpop.permute.xlu2 %1493 }
 0x3a5   :  { %1537 = vst.msk [vmem:[#allocation5 + $0x28] sm:$0xff] %vm1531_vm2, %v1494_v0  ;;  %2167 = vrot.lane.b32.xlu0 %v3852_v4, %s2680_s20 }
 0x3a6   :  { %v1490_v53 = vpop.permute.xlu0 %1489 }
 0x3a7   :  { %1535 = vst.msk [vmem:[#allocation5 + $0x18] sm:$0xff] %vm1531_vm2, %v1490_v53 }
 0x3aa   :  { %1987 = vrot.lane.b32.xlu2 %v3732_v27, %s2678_s3 }
 0x3ab   :  { %2084 = vrot.lane.b32.xlu1 %v3799_v50, %s2677_s2 }
 0x3ac   :  { %v1506_v52 = vpop.permute.xlu2 %1505 }
 0x3ad   :  { %1543 = vst.msk [vmem:[#allocation5 + $0x58] sm:$0xff] %vm1531_vm2, %v1506_v52  ;;  %2181 = vrot.lane.b32.xlu0 %v3862_v11, %s2680_s20 }
 0x3af   :  { %v1496_v54 = vpop.permute.xlu0 %1495 }
 0x3b0   :  { %1538 = vst.msk [vmem:[#allocation5 + $0x30] sm:$0xff] %vm1531_vm2, %v1496_v54 }
 0x3b2   :  { %1586 = vrot.lane.b32.xlu2 %v2132_v33, %s2672_s24 }
 0x3b3   :  { %1683 = vrot.lane.b32.xlu1 %v3741_v32, %s2673_s25 }
 0x3b4   :  { %v1678_v55 = vpop.permute.xlu2 %1677 }
 0x3b5   :  { %1726 = vst.msk [vmem:[#allocation5] sm:$0xff] %vm1725_vm4, %v1678_v55  ;;  %v1486_v3 = vpop.permute.xlu1 %1485  ;;  %1780 = vrot.lane.b32.xlu0 %v3791_v49, %s2674_s26  ;;  %v4013_v55 = vld [vmem:[#allocation4 + $0x102] sm:$0xff] }
 0x3b6   :  { %1533 = vst.msk [vmem:[#allocation5 + $0x8] sm:$0xff] %vm1531_vm2, %v1486_v3 }
 0x3b7   :  { %v1502_v45 = vpop.permute.xlu0 %1501 }
 0x3b8   :  { %1541 = vst.msk [vmem:[#allocation5 + $0x48] sm:$0xff] %vm1531_vm2, %v1502_v45 }
 0x3ba   :  { %1600 = vrot.lane.b32.xlu2 %v2139_v23, %s2672_s24 }
 0x3bb   :  { %1697 = vrot.lane.b32.xlu1 %v3732_v27, %s2673_s25  ;;  %v2134_v27 = vld [vmem:[#allocation4 + $0x52] sm:$0xff] }
 0x3bc   :  { %v1970_v1 = vpop.permute.xlu2 %1969 }
 0x3bd   :  { %v1492_v9 = vpop.permute.xlu1 %1491  ;;  %1794 = vrot.lane.b32.xlu0 %v3799_v50, %s2674_s26 }
 0x3be   :  { %1536 = vst.msk [vmem:[#allocation5 + $0x20] sm:$0xff] %vm1531_vm2, %v1492_v9 }
 0x3bf   :  { %v1508_v14 = vpop.permute.xlu0 %1507 }
 0x3c0   :  { %1544 = vst.msk [vmem:[#allocation5 + $0x60] sm:$0xff] %vm1531_vm2, %v1508_v14 }
 0x3c2   :  { %1877 = vrot.lane.b32.xlu2 %v3852_v4, %s2679_s19 }
 0x3c3   :  { %1975 = vrot.lane.b32.xlu1 %v3737_v60, %s2678_s3 }
 0x3c4   :  { %v1583_v19 = vpop.permute.xlu2 %1582 }
 0x3c5   :  { %1630 = vst.msk [vmem:[#allocation5 + $0x8] sm:$0xff] %vm1628_vm3, %v1583_v19  ;;  %v1498_v20 = vpop.permute.xlu1 %1497  ;;  %2072 = vrot.lane.b32.xlu0 %v3785_v59, %s2677_s2  ;;  %v2137_v19 = vld [vmem:[#allocation4 + $0x82] sm:$0xff] }
 0x3c6   :  { %1539 = vst.msk [vmem:[#allocation5 + $0x38] sm:$0xff] %vm1531_vm2, %v1498_v20 }
 0x3c7   :  { %v1775_v17 = vpop.permute.xlu0 %1774 }
 0x3c8   :  { %1823 = vst.msk [vmem:[#allocation5] sm:$0xff] %vm1822_vm5, %v1775_v17 }
 0x3ca   :  { %1891 = vrot.lane.b32.xlu2 %v3862_v11, %s2679_s19 }
 0x3cb   :  { %1989 = vrot.lane.b32.xlu1 %v3767_v42, %s2678_s3 }
 0x3cc   :  { %v1777_v25 = vpop.permute.xlu2 %1776 }
 0x3cd   :  { %v1504_v44 = vpop.permute.xlu1 %1503  ;;  %2086 = vrot.lane.b32.xlu0 %v3795_v22, %s2677_s2 }
 0x3ce   :  { %1542 = vst.msk [vmem:[#allocation5 + $0x50] sm:$0xff] %vm1531_vm2, %v1504_v44 }
 0x3cf   :  { %v2067_v58 = vpop.permute.xlu0 %2066 }
 0x3d2   :  { %2169 = vrot.lane.b32.xlu2 %v2134_v27, %s2680_s20 }
 0x3d3   :  { %1588 = vrot.lane.b32.xlu1 %v3852_v4, %s2672_s24  ;;  %v4000_v4 = vld [vmem:[#allocation4 + $0x72] sm:$0xff] }
 0x3d4   :  { %v1791_v28 = vpop.permute.xlu2 %1790 }
 0x3d5   :  { %v1872_v32 = vpop.permute.xlu1 %1871  ;;  %1685 = vrot.lane.b32.xlu0 %v3737_v60, %s2673_s25 }
 0x3d6   :  { %1920 = vst.msk [vmem:[#allocation5] sm:$0xff] %vm1919_vm6, %v1872_v32 }
 0x3d7   :  { %2018 = vst.msk [vmem:[#allocation5] sm:$0xff] %vm2017_vm7, %v1970_v1  ;;  %v1680_v63 = vpop.permute.xlu0 %1679 }
 0x3d8   :  { %2115 = vst.msk [vmem:[#allocation5] sm:$0xff] %vm2114_vm8, %v2067_v58  ;;  %v2144_v58 = vld [vmem:[#allocation4 + $0x112] sm:$0xff] }
 0x3d9   :  { %1727 = vst.msk [vmem:[#allocation5 + $0x8] sm:$0xff] %vm1725_vm4, %v1680_v63 }
 0x3da   :  { %2183 = vrot.lane.b32.xlu2 %v2141_v36, %s2680_s20  ;;  %1824 = vst.msk [vmem:[#allocation5 + $0x8] sm:$0xff] %vm1822_vm5, %v1777_v25  ;;  %v2047_v25 = vld [vmem:[#allocation4 + $0x111] sm:$0xff] }
 0x3db   :  { %1602 = vrot.lane.b32.xlu1 %v3862_v11, %s2672_s24  ;;  %v4009_v11 = vld [vmem:[#allocation4 + $0x101] sm:$0xff] }
 0x3dc   :  { %v2069_v18 = vpop.permute.xlu2 %2068 }
 0x3dd   :  { %v2164_v60 = vpop.permute.xlu1 %2163  ;;  %1699 = vrot.lane.b32.xlu0 %v3767_v42, %s2673_s25 }
 0x3de   :  { %2212 = vst.msk [vmem:[#allocation5] sm:$0xff] %vm2211_vm9, %v2164_v60 }
 0x3df   :  { %v1694_v21 = vpop.permute.xlu0 %1693 }
 0x3e0   :  { %1734 = vst.msk [vmem:[#allocation5 + $0x40] sm:$0xff] %vm1725_vm4, %v1694_v21 }
 0x3e1   :  { %1831 = vst.msk [vmem:[#allocation5 + $0x40] sm:$0xff] %vm1822_vm5, %v1791_v28 }
 0x3e2   :  { %1782 = vrot.lane.b32.xlu2 %v3785_v59, %s2674_s26 }
 0x3e3   :  { %1879 = vrot.lane.b32.xlu1 %v2134_v27, %s2679_s19 }
 0x3e4   :  { %v2083_v37 = vpop.permute.xlu2 %2082 }
 0x3e5   :  { %v1874_v24 = vpop.permute.xlu1 %1873  ;;  %v2228_v12 = vld [vmem:[#allocation5] sm:$0xff]  ;;  %1977 = vrot.lane.b32.xlu0 %v3749_v48, %s2678_s3 }
 0x3e6   :  { %1921 = vst.msk [vmem:[#allocation5 + $0x8] sm:$0xff] %vm1919_vm6, %v1874_v24  ;;  %2611 = vmatmul.msk.f32.vlgmr.msra.gmra.mxu1 %vm2253_vm10, %v2228_v12 }
 0x3e7   :  { %v1972_v42 = vpop.permute.xlu0 %1971 }
 0x3e8   :  { %2019 = vst.msk [vmem:[#allocation5 + $0x8] sm:$0xff] %vm2017_vm7, %v1972_v42  ;;  %v1944_v42 = vld [vmem:[#allocation4 + $0x90] sm:$0xff] }
 0x3e9   :  { %2116 = vst.msk [vmem:[#allocation5 + $0x8] sm:$0xff] %vm2114_vm8, %v2069_v18 }
 0x3ea   :  { %1796 = vrot.lane.b32.xlu2 %v3795_v22, %s2674_s26 }
 0x3eb   :  { %1893 = vrot.lane.b32.xlu1 %v2141_v36, %s2679_s19 }
 0x3ec   :  { %v1682_v59 = vpop.permute.xlu2 %1681 }
 0x3ed   :  { %v1888_v49 = vpop.permute.xlu1 %1887  ;;  %1991 = vrot.lane.b32.xlu0 %v3770_v35, %s2678_s3 }
 0x3ee   :  { %1928 = vst.msk [vmem:[#allocation5 + $0x40] sm:$0xff] %vm1919_vm6, %v1888_v49  ;;  %v2041_v49 = vld [vmem:[#allocation4 + $0x91] sm:$0xff] }
 0x3ef   :  { %v1986_v50 = vpop.permute.xlu0 %1985 }
 0x3f0   :  { %2026 = vst.msk [vmem:[#allocation5 + $0x40] sm:$0xff] %vm2017_vm7, %v1986_v50  ;;  %v2138_v50 = vld [vmem:[#allocation4 + $0x92] sm:$0xff] }
 0x3f1   :  { %2123 = vst.msk [vmem:[#allocation5 + $0x40] sm:$0xff] %vm2114_vm8, %v2083_v37 }
 0x3f2   :  { %2074 = vrot.lane.b32.xlu2 %v3739_v30, %s2677_s2 }
 0x3f3   :  { %2171 = vrot.lane.b32.xlu1 %v3963_v2, %s2680_s20 }
 0x3f4   :  { %v1696_v22 = vpop.permute.xlu2 %1695 }
 0x3f5   :  { %v2166_v34 = vpop.permute.xlu1 %2165  ;;  %1590 = vrot.lane.b32.xlu0 %v2134_v27, %s2672_s24 }
 0x3f6   :  { %2213 = vst.msk [vmem:[#allocation5 + $0x8] sm:$0xff] %vm2211_vm9, %v2166_v34  ;;  %v1951_v34 = vld [vmem:[#allocation4 + $0x120] sm:$0xff] }
 0x3f7   :  { %v1585_v29 = vpop.permute.xlu0 %1584 }
 0x3f8   :  { %1631 = vst.msk [vmem:[#allocation5 + $0x10] sm:$0xff] %vm1628_vm3, %v1585_v29  ;;  %v2048_v29 = vld [vmem:[#allocation4 + $0x121] sm:$0xff] }
 0x3f9   :  { %1728 = vst.msk [vmem:[#allocation5 + $0x10] sm:$0xff] %vm1725_vm4, %v1682_v59 }
 0x3fa   :  { %2088 = vrot.lane.b32.xlu2 %v2045_v39, %s2677_s2 }
 0x3fb   :  { %2185 = vrot.lane.b32.xlu1 %v2142_v15, %s2680_s20 }
 0x3fc   :  { %v1974_v26 = vpop.permute.xlu2 %1973 }
 0x3fd   :  { %v2180_v33 = vpop.permute.xlu1 %2179  ;;  %v2229_v6 = vld [vmem:[#allocation5 + $0x8] sm:$0xff]  ;;  %1604 = vrot.lane.b32.xlu0 %v2141_v36, %s2672_s24 }
 0x3fe   :  { %2220 = vst.msk [vmem:[#allocation5 + $0x40] sm:$0xff] %vm2211_vm9, %v2180_v33  ;;  %2612 = vmatmul.msk.f32.gmra.mxu1 %vm2253_vm10, %v2229_v6  ;;  %v2145_v6 = vld [vmem:[#allocation4 + $0x122] sm:$0xff] }
 0x3ff   :  { %v1599_v23 = vpop.permute.xlu0 %1598 }
 0x400   :  { %1638 = vst.msk [vmem:[#allocation5 + $0x48] sm:$0xff] %vm1628_vm3, %v1599_v23 }
 0x401   :  { %1735 = vst.msk [vmem:[#allocation5 + $0x48] sm:$0xff] %vm1725_vm4, %v1696_v22 }
 0x402   :  { %1687 = vrot.lane.b32.xlu2 %v3749_v48, %s2673_s25 }
 0x403   :  { %1784 = vrot.lane.b32.xlu1 %v3739_v30, %s2674_s26 }
 0x404   :  { %v1988_v43 = vpop.permute.xlu2 %1987 }
 0x405   :  { %v1779_v51 = vpop.permute.xlu1 %1778  ;;  %v2236_v8 = vld [vmem:[#allocation5 + $0x40] sm:$0xff]  ;;  %1881 = vrot.lane.b32.xlu0 %v3963_v2, %s2679_s19 }
 0x406   :  { %1825 = vst.msk [vmem:[#allocation5 + $0x10] sm:$0xff] %vm1822_vm5, %v1779_v51  ;;  %2619 = vmatmul.msk.f32.vlgmr.msra.gmra.mxu2 %vm2253_vm10, %v2236_v8 }
 0x407   :  { %v1876_v40 = vpop.permute.xlu0 %1875 }
 0x408   :  { %1922 = vst.msk [vmem:[#allocation5 + $0x10] sm:$0xff] %vm1919_vm6, %v1876_v40  ;;  %v2049_v40 = vld [vmem:[#allocation4 + $0x131] sm:$0xff] }
 0x409   :  { %2020 = vst.msk [vmem:[#allocation5 + $0x10] sm:$0xff] %vm2017_vm7, %v1974_v26 }
 0x40a   :  { %1701 = vrot.lane.b32.xlu2 %v3770_v35, %s2673_s25 }
 0x40b   :  { %1798 = vrot.lane.b32.xlu1 %v2045_v39, %s2674_s26 }
 0x40c   :  { %v1587_v30 = vpop.permute.xlu2 %1586 }
 0x40d   :  { %1632 = vst.msk [vmem:[#allocation5 + $0x18] sm:$0xff] %vm1628_vm3, %v1587_v30  ;;  %v1793_v48 = vpop.permute.xlu1 %1792  ;;  %1895 = vrot.lane.b32.xlu0 %v2142_v15, %s2679_s19 }
 0x40e   :  { %1832 = vst.msk [vmem:[#allocation5 + $0x48] sm:$0xff] %vm1822_vm5, %v1793_v48 }
 0x40f   :  { %v1890_v0 = vpop.permute.xlu0 %1889 }
 0x410   :  { %1929 = vst.msk [vmem:[#allocation5 + $0x48] sm:$0xff] %vm1919_vm6, %v1890_v0 }
 0x411   :  { %2027 = vst.msk [vmem:[#allocation5 + $0x48] sm:$0xff] %vm2017_vm7, %v1988_v43 }
 0x412   :  { %1979 = vrot.lane.b32.xlu2 %v3753_v5, %s2678_s3 }
 0x413   :  { %2076 = vrot.lane.b32.xlu1 %v3803_v13, %s2677_s2 }
 0x414   :  { %v1601_v35 = vpop.permute.xlu2 %1600 }
 0x415   :  { %1639 = vst.msk [vmem:[#allocation5 + $0x50] sm:$0xff] %vm1628_vm3, %v1601_v35  ;;  %v2071_v53 = vpop.permute.xlu1 %2070  ;;  %2173 = vrot.lane.b32.xlu0 %v4000_v4, %s2680_s20  ;;  %v1952_v35 = vld [vmem:[#allocation4 + $0x130] sm:$0xff] }
 0x416   :  { %2117 = vst.msk [vmem:[#allocation5 + $0x10] sm:$0xff] %vm2114_vm8, %v2071_v53 }
 0x417   :  { %v2168_v52 = vpop.permute.xlu0 %2167 }
 0x418   :  { %2214 = vst.msk [vmem:[#allocation5 + $0x10] sm:$0xff] %vm2211_vm9, %v2168_v52 }
 0x41a   :  { %1993 = vrot.lane.b32.xlu2 %v3775_v47, %s2678_s3 }
 0x41b   :  { %2090 = vrot.lane.b32.xlu1 %v4009_v11, %s2677_s2 }
 0x41c   :  { %v1878_v54 = vpop.permute.xlu2 %1877 }
 0x41d   :  { %v2085_v3 = vpop.permute.xlu1 %2084  ;;  %2187 = vrot.lane.b32.xlu0 %v4013_v55, %s2680_s20 }
 0x41e   :  { %2124 = vst.msk [vmem:[#allocation5 + $0x48] sm:$0xff] %vm2114_vm8, %v2085_v3 }
 0x41f   :  { %v2182_v46 = vpop.permute.xlu0 %2181  ;;  %v2230_v57 = vld [vmem:[#allocation5 + $0x10] sm:$0xff] }
 0x420   :  { %2221 = vst.msk [vmem:[#allocation5 + $0x48] sm:$0xff] %vm2211_vm9, %v2182_v46  ;;  %2613 = vmatmul.msk.f32.gmra.mxu1 %vm2253_vm10, %v2230_v57 }
 0x422   :  { %1592 = vrot.lane.b32.xlu2 %v3963_v2, %s2672_s24 }
 0x423   :  { %1509 = vrot.lane.b32.xlu1 %v2045_v39, %s2668_s22 }
 0x424   :  { %v1892_v45 = vpop.permute.xlu2 %1891 }
 0x425   :  { %v1684_v62 = vpop.permute.xlu1 %1683  ;;  %1606 = vrot.lane.b32.xlu0 %v2142_v15, %s2672_s24 }
 0x426   :  { %1729 = vst.msk [vmem:[#allocation5 + $0x18] sm:$0xff] %vm1725_vm4, %v1684_v62 }
 0x427   :  { %v1781_v7 = vpop.permute.xlu0 %1780  ;;  %v2237_v1 = vld [vmem:[#allocation5 + $0x48] sm:$0xff] }
 0x428   :  { %1826 = vst.msk [vmem:[#allocation5 + $0x18] sm:$0xff] %vm1822_vm5, %v1781_v7  ;;  %2620 = vmatmul.msk.f32.gmra.mxu2 %vm2253_vm10, %v2237_v1 }
 0x429   :  { %1923 = vst.msk [vmem:[#allocation5 + $0x18] sm:$0xff] %vm1919_vm6, %v1878_v54 }
 0x42a   :  { %1689 = vrot.lane.b32.xlu2 %v3753_v5, %s2673_s25 }
 0x42b   :  { %1786 = vrot.lane.b32.xlu1 %v3803_v13, %s2674_s26 }
 0x42c   :  { %v2170_v9 = vpop.permute.xlu2 %2169 }
 0x42d   :  { %v1698_v10 = vpop.permute.xlu1 %1697  ;;  %1883 = vrot.lane.b32.xlu0 %v4000_v4, %s2679_s19 }
 0x42e   :  { %1736 = vst.msk [vmem:[#allocation5 + $0x50] sm:$0xff] %vm1725_vm4, %v1698_v10 }
 0x42f   :  { %v1795_v61 = vpop.permute.xlu0 %1794 }
 0x430   :  { %1833 = vst.msk [vmem:[#allocation5 + $0x50] sm:$0xff] %vm1822_vm5, %v1795_v61 }
 0x431   :  { %1930 = vst.msk [vmem:[#allocation5 + $0x50] sm:$0xff] %vm1919_vm6, %v1892_v45 }
 0x432   :  { %1703 = vrot.lane.b32.xlu2 %v3775_v47, %s2673_s25 }
 0x433   :  { %1800 = vrot.lane.b32.xlu1 %v4009_v11, %s2674_s26 }
 0x434   :  { %v2184_v5 = vpop.permute.xlu2 %2183 }
 0x435   :  { %v1976_v13 = vpop.permute.xlu1 %1975  ;;  %1897 = vrot.lane.b32.xlu0 %v4013_v55, %s2679_s19 }
 0x436   :  { %2021 = vst.msk [vmem:[#allocation5 + $0x18] sm:$0xff] %vm2017_vm7, %v1976_v13 }
 0x437   :  { %v2073_v14 = vpop.permute.xlu0 %2072 }
 0x438   :  { %2118 = vst.msk [vmem:[#allocation5 + $0x18] sm:$0xff] %vm2114_vm8, %v2073_v14 }
 0x439   :  { %2215 = vst.msk [vmem:[#allocation5 + $0x18] sm:$0xff] %vm2211_vm9, %v2170_v9 }
 0x43a   :  { %1981 = vrot.lane.b32.xlu2 %v1943_v56, %s2678_s3 }
 0x43b   :  { %2078 = vrot.lane.b32.xlu1 %v2040_v31, %s2677_s2 }
 0x43c   :  { %v1783_v47 = vpop.permute.xlu2 %1782 }
 0x43d   :  { %v1990_v20 = vpop.permute.xlu1 %1989  ;;  %2175 = vrot.lane.b32.xlu0 %v2137_v19, %s2680_s20 }
 0x43e   :  { %2028 = vst.msk [vmem:[#allocation5 + $0x50] sm:$0xff] %vm2017_vm7, %v1990_v20 }
 0x43f   :  { %v2087_v16 = vpop.permute.xlu0 %2086 }
 0x440   :  { %2125 = vst.msk [vmem:[#allocation5 + $0x50] sm:$0xff] %vm2114_vm8, %v2087_v16  ;;  %v2231_v17 = vld [vmem:[#allocation5 + $0x18] sm:$0xff] }
 0x441   :  { %2222 = vst.msk [vmem:[#allocation5 + $0x50] sm:$0xff] %vm2211_vm9, %v2184_v5  ;;  %2614 = vmatmul.msk.f32.gmra.mxu1 %vm2253_vm10, %v2231_v17 }
 0x442   :  { %1995 = vrot.lane.b32.xlu2 %v3779_v38, %s2678_s3 }
 0x443   :  { %2092 = vrot.lane.b32.xlu1 %v2047_v25, %s2677_s2 }
 0x444   :  { %v1797_v44 = vpop.permute.xlu2 %1796 }
 0x445   :  { %v1589_v27 = vpop.permute.xlu1 %1588  ;;  %2189 = vrot.lane.b32.xlu0 %v2144_v58, %s2680_s20 }
 0x446   :  { %1633 = vst.msk [vmem:[#allocation5 + $0x20] sm:$0xff] %vm1628_vm3, %v1589_v27 }
 0x447   :  { %v1686_v28 = vpop.permute.xlu0 %1685 }
 0x448   :  { %1730 = vst.msk [vmem:[#allocation5 + $0x20] sm:$0xff] %vm1725_vm4, %v1686_v28  ;;  %v2238_v32 = vld [vmem:[#allocation5 + $0x50] sm:$0xff] }
 0x449   :  { %1827 = vst.msk [vmem:[#allocation5 + $0x20] sm:$0xff] %vm1822_vm5, %v1783_v47  ;;  %2621 = vmatmul.msk.f32.gmra.mxu2 %vm2253_vm10, %v2238_v32 }
 0x44a   :  { %1594 = vrot.lane.b32.xlu2 %v4000_v4, %s2672_s24  ;;  %v2146_v4 = vld [vmem:[#allocation4 + $0x132] sm:$0xff] }
 0x44b   :  { %1511 = vrot.lane.b32.xlu1 %v4009_v11, %s2668_s22 }
 0x44c   :  { %v2075_v63 = vpop.permute.xlu2 %2074 }
 0x44d   :  { %v1603_v36 = vpop.permute.xlu1 %1602  ;;  %1608 = vrot.lane.b32.xlu0 %v4013_v55, %s2672_s24 }
 0x44e   :  { %1640 = vst.msk [vmem:[#allocation5 + $0x58] sm:$0xff] %vm1628_vm3, %v1603_v36 }
 0x44f   :  { %v1700_v18 = vpop.permute.xlu0 %1699 }
 0x450   :  { %1737 = vst.msk [vmem:[#allocation5 + $0x58] sm:$0xff] %vm1725_vm4, %v1700_v18 }
 0x451   :  { %1834 = vst.msk [vmem:[#allocation5 + $0x58] sm:$0xff] %vm1822_vm5, %v1797_v44 }
 0x452   :  { %1691 = vrot.lane.b32.xlu2 %v1943_v56, %s2673_s25 }
 0x453   :  { %1788 = vrot.lane.b32.xlu1 %v2040_v31, %s2674_s26 }
 0x454   :  { %v2089_v60 = vpop.permute.xlu2 %2088 }
 0x455   :  { %v1880_v21 = vpop.permute.xlu1 %1879  ;;  %1885 = vrot.lane.b32.xlu0 %v2137_v19, %s2679_s19 }
 0x456   :  { %1924 = vst.msk [vmem:[#allocation5 + $0x20] sm:$0xff] %vm1919_vm6, %v1880_v21 }
 0x457   :  { %v1978_v37 = vpop.permute.xlu0 %1977 }
 0x458   :  { %2022 = vst.msk [vmem:[#allocation5 + $0x20] sm:$0xff] %vm2017_vm7, %v1978_v37 }
 0x459   :  { %2119 = vst.msk [vmem:[#allocation5 + $0x20] sm:$0xff] %vm2114_vm8, %v2075_v63 }
 0x45a   :  { %1705 = vrot.lane.b32.xlu2 %v3779_v38, %s2673_s25 }
 0x45b   :  { %1802 = vrot.lane.b32.xlu1 %v2047_v25, %s2674_s26 }
 0x45c   :  { %v1688_v24 = vpop.permute.xlu2 %1687 }
 0x45d   :  { %v1894_v12 = vpop.permute.xlu1 %1893  ;;  %1899 = vrot.lane.b32.xlu0 %v2144_v58, %s2679_s19 }
 0x45e   :  { %1931 = vst.msk [vmem:[#allocation5 + $0x58] sm:$0xff] %vm1919_vm6, %v1894_v12 }
 0x45f   :  { %v1992_v59 = vpop.permute.xlu0 %1991 }
 0x460   :  { %2029 = vst.msk [vmem:[#allocation5 + $0x58] sm:$0xff] %vm2017_vm7, %v1992_v59 }
 0x461   :  { %2126 = vst.msk [vmem:[#allocation5 + $0x58] sm:$0xff] %vm2114_vm8, %v2089_v60 }
 0x462   :  { %1983 = vrot.lane.b32.xlu2 %v1944_v42, %s2678_s3 }
 0x463   :  { %2080 = vrot.lane.b32.xlu1 %v2041_v49, %s2677_s2 }
 0x464   :  { %v1702_v38 = vpop.permute.xlu2 %1701 }
 0x465   :  { %v2172_v2 = vpop.permute.xlu1 %2171  ;;  %2177 = vrot.lane.b32.xlu0 %v2138_v50, %s2680_s20 }
 0x466   :  { %2216 = vst.msk [vmem:[#allocation5 + $0x20] sm:$0xff] %vm2211_vm9, %v2172_v2 }
 0x467   :  { %v1591_v22 = vpop.permute.xlu0 %1590 }
 0x468   :  { %1634 = vst.msk [vmem:[#allocation5 + $0x28] sm:$0xff] %vm1628_vm3, %v1591_v22 }
 0x469   :  { %1731 = vst.msk [vmem:[#allocation5 + $0x28] sm:$0xff] %vm1725_vm4, %v1688_v24 }
 0x46a   :  { %1997 = vrot.lane.b32.xlu2 %v1951_v34, %s2678_s3 }
 0x46b   :  { %2094 = vrot.lane.b32.xlu1 %v2048_v29, %s2677_s2 }
 0x46c   :  { %v1980_v39 = vpop.permute.xlu2 %1979 }
 0x46d   :  { %v2186_v15 = vpop.permute.xlu1 %2185  ;;  %v2232_v26 = vld [vmem:[#allocation5 + $0x20] sm:$0xff]  ;;  %1513 = vrot.lane.b32.xlu0 %v2047_v25, %s2668_s22 }
 0x46e   :  { %2223 = vst.msk [vmem:[#allocation5 + $0x58] sm:$0xff] %vm2211_vm9, %v2186_v15  ;;  %2615 = vmatmul.msk.f32.gmra.mxu1 %vm2253_vm10, %v2232_v26 }
 0x46f   :  { %v1605_v33 = vpop.permute.xlu0 %1604 }
 0x470   :  { %1641 = vst.msk [vmem:[#allocation5 + $0x60] sm:$0xff] %vm1628_vm3, %v1605_v33 }
 0x471   :  { %1738 = vst.msk [vmem:[#allocation5 + $0x60] sm:$0xff] %vm1725_vm4, %v1702_v38 }
 0x472   :  { %2191 = vrot.lane.b32.xlu2 %v2145_v6, %s2680_s20 }
 0x473   :  { %1610 = vrot.lane.b32.xlu1 %v2144_v58, %s2672_s24 }
 0x474   :  { %v1994_v23 = vpop.permute.xlu2 %1993 }
 0x475   :  { %v1785_v43 = vpop.permute.xlu1 %1784  ;;  %v2239_v51 = vld [vmem:[#allocation5 + $0x58] sm:$0xff]  ;;  %1804 = vrot.lane.b32.xlu0 %v2048_v29, %s2674_s26 }
 0x476   :  { %1828 = vst.msk [vmem:[#allocation5 + $0x28] sm:$0xff] %vm1822_vm5, %v1785_v43  ;;  %2622 = vmatmul.msk.f32.gmra.mxu2 %vm2253_vm10, %v2239_v51 }
 0x477   :  { %v1882_v8 = vpop.permute.xlu0 %1881 }
 0x478   :  { %1925 = vst.msk [vmem:[#allocation5 + $0x28] sm:$0xff] %vm1919_vm6, %v1882_v8 }
 0x479   :  { %2023 = vst.msk [vmem:[#allocation5 + $0x28] sm:$0xff] %vm2017_vm7, %v1980_v39  ;;  %v2319_v39 = vpop.f32.mrf.mxu1 }
 0x47a   :  { %1707 = vrot.lane.b32.xlu2 %v1951_v34, %s2673_s25 }
 0x47b   :  { %1901 = vrot.lane.b32.xlu1 %v2145_v6, %s2679_s19 }
 0x47c   :  { %v1593_v30 = vpop.permute.xlu2 %1592 }
 0x47d   :  { %1635 = vst.msk [vmem:[#allocation5 + $0x30] sm:$0xff] %vm1628_vm3, %v1593_v30  ;;  %v1799_v48 = vpop.permute.xlu1 %1798  ;;  %2096 = vrot.lane.b32.xlu0 %v2049_v40, %s2677_s2  ;;  %v2369_v30 = vsel %vm1164_vm12, %v2319_v39, 0.0 }
 0x47e   :  { %1835 = vst.msk [vmem:[#allocation5 + $0x60] sm:$0xff] %vm1822_vm5, %v1799_v48 }
 0x47f   :  { %v1896_v0 = vpop.permute.xlu0 %1895 }
 0x480   :  { %1932 = vst.msk [vmem:[#allocation5 + $0x60] sm:$0xff] %vm1919_vm6, %v1896_v0 }
 0x481   :  { %2030 = vst.msk [vmem:[#allocation5 + $0x60] sm:$0xff] %vm2017_vm7, %v1994_v23  ;;  %v2322_v15 = vpop.f32.mrf.mxu1 }
 0x482   :  { %1999 = vrot.lane.b32.xlu2 %v1952_v35, %s2678_s3  ;;  %v2370_v8 = vsel %vm1164_vm12, %v2322_v15, 0.0 }
 0x483   :  { %2193 = vrot.lane.b32.xlu1 %v2146_v4, %s2680_s20  ;;  %v2371_v0 = vadd.f32 %v2370_v8, %v2369_v30 }
 0x484   :  { %v1690_v53 = vpop.permute.xlu2 %1689 }
 0x485   :  { %1732 = vst.msk [vmem:[#allocation5 + $0x30] sm:$0xff] %vm1725_vm4, %v1690_v53  ;;  %v2077_v52 = vpop.permute.xlu1 %2076 }
 0x486   :  { %2120 = vst.msk [vmem:[#allocation5 + $0x28] sm:$0xff] %vm2114_vm8, %v2077_v52 }
 0x487   :  { %v2174_v11 = vpop.permute.xlu0 %2173 }
 0x488   :  { %2217 = vst.msk [vmem:[#allocation5 + $0x28] sm:$0xff] %vm2211_vm9, %v2174_v11 }
 0x489   :  { %v4160_v23 = vpop.f32.mrf.mxu2 }
 0x48c   :  { %v1704_v54 = vpop.permute.xlu2 %1703 }
 0x48d   :  { %v2091_v55 = vpop.permute.xlu1 %2090 }
 0x48e   :  { %2127 = vst.msk [vmem:[#allocation5 + $0x60] sm:$0xff] %vm2114_vm8, %v2091_v55 }
 0x48f   :  { %v2188_v3 = vpop.permute.xlu0 %2187  ;;  %v2233_v46 = vld [vmem:[#allocation5 + $0x28] sm:$0xff] }
 0x490   :  { %2224 = vst.msk [vmem:[#allocation5 + $0x60] sm:$0xff] %vm2211_vm9, %v2188_v3  ;;  %2616 = vmatmul.msk.f32.gmra.mxu1 %vm2253_vm10, %v2233_v46 }
 0x494   :  { %v1982_v57 = vpop.permute.xlu2 %1981 }
 0x495   :  { %v1510_v45 = vpop.permute.xlu1 %1509 }
 0x496   :  { %1545 = vst.msk [vmem:[#allocation5 + $0x68] sm:$0xff] %vm1531_vm2, %v1510_v45 }
 0x497   :  { %v1607_v62 = vpop.permute.xlu0 %1606  ;;  %v2240_v7 = vld [vmem:[#allocation5 + $0x60] sm:$0xff] }
 0x498   :  { %1642 = vst.msk [vmem:[#allocation5 + $0x68] sm:$0xff] %vm1628_vm3, %v1607_v62  ;;  %2623 = vmatmul.msk.f32.gmra.mxu2 %vm2253_vm10, %v2240_v7 }
 0x499   :  { %1739 = vst.msk [vmem:[#allocation5 + $0x68] sm:$0xff] %vm1725_vm4, %v1704_v54 }
 0x49c   :  { %v1996_v1 = vpop.permute.xlu2 %1995 }
 0x49d   :  { %v1787_v9 = vpop.permute.xlu1 %1786  ;;  %v2325_v26 = vpop.f32.mrf.mxu1 }
 0x49e   :  { %1829 = vst.msk [vmem:[#allocation5 + $0x30] sm:$0xff] %vm1822_vm5, %v1787_v9  ;;  %v2372_v48 = vsel %vm1164_vm12, %v2325_v26, 0.0  ;;  %v2384_v9 = vsel %vm1164_vm12, %v4160_v23, 0.0 }
 0x49f   :  { %v1884_v10 = vpop.permute.xlu0 %1883  ;;  %v2373_v53 = vadd.f32 %v2372_v48, %v2371_v0 }
 0x4a0   :  { %1926 = vst.msk [vmem:[#allocation5 + $0x30] sm:$0xff] %vm1919_vm6, %v1884_v10 }
 0x4a1   :  { %2024 = vst.msk [vmem:[#allocation5 + $0x30] sm:$0xff] %vm2017_vm7, %v1982_v57 }
 0x4a4   :  { %v1595_v61 = vpop.permute.xlu2 %1594 }
 0x4a5   :  { %1636 = vst.msk [vmem:[#allocation5 + $0x38] sm:$0xff] %vm1628_vm3, %v1595_v61  ;;  %v1801_v5 = vpop.permute.xlu1 %1800 }
 0x4a6   :  { %1836 = vst.msk [vmem:[#allocation5 + $0x68] sm:$0xff] %vm1822_vm5, %v1801_v5 }
 0x4a7   :  { %v1898_v13 = vpop.permute.xlu0 %1897 }
 0x4a8   :  { %1933 = vst.msk [vmem:[#allocation5 + $0x68] sm:$0xff] %vm1919_vm6, %v1898_v13 }
 0x4a9   :  { %2031 = vst.msk [vmem:[#allocation5 + $0x68] sm:$0xff] %vm2017_vm7, %v1996_v1 }
 0x4ab   :  { %v4162_v51 = vpop.f32.mrf.mxu2 }
 0x4ac   :  { %v1692_v14 = vpop.permute.xlu2 %1691  ;;  %v2386_v5 = vsel %vm1164_vm12, %v4162_v51, 0.0 }
 0x4ad   :  { %1733 = vst.msk [vmem:[#allocation5 + $0x38] sm:$0xff] %vm1725_vm4, %v1692_v14  ;;  %v2079_v56 = vpop.permute.xlu1 %2078 }
 0x4ae   :  { %2121 = vst.msk [vmem:[#allocation5 + $0x30] sm:$0xff] %vm2114_vm8, %v2079_v56 }
 0x4af   :  { %v2176_v31 = vpop.permute.xlu0 %2175 }
 0x4b0   :  { %2218 = vst.msk [vmem:[#allocation5 + $0x30] sm:$0xff] %vm2211_vm9, %v2176_v31 }
 0x4b4   :  { %v1706_v16 = vpop.permute.xlu2 %1705 }
 0x4b5   :  { %v2093_v47 = vpop.permute.xlu1 %2092 }
 0x4b6   :  { %2128 = vst.msk [vmem:[#allocation5 + $0x68] sm:$0xff] %vm2114_vm8, %v2093_v47 }
 0x4b7   :  { %v2190_v19 = vpop.permute.xlu0 %2189  ;;  %v2234_v20 = vld [vmem:[#allocation5 + $0x30] sm:$0xff] }
 0x4b8   :  { %2225 = vst.msk [vmem:[#allocation5 + $0x68] sm:$0xff] %vm2211_vm9, %v2190_v19  ;;  %2617 = vmatmul.msk.f32.gmra.mxu1 %vm2253_vm10, %v2234_v20 }
 0x4bc   :  { %v1984_v27 = vpop.permute.xlu2 %1983 }
 0x4bd   :  { %v1512_v17 = vpop.permute.xlu1 %1511 }
 0x4be   :  { %1546 = vst.msk [vmem:[#allocation5 + $0x70] sm:$0xff] %vm1531_vm2, %v1512_v17  ;;  %v2328_v33 = vpop.f32.mrf.mxu1 }
 0x4bf   :  { %v1609_v25 = vpop.permute.xlu0 %1608  ;;  %v2241_v44 = vld [vmem:[#allocation5 + $0x68] sm:$0xff]  ;;  %v2374_v4 = vsel %vm1164_vm12, %v2328_v33, 0.0 }
 0x4c0   :  { %1643 = vst.msk [vmem:[#allocation5 + $0x70] sm:$0xff] %vm1628_vm3, %v1609_v25  ;;  %2624 = vmatmul.msk.f32.gmra.mxu2 %vm2253_vm10, %v2241_v44  ;;  %v2375_v11 = vadd.f32 %v2374_v4, %v2373_v53 }
 0x4c1   :  { %1740 = vst.msk [vmem:[#allocation5 + $0x70] sm:$0xff] %vm1725_vm4, %v1706_v16 }
 0x4c4   :  { %v1998_v36 = vpop.permute.xlu2 %1997 }
 0x4c5   :  { %v1789_v58 = vpop.permute.xlu1 %1788 }
 0x4c6   :  { %1830 = vst.msk [vmem:[#allocation5 + $0x38] sm:$0xff] %vm1822_vm5, %v1789_v58 }
 0x4c7   :  { %v1886_v28 = vpop.permute.xlu0 %1885 }
 0x4c8   :  { %1927 = vst.msk [vmem:[#allocation5 + $0x38] sm:$0xff] %vm1919_vm6, %v1886_v28 }
 0x4c9   :  { %2025 = vst.msk [vmem:[#allocation5 + $0x38] sm:$0xff] %vm2017_vm7, %v1984_v27 }
 0x4cc   :  { %v2192_v21 = vpop.permute.xlu2 %2191  ;;  %v4167_v35 = vpop.f32.mrf.mxu2 }
 0x4cd   :  { %v1803_v32 = vpop.permute.xlu1 %1802  ;;  %v2388_v14 = vsel %vm1164_vm12, %v4167_v35, 0.0 }
 0x4ce   :  { %1837 = vst.msk [vmem:[#allocation5 + $0x70] sm:$0xff] %vm1822_vm5, %v1803_v32 }
 0x4cf   :  { %v1900_v63 = vpop.permute.xlu0 %1899 }
 0x4d0   :  { %1934 = vst.msk [vmem:[#allocation5 + $0x70] sm:$0xff] %vm1919_vm6, %v1900_v63 }
 0x4d1   :  { %2032 = vst.msk [vmem:[#allocation5 + $0x70] sm:$0xff] %vm2017_vm7, %v1998_v36 }
 0x4d4   :  { %v1708_v42 = vpop.permute.xlu2 %1707 }
 0x4d5   :  { %v2081_v18 = vpop.permute.xlu1 %2080 }
 0x4d6   :  { %2122 = vst.msk [vmem:[#allocation5 + $0x38] sm:$0xff] %vm2114_vm8, %v2081_v18 }
 0x4d7   :  { %v2178_v60 = vpop.permute.xlu0 %2177 }
 0x4d8   :  { %2219 = vst.msk [vmem:[#allocation5 + $0x38] sm:$0xff] %vm2211_vm9, %v2178_v60 }
 0x4dc   :  { %v2000_v38 = vpop.permute.xlu2 %1999 }
 0x4dd   :  { %v2095_v37 = vpop.permute.xlu1 %2094 }
 0x4de   :  { %2129 = vst.msk [vmem:[#allocation5 + $0x70] sm:$0xff] %vm2114_vm8, %v2095_v37 }
 0x4df   :  { %2226 = vst.msk [vmem:[#allocation5 + $0x70] sm:$0xff] %vm2211_vm9, %v2192_v21  ;;  %v1514_v24 = vpop.permute.xlu0 %1513  ;;  %v2235_v12 = vld [vmem:[#allocation5 + $0x38] sm:$0xff] }
 0x4e0   :  { %1547 = vst.msk [vmem:[#allocation5 + $0x78] sm:$0xff] %vm1531_vm2, %v1514_v24  ;;  %2618 = vmatmul.msk.f32.gmra.mxu1 %vm2253_vm10, %v2235_v12 }
 0x4e5   :  { %v1611_v59 = vpop.permute.xlu1 %1610 }
 0x4e6   :  { %v2242_v49 = vld [vmem:[#allocation5 + $0x70] sm:$0xff]  ;;  %1644 = vst.msk [vmem:[#allocation5 + $0x78] sm:$0xff] %vm1628_vm3, %v1611_v59 }
 0x4e7   :  { %2625 = vmatmul.msk.f32.gmra.mxu2 %vm2253_vm10, %v2242_v49  ;;  %1741 = vst.msk [vmem:[#allocation5 + $0x78] sm:$0xff] %vm1725_vm4, %v1708_v42  ;;  %v1805_v50 = vpop.permute.xlu0 %1804 }
 0x4e8   :  { %1838 = vst.msk [vmem:[#allocation5 + $0x78] sm:$0xff] %vm1822_vm5, %v1805_v50 }
 0x4eb   :  { %v2331_v6 = vpop.f32.mrf.mxu1 }
 0x4ec   :  { %v2376_v52 = vsel %vm1164_vm12, %v2331_v6, 0.0 }
 0x4ed   :  { %v1902_v2 = vpop.permute.xlu1 %1901  ;;  %v2377_v55 = vadd.f32 %v2376_v52, %v2375_v11 }
 0x4ee   :  { %1935 = vst.msk [vmem:[#allocation5 + $0x78] sm:$0xff] %vm1919_vm6, %v1902_v2 }
 0x4ef   :  { %2033 = vst.msk [vmem:[#allocation5 + $0x78] sm:$0xff] %vm2017_vm7, %v2000_v38  ;;  %v2097_v22 = vpop.permute.xlu0 %2096 }
 0x4f0   :  { %2130 = vst.msk [vmem:[#allocation5 + $0x78] sm:$0xff] %vm2114_vm8, %v2097_v22 }
 0x4f5   :  { %v2194_v34 = vpop.permute.xlu1 %2193 }
 0x4f6   :  { %2227 = vst.msk [vmem:[#allocation5 + $0x78] sm:$0xff] %vm2211_vm9, %v2194_v34 }
 0x4f9   :  { %v4173_v57 = vpop.f32.mrf.mxu2 }
 0x4fa   :  { %v2390_v47 = vsel %vm1164_vm12, %v4173_v57, 0.0 }
 0x4fd   :  { %v2243_v29 = vld [vmem:[#allocation5 + $0x78] sm:$0xff] }
 0x4fe   :  { %2626 = vmatmul.msk.f32.gmra.mxu2 %vm2253_vm10, %v2243_v29 }
 0x50d   :  { %v2334_v43 = vpop.f32.mrf.mxu1 }
 0x50e   :  { %v2378_v54 = vsel %vm1164_vm12, %v2334_v43, 0.0 }
 0x50f   :  { %v2379_v45 = vadd.f32 %v2378_v54, %v2377_v55 }
 0x51b   :  { %v4178_v10 = vpop.f32.mrf.mxu2 }
 0x51c   :  { %v2392_v20 = vsel %vm1164_vm12, %v4178_v10, 0.0 }
 0x535   :  { %v2337_v40 = vpop.f32.mrf.mxu1 }
 0x536   :  { %v2380_v46 = vsel %vm1164_vm12, %v2337_v40, 0.0 }
 0x537   :  { %v2381_v7 = vadd.f32 %v2380_v46, %v2379_v45 }
 0x543   :  { %v2358_v56 = vpop.f32.mrf.mxu2 }
 0x544   :  { %v2394_v25 = vsel %vm1164_vm12, %v2358_v56, 0.0 }
 0x55d   :  { %v2340_v3 = vpop.f32.mrf.mxu1 }
 0x55e   :  { %v2382_v62 = vsel %vm1164_vm12, %v2340_v3, 0.0 }
 0x55f   :  { %v2383_v1 = vadd.f32 %v2382_v62, %v2381_v7 }
 0x561   :  { %v2385_v61 = vadd.f32 %v2384_v9, %v2383_v1 }
 0x563   :  { %v2387_v13 = vadd.f32 %v2386_v5, %v2385_v61 }
 0x565   :  { %v2389_v31 = vadd.f32 %v2388_v14, %v2387_v13 }
 0x567   :  { %v2391_v19 = vadd.f32 %v2390_v47, %v2389_v31 }
 0x569   :  { %v2393_v17 = vadd.f32 %v2392_v20, %v2391_v19 }
 0x56a   :  { %v2361_v16 = vpop.f32.mrf.mxu2 }
 0x56b   :  { %v2395_v44 = vadd.f32 %v2394_v25, %v2393_v17  ;;  %v2396_v58 = vsel %vm1164_vm12, %v2361_v16, 0.0 }
 0x56d   :  { %v2397_v27 = vadd.f32 %v2396_v58, %v2395_v44 }
 0x581   :  { %v2364_v28 = vpop.f32.mrf.mxu2 }
 0x582   :  { %v2398_v32 = vsel %vm1164_vm12, %v2364_v28, 0.0 }
 0x583   :  { %v2399_v63 = vadd.f32 %v2398_v32, %v2397_v27 }
 0x585   :  { %v2400_v36 = vrot.slane %v2399_v63, 4 }
 0x587   :  { %v2401_v18 = vadd.f32 %v2400_v36, %v2399_v63 }
 0x589   :  { %v2402_v60 = vrot.slane %v2401_v18, 2 }
 0x58b   :  { %v2403_v21 = vadd.f32 %v2402_v60, %v2401_v18 }
 0x58d   :  { %v2404_v37 = vrot.slane %v2403_v21, 1 }
 0x58f   :  { %v2405_v24 = vadd.f32 %v2404_v37, %v2403_v21 }
 0x591   :  { %v2406_v12 = vmul.f32 %v2405_v24, %v3549_v41 }
 0x593   :  { %v4192_v42 = vsub.f32 %v2319_v39, %v2406_v12  ;;  %v4194_v59 = vsub.f32 %v2322_v15, %v2406_v12  ;;  %v4196_v49 = vsub.f32 %v2325_v26, %v2406_v12  ;;  %v4198_v50 = vsub.f32 %v2328_v33, %v2406_v12 }
 0x594   :  { %v4204_v22 = vsub.f32 %v2331_v6, %v2406_v12  ;;  %v4208_v29 = vsub.f32 %v2334_v43, %v2406_v12  ;;  %v4214_v8 = vsub.f32 %v2337_v40, %v2406_v12  ;;  %v4219_v0 = vsub.f32 %v2340_v3, %v2406_v12 }
 0x595   :  { %v2423_v38 = vmul.f32 %v4192_v42, %v4192_v42  ;;  %v2424_v2 = vmul.f32 %v4194_v59, %v4194_v59  ;;  %v2425_v34 = vmul.f32 %v4196_v49, %v4196_v49  ;;  %v2426_v39 = vmul.f32 %v4198_v50, %v4198_v50 }
 0x596   :  { %v2427_v30 = vmul.f32 %v4204_v22, %v4204_v22  ;;  %v2428_v43 = vmul.f32 %v4208_v29, %v4208_v29  ;;  %v4225_v52 = vsub.f32 %v4160_v23, %v2406_v12  ;;  %v2429_v40 = vmul.f32 %v4214_v8, %v4214_v8 }
 0x597   :  { %v2439_v15 = vsel %vm1164_vm12, %v2423_v38, 0.0  ;;  %v2440_v26 = vsel %vm1164_vm12, %v2424_v2, 0.0  ;;  %v2442_v6 = vsel %vm1164_vm12, %v2425_v34, 0.0  ;;  %v2444_v4 = vsel %vm1164_vm12, %v2426_v39, 0.0 }
 0x598   :  { %v2441_v33 = vadd.f32 %v2440_v26, %v2439_v15  ;;  %v2446_v11 = vsel %vm1164_vm12, %v2427_v30, 0.0  ;;  %v4231_v55 = vsub.f32 %v4162_v51, %v2406_v12  ;;  %v2430_v3 = vmul.f32 %v4219_v0, %v4219_v0 }
 0x599   :  { %v2448_v46 = vsel %vm1164_vm12, %v2428_v43, 0.0  ;;  %v4237_v62 = vsub.f32 %v4167_v35, %v2406_v12  ;;  %v2431_v23 = vmul.f32 %v4225_v52, %v4225_v52  ;;  %v2450_v7 = vsel %vm1164_vm12, %v2429_v40, 0.0 }
 0x59a   :  { %v2443_v48 = vadd.f32 %v2442_v6, %v2441_v33  ;;  %v4243_v9 = vsub.f32 %v4173_v57, %v2406_v12  ;;  %v2432_v51 = vmul.f32 %v4231_v55, %v4231_v55  ;;  %v2452_v61 = vsel %vm1164_vm12, %v2430_v3, 0.0 }
 0x59b   :  { %v4249_v13 = vsub.f32 %v4178_v10, %v2406_v12  ;;  %v2433_v35 = vmul.f32 %v4237_v62, %v4237_v62  ;;  %v2454_v14 = vsel %vm1164_vm12, %v2431_v23, 0.0  ;;  %v4254_v47 = vsub.f32 %v2358_v56, %v2406_v12 }
 0x59c   :  { %v2445_v53 = vadd.f32 %v2444_v4, %v2443_v48  ;;  %v2434_v57 = vmul.f32 %v4243_v9, %v4243_v9  ;;  %v2456_v19 = vsel %vm1164_vm12, %v2432_v51, 0.0  ;;  %v4259_v17 = vsub.f32 %v2361_v16, %v2406_v12 }
 0x59d   :  { %v2435_v10 = vmul.f32 %v4249_v13, %v4249_v13  ;;  %v2458_v25 = vsel %vm1164_vm12, %v2433_v35, 0.0  ;;  %v4264_v58 = vsub.f32 %v2364_v28, %v2406_v12  ;;  %v2436_v56 = vmul.f32 %v4254_v47, %v4254_v47 }
 0x59e   :  { %v2447_v54 = vadd.f32 %v2446_v11, %v2445_v53  ;;  %v2460_v27 = vsel %vm1164_vm12, %v2434_v57, 0.0  ;;  %v2437_v63 = vmul.f32 %v4259_v17, %v4259_v17 }
 0x59f   :  { %v2462_v16 = vsel %vm1164_vm12, %v2435_v10, 0.0  ;;  %v2438_v18 = vmul.f32 %v4264_v58, %v4264_v58  ;;  %v2464_v60 = vsel %vm1164_vm12, %v2436_v56, 0.0 }
 0x5a0   :  { %v2449_v45 = vadd.f32 %v2448_v46, %v2447_v54  ;;  %v2466_v28 = vsel %vm1164_vm12, %v2437_v63, 0.0 }
 0x5a1   :  { %v2468_v24 = vsel %vm1164_vm12, %v2438_v18, 0.0 }
 0x5a2   :  { %v2451_v1 = vadd.f32 %v2450_v7, %v2449_v45 }
 0x5a4   :  { %v2453_v5 = vadd.f32 %v2452_v61, %v2451_v1 }
 0x5a6   :  { %v2455_v31 = vadd.f32 %v2454_v14, %v2453_v5 }
 0x5a8   :  { %v2457_v20 = vadd.f32 %v2456_v19, %v2455_v31 }
 0x5aa   :  { %v2459_v44 = vadd.f32 %v2458_v25, %v2457_v20 }
 0x5ac   :  { %v2461_v32 = vadd.f32 %v2460_v27, %v2459_v44 }
 0x5ae   :  { %v2463_v36 = vadd.f32 %v2462_v16, %v2461_v32 }
 0x5b0   :  { %v2465_v21 = vadd.f32 %v2464_v60, %v2463_v36 }
 0x5b2   :  { %v2467_v37 = vadd.f32 %v2466_v28, %v2465_v21 }
 0x5b4   :  { %v2469_v12 = vadd.f32 %v2468_v24, %v2467_v37 }
 0x5b6   :  { %v2470_v38 = vrot.slane %v2469_v12, 4 }
 0x5b8   :  { %v2471_v2 = vadd.f32 %v2470_v38, %v2469_v12 }
 0x5ba   :  { %v2472_v34 = vrot.slane %v2471_v2, 2 }
 0x5bc   :  { %v2473_v39 = vadd.f32 %v2472_v34, %v2471_v2 }
 0x5be   :  { %v2474_v15 = vrot.slane %v2473_v39, 1 }
 0x5c0   :  { %v2475_v26 = vadd.f32 %v2474_v15, %v2473_v39 }
 0x5c2   :  { %v2476_v33 = vmul.f32 %v2475_v26, %v3549_v41  ;;  %v2658_v41 = vld [vmem:[%s4369_s5] ss:$0 sm:$0xff] }
 0x5c4   :  { %v2477_v30 = vadd.f32 1e-05, %v2476_v33 }
 0x5c6   :  { %2664 = vrsqrt.f32 %v2477_v30  ;;  %vm2484_vm13 = vweird.f32 %v2477_v30 }
 0x5cc   :  { %v2665_v6 = vpop.eup %2664 }
 0x5cd   :  { %v2479_v48 = vmul.f32 %v2665_v6, %v2477_v30  ;;  %vm2485_vm11 = vweird.f32 %v2665_v6 }
 0x5ce   :  { %vm2486_vm14 = vmor %vm2484_vm13, %vm2485_vm11 }
 0x5cf   :  { %v2480_v43 = vmul.f32 %v2665_v6, %v2479_v48 }
 0x5d1   :  { %v2481_v4 = vmul.f32 0.5, %v2480_v43 }
 0x5d3   :  { %v2482_v53 = vsub.f32 1.5, %v2481_v4 }
 0x5d5   :  { %v2483_v40 = vmul.f32 %v2665_v6, %v2482_v53 }
 0x5d7   :  { %v2487_v11 = vsel %vm2486_vm14, %v2665_v6, %v2483_v40 }
 0x5d8   :  { %v2488_v54 = vmul.f32 %v2487_v11, %v4192_v42  ;;  %v2489_v3 = vmul.f32 %v2487_v11, %v4194_v59  ;;  %v2490_v46 = vmul.f32 %v2487_v11, %v4196_v49  ;;  %v2491_v45 = vmul.f32 %v2487_v11, %v4198_v50  ;;  %v2659_v42 = vld [vmem:[%s4370_s6] ss:$0 sm:$0xff] }
 0x5d9   :  { %v2493_v23 = vmul.f32 %v2487_v11, %v4208_v29  ;;  %v2494_v7 = vmul.f32 %v2487_v11, %v4214_v8  ;;  %v2492_v1 = vmul.f32 %v2487_v11, %v4204_v22  ;;  %v2495_v59 = vmul.f32 %v2487_v11, %v4219_v0 }
 0x5da   :  { %v2507_v51 = vmul.f32 %v2658_v41, %v2488_v54  ;;  %v2508_v61 = vmul.f32 %v2658_v41, %v2489_v3  ;;  %v2509_v5 = vmul.f32 %v2658_v41, %v2490_v46  ;;  %v2510_v49 = vmul.f32 %v2658_v41, %v2491_v45 }
 0x5db   :  { %v2496_v35 = vmul.f32 %v2487_v11, %v4225_v52  ;;  %v2511_v14 = vmul.f32 %v2658_v41, %v2492_v1  ;;  %v2497_v50 = vmul.f32 %v2487_v11, %v4231_v55  ;;  %v2498_v29 = vmul.f32 %v2487_v11, %v4237_v62 }
 0x5dc   :  { %v2512_v8 = vmul.f32 %v2658_v41, %v2493_v23  ;;  %v2513_v31 = vmul.f32 %v2658_v41, %v2494_v7  ;;  %v2526_v22 = vadd.f32 %v2659_v42, %v2507_v51  ;;  %v2527_v57 = vadd.f32 %v2659_v42, %v2508_v61 }
 0x5dd   :  { %v2528_v19 = vadd.f32 %v2659_v42, %v2509_v5  ;;  %v2499_v20 = vmul.f32 %v2487_v11, %v4243_v9  ;;  %v2514_v10 = vmul.f32 %v2658_v41, %v2495_v59  ;;  %v2529_v25 = vadd.f32 %v2659_v42, %v2510_v49 }
 0x5de   :  { %v2500_v44 = vmul.f32 %v2487_v11, %v4249_v13  ;;  %v2501_v0 = vmul.f32 %v2487_v11, %v4254_v47  ;;  %v2515_v56 = vmul.f32 %v2658_v41, %v2496_v35  ;;  %v2530_v52 = vadd.f32 %v2659_v42, %v2511_v14 }
 0x5df   :  { %v2502_v27 = vmul.f32 %v2487_v11, %v4259_v17  ;;  %v2516_v55 = vmul.f32 %v2658_v41, %v2497_v50  ;;  %v2517_v32 = vmul.f32 %v2658_v41, %v2498_v29  ;;  %v2531_v62 = vadd.f32 %v2659_v42, %v2512_v8 }
 0x5e0   :  { %v2532_v63 = vadd.f32 %v2659_v42, %v2513_v31  ;;  %v2542_v16 = vmax.f32 %v2526_v22, 0.0  ;;  %v2543_v36 = vmax.f32 %v2527_v57, 0.0  ;;  %v2544_v18 = vmax.f32 %v2528_v19, 0.0 }
 0x5e1   :  { %v2503_v60 = vmul.f32 %v2487_v11, %v4264_v58  ;;  %v2518_v9 = vmul.f32 %v2658_v41, %v2499_v20  ;;  %v2533_v21 = vadd.f32 %v2659_v42, %v2514_v10  ;;  %v2545_v28 = vmax.f32 %v2529_v25, 0.0 }
 0x5e2   :  { %v2519_v37 = vmul.f32 %v2658_v41, %v2500_v44  ;;  %v2534_v13 = vadd.f32 %v2659_v42, %v2515_v56  ;;  %v2546_v24 = vmax.f32 %v2530_v52, 0.0  ;;  %2558 = vst.msk [vmem:[%s4371_s7] sm:$0xff] %vm1164_vm12, %v2542_v16  ;;  %v2520_v47 = vmul.f32 %v2658_v41, %v2501_v0 }
 0x5e3   :  { %v2535_v17 = vadd.f32 %v2659_v42, %v2516_v55  ;;  %v2547_v12 = vmax.f32 %v2531_v62, 0.0  ;;  %2559 = vst.msk [vmem:[%s4371_s7 + $0x8] sm:$0xff] %vm1164_vm12, %v2543_v36  ;;  %v2521_v58 = vmul.f32 %v2658_v41, %v2502_v27  ;;  %v2536_v38 = vadd.f32 %v2659_v42, %v2517_v32 }
 0x5e4   :  { %v2548_v2 = vmax.f32 %v2532_v63, 0.0  ;;  %2560 = vst.msk [vmem:[%s4371_s7 + $0x10] sm:$0xff] %vm1164_vm12, %v2544_v18  ;;  %v2522_v34 = vmul.f32 %v2658_v41, %v2503_v60  ;;  %v2537_v39 = vadd.f32 %v2659_v42, %v2518_v9  ;;  %v2549_v15 = vmax.f32 %v2533_v21, 0.0 }
 0x5e5   :  { %2561 = vst.msk [vmem:[%s4371_s7 + $0x18] sm:$0xff] %vm1164_vm12, %v2545_v28  ;;  %v2538_v26 = vadd.f32 %v2659_v42, %v2519_v37  ;;  %v2550_v33 = vmax.f32 %v2534_v13, 0.0  ;;  %v2539_v30 = vadd.f32 %v2659_v42, %v2520_v47  ;;  %v2551_v6 = vmax.f32 %v2535_v17, 0.0 }
 0x5e6   :  { %2562 = vst.msk [vmem:[%s4371_s7 + $0x20] sm:$0xff] %vm1164_vm12, %v2546_v24  ;;  %v2540_v48 = vadd.f32 %v2659_v42, %v2521_v58  ;;  %v2552_v43 = vmax.f32 %v2536_v38, 0.0  ;;  %v2541_v4 = vadd.f32 %v2659_v42, %v2522_v34  ;;  %v2553_v53 = vmax.f32 %v2537_v39, 0.0 }
 0x5e7   :  { %2563 = vst.msk [vmem:[%s4371_s7 + $0x28] sm:$0xff] %vm1164_vm12, %v2547_v12  ;;  %v2554_v40 = vmax.f32 %v2538_v26, 0.0  ;;  %v2555_v11 = vmax.f32 %v2539_v30, 0.0 }
 0x5e8   :  { %2564 = vst.msk [vmem:[%s4371_s7 + $0x30] sm:$0xff] %vm1164_vm12, %v2548_v2  ;;  %v2556_v54 = vmax.f32 %v2540_v48, 0.0  ;;  %v2557_v3 = vmax.f32 %v2541_v4, 0.0 }
 0x5e9   :  { %2565 = vst.msk [vmem:[%s4371_s7 + $0x38] sm:$0xff] %vm1164_vm12, %v2549_v15 }
 0x5ea   :  { %2566 = vst.msk [vmem:[%s4371_s7 + $0x40] sm:$0xff] %vm1164_vm12, %v2550_v33 }
 0x5eb   :  { %2567 = vst.msk [vmem:[%s4371_s7 + $0x48] sm:$0xff] %vm1164_vm12, %v2551_v6 }
 0x5ec   :  { %2568 = vst.msk [vmem:[%s4371_s7 + $0x50] sm:$0xff] %vm1164_vm12, %v2552_v43 }
 0x5ed   :  { %2569 = vst.msk [vmem:[%s4371_s7 + $0x58] sm:$0xff] %vm1164_vm12, %v2553_v53 }
 0x5ee   :  { %2570 = vst.msk [vmem:[%s4371_s7 + $0x60] sm:$0xff] %vm1164_vm12, %v2554_v40 }
 0x5ef   :  { %2571 = vst.msk [vmem:[%s4371_s7 + $0x68] sm:$0xff] %vm1164_vm12, %v2555_v11 }
 0x5f0   :  { %2572 = vst.msk [vmem:[%s4371_s7 + $0x70] sm:$0xff] %vm1164_vm12, %v2556_v54 }
 0x5f1   :  { %2573 = vst.msk [vmem:[%s4371_s7 + $0x78] sm:$0xff] %vm1164_vm12, %v2557_v3 }

</bundles_post_ra>
